<compile_context>
chip_gen: v7x
topology: tpu7x:2x2x1
jax: 0.10.0
libtpu: 0.0.40
codegen_flags: <defaults>
</compile_context>

<pallas_src>
import jax
import jax.numpy as jnp
from jax import lax
from jax.experimental import pallas as pl
from jax.experimental.pallas import tpu as pltpu

NUM_KEYPOINTS = 256         # small stand-in for num_keypoints=5000
DESC_DIM = 128              # small stand-in for DeDoDe C=256
ROW_TILE = 128              # TQ; production: 256 (v7x, 64 MiB VMEM) / 512 (v5e, v6e)
NORMALIZE_DESCRIPTIONS = False
INV_TEMP = 1.0
MATCH_THR = 0.01
_BIG = 1e30                 # finite +/- sentinel (avoids inf*0 -> NaN)

# TODO(synk): detector.detect (keypoint detector) and depth-based warp_kpts are
# external modules; keypoints / warps are provided as inputs (homography path).
# TODO(synk): tracked_metrics EMA + random stdout print are host-side side
# effects and are not part of the kernel.
# TODO(synk): if profiling shows EUP (exp) binding instead of the MXU on
# v6e/v7x, switch the two (TQ,N) exps to bf16 operands (f32 accumulation).
# TODO(synk): on v7x with B == 1, split the row-tile axis across the two
# TensorCores (per-core column scratch + merge) to avoid an idle core.


# ------------------------------ Pallas kernel ------------------------------ #
def _make_descriptor_loss_kernel(tq, n_cols, n_valid_rows, needs_row_mask, thr2):
    """Returns the merged single-pass kernel (statics baked in as a closure)."""

    def kernel(dA_ref, dBt_ref, kA_ref, kA2B_ref, kBt_ref, kB2At_ref,
               nll_ref, cnt_ref,
               col_max, col_se, col_minA, pay_lse, pay_corr, pay_cand):
        t = pl.program_id(1)                       # row-tile index
        nt = pl.num_programs(1)

        @pl.when(t == 0)
        def _init():
            col_max[...] = jnp.full_like(col_max, -_BIG)
            col_se[...] = jnp.zeros_like(col_se)
            col_minA[...] = jnp.full_like(col_minA, _BIG)
            pay_lse[...] = jnp.zeros_like(pay_lse)
            pay_corr[...] = jnp.zeros_like(pay_corr)
            pay_cand[...] = jnp.zeros_like(pay_cand)
            nll_ref[...] = jnp.zeros_like(nll_ref)
            cnt_ref[...] = jnp.zeros_like(cnt_ref)

        dA = dA_ref[0]                             # (TQ, C) bf16, inv_temp folded
        dBt = dBt_ref[0]                           # (C, N)  bf16, resident per batch
        # corr[n, m] = inv_temp * <desc_A[n], desc_B[m]>   (bf16 MXU, f32 acc)
        corr = lax.dot_general(dA, dBt, (((1,), (0,)), ((), ())),
                               preferred_element_type=jnp.float32)   # (TQ, N)

        # squared keypoint distances (no sqrt; thresholds squared)
        kA = kA_ref[0]                             # (TQ, 2)
        kA2B = kA2B_ref[0]                         # (TQ, 2)
        kBt = kBt_ref[0]                           # (2, N)
        kB2At = kB2At_ref[0]                       # (2, N)
        dax = kA[:, 0:1] - kB2At[0:1, :]
        day = kA[:, 1:2] - kB2At[1:2, :]
        dA_sq = dax * dax + day * day              # (TQ, N)  cdist(kpts_A, kpts_B_to_A)^2
        dbx = kA2B[:, 0:1] - kBt[0:1, :]
        dby = kA2B[:, 1:2] - kBt[1:2, :]
        dB_sq = dbx * dbx + dby * dby              # (TQ, N)  cdist(kpts_A_to_B, kpts_B)^2

        if needs_row_mask:                         # static; no cost when N % TQ == 0
            row_local = lax.broadcasted_iota(jnp.int32, (tq, 1), 0)
            valid = (t * tq + row_local) < n_valid_rows          # (TQ, 1)
            corr = jnp.where(valid, corr, -_BIG)
            dA_sq = jnp.where(valid, dA_sq, _BIG)
            dB_sq = jnp.where(valid, dB_sq, _BIG)

        # ---- row softmax (dim=-1): complete within the tile ----
        m_r = jnp.max(corr, axis=-1, keepdims=True)              # (TQ, 1)
        e_r = jnp.exp(corr - m_r)
        lse_r = m_r + jnp.log(jnp.sum(e_r, axis=-1, keepdims=True))

        # ---- column softmax (dim=-2): exact online accumulation ----
        tcm = jnp.max(corr, axis=0, keepdims=True)               # (1, N)
        new_max = jnp.maximum(col_max[...], tcm)
        col_se[...] = (col_se[...] * jnp.exp(col_max[...] - new_max)
                       + jnp.sum(jnp.exp(corr - new_max), axis=0, keepdims=True))
        col_max[...] = new_max

        # ---- mutual-NN candidate flag (row-min + both thresholds) ----
        row_min_B = jnp.min(dB_sq, axis=-1, keepdims=True)       # (TQ, 1)
        cand = ((dB_sq <= row_min_B) & (dB_sq < thr2)
                & (dA_sq < thr2)).astype(jnp.float32)            # (TQ, N)

        # ---- per-column argmin of dA_sq within the tile, with payload ----
        tile_min = jnp.min(dA_sq, axis=0, keepdims=True)         # (1, N)
        is_min = dA_sq <= tile_min
        rows = lax.broadcasted_iota(jnp.int32, (tq, n_cols), 0)
        first = jnp.min(jnp.where(is_min, rows, tq), axis=0, keepdims=True)
        pick = (is_min & (rows == first)).astype(jnp.float32)    # one row per column
        t_lse = jnp.sum(pick * lse_r, axis=0, keepdims=True)     # (1, N)
        t_corr = jnp.sum(pick * corr, axis=0, keepdims=True)
        t_cand = jnp.sum(pick * cand, axis=0, keepdims=True)

        # merge with running column-argmin payload (strict <: earlier tile wins)
        better = tile_min < col_minA[...]
        pay_lse[...] = jnp.where(better, t_lse, pay_lse[...])
        pay_corr[...] = jnp.where(better, t_corr, pay_corr[...])
        pay_cand[...] = jnp.where(better, t_cand, pay_cand[...])
        col_minA[...] = jnp.where(better, tile_min, col_minA[...])

        # ---- O(N) finalize on the last row tile of this batch ----
        @pl.when(t == nt - 1)
        def _finalize():
            lse_c = col_max[...] + jnp.log(col_se[...])          # (1, N)
            m = pay_cand[...]                                    # match iff argmin row
            # -logP = lse_r + lse_c - 2*corr at the matched positions only
            nll = jnp.sum(m * (pay_lse[...] + lse_c - 2.0 * pay_corr[...]),
                          axis=-1, keepdims=True)                # (1, 1)
            cnt = jnp.sum(m, axis=-1, keepdims=True)
            nll_ref[0] = nll
            cnt_ref[0] = cnt

    return kernel


def descriptor_loss_pallas(desc_A, desc_B, kpts_A, kpts_B,
                           kpts_A_to_B, kpts_B_to_A, *,
                           normalize_descriptions=NORMALIZE_DESCRIPTIONS,
                           inv_temp=INV_TEMP,
                           row_tile=ROW_TILE,
                           vmem_limit_bytes=48 * 1024 * 1024):
    """Pooled  -logP[mutual-NN matches].mean()  (identical to the torch module).

    Per-chip tuning (production N=5000, C=256):
      v7x : row_tile=256, vmem_limit ~56 MiB (64 MiB physical VMEM)
      v6e : row_tile=512, vmem_limit ~96-112 MiB
      v5e : row_tile=512, vmem_limit ~96 MiB
    desc_B / column-keypoint blocks are grid-constant per batch; Pallas does
    not re-DMA a revisited block, so the only cost of default pipelining is the
    spare buffer (consider pl.Buffered(1) on those specs if VMEM-tight on v7x).
    """
    B, N, C = desc_A.shape
    desc_A = desc_A.astype(jnp.float32)
    desc_B = desc_B.astype(jnp.float32)

    # --- hoisted out of the kernel: normalization and inv_temperature fold ---
    if normalize_descriptions:
        desc_A = desc_A * lax.rsqrt(jnp.sum(desc_A * desc_A, -1, keepdims=True) + 1e-12)
        desc_B = desc_B * lax.rsqrt(jnp.sum(desc_B * desc_B, -1, keepdims=True) + 1e-12)
    desc_A = desc_A * jnp.float32(inv_temp)

    # --- row tiling (desc_A rows); pad to a multiple of the tile if needed ---
    tq = min(row_tile, N)
    assert tq == N or tq % 8 == 0, "row_tile must be a multiple of 8"
    n_pad = (-N) % tq
    Np = N + n_pad
    nt = Np // tq
    needs_mask = n_pad > 0

    kA = kpts_A.astype(jnp.float32)
    kA2B = kpts_A_to_B.astype(jnp.float32)
    if needs_mask:
        desc_A = jnp.pad(desc_A, ((0, 0), (0, n_pad), (0, 0)))
        kA = jnp.pad(kA, ((0, 0), (0, n_pad), (0, 0)), constant_values=1e3)
        kA2B = jnp.pad(kA2B, ((0, 0), (0, n_pad), (0, 0)), constant_values=1e3)

    dA = desc_A.astype(jnp.bfloat16)                                # (B, Np, C)
    dBt = jnp.transpose(desc_B, (0, 2, 1)).astype(jnp.bfloat16)     # (B, C, N)
    kBt = jnp.transpose(kpts_B, (0, 2, 1)).astype(jnp.float32)      # (B, 2, N)
    kB2At = jnp.transpose(kpts_B_to_A, (0, 2, 1)).astype(jnp.float32)

    kernel = _make_descriptor_loss_kernel(tq, N, N, needs_mask,
                                          MATCH_THR * MATCH_THR)

    spec_row_desc = pl.BlockSpec((1, tq, C), lambda b, t: (b, t, 0))
    spec_col_desc = pl.BlockSpec((1, C, N), lambda b, t: (b, 0, 0))
    spec_row_kpt = pl.BlockSpec((1, tq, 2), lambda b, t: (b, t, 0))
    spec_col_kpt = pl.BlockSpec((1, 2, N), lambda b, t: (b, 0, 0))
    spec_out = pl.BlockSpec((1, 1, 1), lambda b, t: (b, 0, 0))

    nll_sum, cnt = pl.pallas_call(
        kernel,
        out_shape=(jax.ShapeDtypeStruct((B, 1, 1), jnp.float32),
                   jax.ShapeDtypeStruct((B, 1, 1), jnp.float32)),
        grid_spec=pltpu.PrefetchScalarGridSpec(
            num_scalar_prefetch=0,
            grid=(B, nt),
            in_specs=[spec_row_desc, spec_col_desc, spec_row_kpt, spec_row_kpt,
                      spec_col_kpt, spec_col_kpt],
            out_specs=[spec_out, spec_out],
            scratch_shapes=[
                pltpu.VMEM((1, N), jnp.float32),   # running column max(corr)
                pltpu.VMEM((1, N), jnp.float32),   # running column sum-exp
                pltpu.VMEM((1, N), jnp.float32),   # running column min dA^2
                pltpu.VMEM((1, N), jnp.float32),   # payload: lse_r at argmin row
                pltpu.VMEM((1, N), jnp.float32),   # payload: corr at argmin row
                pltpu.VMEM((1, N), jnp.float32),   # payload: candidate flag
            ]),
        compiler_params=pltpu.CompilerParams(
            dimension_semantics=("parallel", "arbitrary"),
            vmem_limit_bytes=vmem_limit_bytes),
    )(dA, dBt, kA, kA2B, kBt, kB2At)

    # pooled -logP[matches].mean()   (NaN if no match, same as PyTorch)
    return jnp.sum(nll_sum) / jnp.sum(cnt)


# ------------------------------- JAX glue ---------------------------------- #
def grid_sample_bilinear(img, grid_xy):
    """F.grid_sample(img, grid[:, None], 'bilinear', align_corners=False)
    followed by [:, :, 0].mT.  img: (B, C, H, W), grid_xy: (B, N, 2) (x, y) in
    [-1, 1].  Returns (B, N, C)."""
    B, C, H, W = img.shape
    x = (grid_xy[..., 0] + 1.0) * W * 0.5 - 0.5
    y = (grid_xy[..., 1] + 1.0) * H * 0.5 - 0.5
    x0 = jnp.floor(x)
    y0 = jnp.floor(y)
    x1 = x0 + 1.0
    y1 = y0 + 1.0
    wx1 = x - x0
    wx0 = 1.0 - wx1
    wy1 = y - y0
    wy0 = 1.0 - wy1

    def gather(xi, yi):
        valid = ((xi >= 0) & (xi <= W - 1) & (yi >= 0) & (yi <= H - 1))
        xi_c = jnp.clip(xi, 0, W - 1).astype(jnp.int32)
        yi_c = jnp.clip(yi, 0, H - 1).astype(jnp.int32)
        v = jax.vmap(lambda im, yy, xx: im[:, yy, xx].T)(img, yi_c, xi_c)
        return v * valid[..., None].astype(img.dtype)

    out = (gather(x0, y0) * (wx0 * wy0)[..., None]
           + gather(x1, y0) * (wx1 * wy0)[..., None]
           + gather(x0, y1) * (wx0 * wy1)[..., None]
           + gather(x1, y1) * (wx1 * wy1)[..., None])
    return out


def homog_transform(Homog, kpts):
    """Homog: (B, 3, 3), kpts: (B, N, 2) -> (B, N, 2)."""
    ones = jnp.ones(kpts.shape[:-1] + (1,), kpts.dtype)
    kpts_h = jnp.concatenate([kpts, ones], axis=-1)
    kpts_t = jnp.einsum('bij,bnj->bni', Homog, kpts_h)
    return kpts_t[..., :2] / kpts_t[..., 2:3]


def reference_loss(desc_A, desc_B, kA, kB, kA2B, kB2A):
    corr = jnp.einsum('bnc,bmc->bnm',
                      (desc_A * INV_TEMP).astype(jnp.bfloat16),
                      desc_B.astype(jnp.bfloat16),
                      preferred_element_type=jnp.float32)
    logP = jax.nn.log_softmax(corr, axis=-2) + jax.nn.log_softmax(corr, axis=-1)

    def sqdist(a, b):
        dx = a[..., :, None, 0] - b[..., None, :, 0]
        dy = a[..., :, None, 1] - b[..., None, :, 1]
        return dx * dx + dy * dy

    thr2 = MATCH_THR * MATCH_THR
    D_B = sqdist(kA2B, kB)
    D_A = sqdist(kA, kB2A)
    mask = ((D_B == D_B.min(-1, keepdims=True))
            & (D_A == D_A.min(-2, keepdims=True))
            & (D_B < thr2) & (D_A < thr2))
    return -jnp.sum(jnp.where(mask, logP, 0.0)) / jnp.sum(mask)


# --------------------------------- main ------------------------------------ #
if __name__ == "__main__":
    Bp, C, H, W, N = 2, DESC_DIM, 16, 16, NUM_KEYPOINTS
    key = jax.random.PRNGKey(0)
    k1, k2 = jax.random.split(key)

    # synthetic stand-ins for outputs['description_grid'] and detector output
    description_grid = jax.random.normal(k1, (2 * Bp, C, H, W),
                                         dtype=jnp.float32)
    kpts_A = jax.random.uniform(k2, (Bp, N, 2), minval=-0.9, maxval=0.9,
                                dtype=jnp.float32)
    kpts_B = jnp.flip(kpts_A, axis=1)        # exact correspondences -> matches
    keypoints = jnp.concatenate([kpts_A, kpts_B], axis=0)
    Homog_A_to_B = jnp.tile(jnp.eye(3, dtype=jnp.float32)[None], (Bp, 1, 1))

    # ---- supervised_loss glue ----
    desc_grid_A, desc_grid_B = jnp.split(description_grid, 2, axis=0)
    kA, kB = jnp.split(keypoints, 2, axis=0)
    desc_A = grid_sample_bilinear(desc_grid_A, kA)        # (Bp, N, C)
    desc_B = grid_sample_bilinear(desc_grid_B, kB)        # (Bp, N, C)
    kpts_A_to_B = homog_transform(Homog_A_to_B, kA)
    kpts_B_to_A = homog_transform(jnp.linalg.inv(Homog_A_to_B), kB)

    loss = descriptor_loss_pallas(desc_A, desc_B, kA, kB,
                                  kpts_A_to_B, kpts_B_to_A)
    loss = jax.block_until_ready(loss)

    ref = jax.block_until_ready(
        reference_loss(desc_A, desc_B, kA, kB, kpts_A_to_B, kpts_B_to_A))
    if not bool(jnp.allclose(loss, ref, atol=2e-3, rtol=2e-3)):
        raise AssertionError(f"mismatch: pallas={loss} ref={ref}")
    print("KERNEL_OK")
</pallas_src>

<mosaic_0001>
module attributes {stable_mosaic.version = 11 : i64} {
  func.func @kernel(%arg0: i32, %arg1: i32, %arg2: memref<1x128x128xbf16, #tpu.memory_space<vmem>>, %arg3: memref<1x128x256xbf16, #tpu.memory_space<vmem>>, %arg4: memref<1x128x2xf32, #tpu.memory_space<vmem>>, %arg5: memref<1x128x2xf32, #tpu.memory_space<vmem>>, %arg6: memref<1x2x256xf32, #tpu.memory_space<vmem>>, %arg7: memref<1x2x256xf32, #tpu.memory_space<vmem>>, %arg8: memref<1x1x1xf32, #tpu.memory_space<vmem>>, %arg9: memref<1x1x1xf32, #tpu.memory_space<vmem>>, %arg10: memref<1x256xf32, #tpu.memory_space<vmem>>, %arg11: memref<1x256xf32, #tpu.memory_space<vmem>>, %arg12: memref<1x256xf32, #tpu.memory_space<vmem>>, %arg13: memref<1x256xf32, #tpu.memory_space<vmem>>, %arg14: memref<1x256xf32, #tpu.memory_space<vmem>>, %arg15: memref<1x256xf32, #tpu.memory_space<vmem>>) attributes {dimension_semantics = [#tpu.dimension_semantics<parallel>, #tpu.dimension_semantics<arbitrary>], iteration_bounds = array<i64: 2, 2>, scalar_prefetch = 0 : i64, scratch_operands = 6 : i64, tpu.core_type = #tpu.core_type<tc>, window_params = [{transform_indices = @transform_0, window_bounds = array<i64: 1, 128, 128>}, {transform_indices = @transform_1, window_bounds = array<i64: 1, 128, 256>}, {transform_indices = @transform_2, window_bounds = array<i64: 1, 128, 2>}, {transform_indices = @transform_3, window_bounds = array<i64: 1, 128, 2>}, {transform_indices = @transform_4, window_bounds = array<i64: 1, 2, 256>}, {transform_indices = @transform_5, window_bounds = array<i64: 1, 2, 256>}, {transform_indices = @transform_6, window_bounds = array<i64: 1, 1, 1>}, {transform_indices = @transform_7, window_bounds = array<i64: 1, 1, 1>}]} {
    %c0_i32 = arith.constant 0 : i32
    %0 = arith.cmpi eq, %arg1, %c0_i32 : i32
    %1 = arith.extui %0 : i1 to i32
    %c0_i32_0 = arith.constant 0 : i32
    %2 = arith.cmpi ne, %1, %c0_i32_0 : i32
    scf.if %2 {
      %cst_59 = arith.constant -1.000000e+30 : f32
      %121 = vector.broadcast %cst_59 : f32 to vector<1x256xf32>
      %c0_60 = arith.constant 0 : index
      %c0_61 = arith.constant 0 : index
      %122 = vector.load %arg10[%c0_60, %c0_61] : memref<1x256xf32, #tpu.memory_space<vmem>>, vector<1x256xf32>
      tpu.vector_store %arg10[%c0_60, %c0_61], %121 {strides = array<i32>} : memref<1x256xf32, #tpu.memory_space<vmem>>, vector<1x256xf32>,
      %cst_62 = arith.constant 0.000000e+00 : f32
      %123 = vector.broadcast %cst_62 : f32 to vector<1x256xf32>
      %c0_63 = arith.constant 0 : index
      %c0_64 = arith.constant 0 : index
      %124 = vector.load %arg11[%c0_63, %c0_64] : memref<1x256xf32, #tpu.memory_space<vmem>>, vector<1x256xf32>
      tpu.vector_store %arg11[%c0_63, %c0_64], %123 {strides = array<i32>} : memref<1x256xf32, #tpu.memory_space<vmem>>, vector<1x256xf32>,
      %cst_65 = arith.constant 1.000000e+30 : f32
      %125 = vector.broadcast %cst_65 : f32 to vector<1x256xf32>
      %c0_66 = arith.constant 0 : index
      %c0_67 = arith.constant 0 : index
      %126 = vector.load %arg12[%c0_66, %c0_67] : memref<1x256xf32, #tpu.memory_space<vmem>>, vector<1x256xf32>
      tpu.vector_store %arg12[%c0_66, %c0_67], %125 {strides = array<i32>} : memref<1x256xf32, #tpu.memory_space<vmem>>, vector<1x256xf32>,
      %cst_68 = arith.constant 0.000000e+00 : f32
      %127 = vector.broadcast %cst_68 : f32 to vector<1x256xf32>
      %c0_69 = arith.constant 0 : index
      %c0_70 = arith.constant 0 : index
      %128 = vector.load %arg13[%c0_69, %c0_70] : memref<1x256xf32, #tpu.memory_space<vmem>>, vector<1x256xf32>
      tpu.vector_store %arg13[%c0_69, %c0_70], %127 {strides = array<i32>} : memref<1x256xf32, #tpu.memory_space<vmem>>, vector<1x256xf32>,
      %cst_71 = arith.constant 0.000000e+00 : f32
      %129 = vector.broadcast %cst_71 : f32 to vector<1x256xf32>
      %c0_72 = arith.constant 0 : index
      %c0_73 = arith.constant 0 : index
      %130 = vector.load %arg14[%c0_72, %c0_73] : memref<1x256xf32, #tpu.memory_space<vmem>>, vector<1x256xf32>
      tpu.vector_store %arg14[%c0_72, %c0_73], %129 {strides = array<i32>} : memref<1x256xf32, #tpu.memory_space<vmem>>, vector<1x256xf32>,
      %cst_74 = arith.constant 0.000000e+00 : f32
      %131 = vector.broadcast %cst_74 : f32 to vector<1x256xf32>
      %c0_75 = arith.constant 0 : index
      %c0_76 = arith.constant 0 : index
      %132 = vector.load %arg15[%c0_75, %c0_76] : memref<1x256xf32, #tpu.memory_space<vmem>>, vector<1x256xf32>
      tpu.vector_store %arg15[%c0_75, %c0_76], %131 {strides = array<i32>} : memref<1x256xf32, #tpu.memory_space<vmem>>, vector<1x256xf32>,
      %cst_77 = arith.constant 0.000000e+00 : f32
      %133 = vector.broadcast %cst_77 : f32 to vector<1x1x1xf32>
      %c0_78 = arith.constant 0 : index
      %c0_79 = arith.constant 0 : index
      %c0_80 = arith.constant 0 : index
      %134 = vector.load %arg8[%c0_78, %c0_79, %c0_80] : memref<1x1x1xf32, #tpu.memory_space<vmem>>, vector<1x1x1xf32>
      tpu.vector_store %arg8[%c0_78, %c0_79, %c0_80], %133 {strides = array<i32>} : memref<1x1x1xf32, #tpu.memory_space<vmem>>, vector<1x1x1xf32>,
      %cst_81 = arith.constant 0.000000e+00 : f32
      %135 = vector.broadcast %cst_81 : f32 to vector<1x1x1xf32>
      %c0_82 = arith.constant 0 : index
      %c0_83 = arith.constant 0 : index
      %c0_84 = arith.constant 0 : index
      %136 = vector.load %arg9[%c0_82, %c0_83, %c0_84] : memref<1x1x1xf32, #tpu.memory_space<vmem>>, vector<1x1x1xf32>
      tpu.vector_store %arg9[%c0_82, %c0_83, %c0_84], %135 {strides = array<i32>} : memref<1x1x1xf32, #tpu.memory_space<vmem>>, vector<1x1x1xf32>,
    } else {
    }
    %c0 = arith.constant 0 : index
    %c0_1 = arith.constant 0 : index
    %c0_2 = arith.constant 0 : index
    %3 = vector.load %arg2[%c0, %c0_1, %c0_2] : memref<1x128x128xbf16, #tpu.memory_space<vmem>>, vector<1x128x128xbf16>
    %4 = vector.shape_cast %3 : vector<1x128x128xbf16> to vector<128x128xbf16>
    %c0_3 = arith.constant 0 : index
    %c0_4 = arith.constant 0 : index
    %c0_5 = arith.constant 0 : index
    %5 = vector.load %arg3[%c0_3, %c0_4, %c0_5] : memref<1x128x256xbf16, #tpu.memory_space<vmem>>, vector<1x128x256xbf16>
    %6 = vector.shape_cast %5 : vector<1x128x256xbf16> to vector<128x256xbf16>
    %cst = arith.constant dense<0.000000e+00> : vector<128x256xf32>
    %7 = tpu.matmul %4, %6, %cst {dimension_numbers = #tpu.dot_dimension_numbers<[1], [0], [0], [1], [0, 0, 1, 1], [], []>} : vector<128x128xbf16>, vector<128x256xbf16>, vector<128x256xf32> -> vector<128x256xf32>
    %c0_6 = arith.constant 0 : index
    %c0_7 = arith.constant 0 : index
    %c0_8 = arith.constant 0 : index
    %8 = vector.load %arg4[%c0_6, %c0_7, %c0_8] : memref<1x128x2xf32, #tpu.memory_space<vmem>>, vector<1x128x2xf32>
    %9 = vector.shape_cast %8 : vector<1x128x2xf32> to vector<128x2xf32>
    %c0_9 = arith.constant 0 : index
    %c0_10 = arith.constant 0 : index
    %c0_11 = arith.constant 0 : index
    %10 = vector.load %arg5[%c0_9, %c0_10, %c0_11] : memref<1x128x2xf32, #tpu.memory_space<vmem>>, vector<1x128x2xf32>
    %11 = vector.shape_cast %10 : vector<1x128x2xf32> to vector<128x2xf32>
    %c0_12 = arith.constant 0 : index
    %c0_13 = arith.constant 0 : index
    %c0_14 = arith.constant 0 : index
    %12 = vector.load %arg6[%c0_12, %c0_13, %c0_14] : memref<1x2x256xf32, #tpu.memory_space<vmem>>, vector<1x2x256xf32>
    %13 = vector.shape_cast %12 : vector<1x2x256xf32> to vector<2x256xf32>
    %c0_15 = arith.constant 0 : index
    %c0_16 = arith.constant 0 : index
    %c0_17 = arith.constant 0 : index
    %14 = vector.load %arg7[%c0_15, %c0_16, %c0_17] : memref<1x2x256xf32, #tpu.memory_space<vmem>>, vector<1x2x256xf32>
    %15 = vector.shape_cast %14 : vector<1x2x256xf32> to vector<2x256xf32>
    %16 = vector.extract_strided_slice %9 {offsets = [0, 0], sizes = [128, 1], strides = [1, 1]} : vector<128x2xf32> to vector<128x1xf32>
    %17 = vector.extract_strided_slice %15 {offsets = [0, 0], sizes = [1, 256], strides = [1, 1]} : vector<2x256xf32> to vector<1x256xf32>
    %18 = vector.broadcast %16 : vector<128x1xf32> to vector<128x256xf32>
    %19 = vector.broadcast %17 : vector<1x256xf32> to vector<128x256xf32>
    %20 = arith.subf %18, %19 : vector<128x256xf32>
    %21 = vector.extract_strided_slice %9 {offsets = [0, 1], sizes = [128, 1], strides = [1, 1]} : vector<128x2xf32> to vector<128x1xf32>
    %22 = vector.extract_strided_slice %15 {offsets = [1, 0], sizes = [1, 256], strides = [1, 1]} : vector<2x256xf32> to vector<1x256xf32>
    %23 = vector.broadcast %21 : vector<128x1xf32> to vector<128x256xf32>
    %24 = vector.broadcast %22 : vector<1x256xf32> to vector<128x256xf32>
    %25 = arith.subf %23, %24 : vector<128x256xf32>
    %26 = arith.mulf %20, %20 : vector<128x256xf32>
    %27 = arith.mulf %25, %25 : vector<128x256xf32>
    %28 = arith.addf %26, %27 : vector<128x256xf32>
    %29 = vector.extract_strided_slice %11 {offsets = [0, 0], sizes = [128, 1], strides = [1, 1]} : vector<128x2xf32> to vector<128x1xf32>
    %30 = vector.extract_strided_slice %13 {offsets = [0, 0], sizes = [1, 256], strides = [1, 1]} : vector<2x256xf32> to vector<1x256xf32>
    %31 = vector.broadcast %29 : vector<128x1xf32> to vector<128x256xf32>
    %32 = vector.broadcast %30 : vector<1x256xf32> to vector<128x256xf32>
    %33 = arith.subf %31, %32 : vector<128x256xf32>
    %34 = vector.extract_strided_slice %11 {offsets = [0, 1], sizes = [128, 1], strides = [1, 1]} : vector<128x2xf32> to vector<128x1xf32>
    %35 = vector.extract_strided_slice %13 {offsets = [1, 0], sizes = [1, 256], strides = [1, 1]} : vector<2x256xf32> to vector<1x256xf32>
    %36 = vector.broadcast %34 : vector<128x1xf32> to vector<128x256xf32>
    %37 = vector.broadcast %35 : vector<1x256xf32> to vector<128x256xf32>
    %38 = arith.subf %36, %37 : vector<128x256xf32>
    %39 = arith.mulf %33, %33 : vector<128x256xf32>
    %40 = arith.mulf %38, %38 : vector<128x256xf32>
    %41 = arith.addf %39, %40 : vector<128x256xf32>
    %cst_18 = arith.constant dense<0xFF800000> : vector<128xf32>
    %42 = vector.multi_reduction <maximumf>, %7, %cst_18 [1] : vector<128x256xf32> to vector<128xf32>
    %43 = vector.shape_cast %42 : vector<128xf32> to vector<128x1xf32>
    %44 = vector.broadcast %43 : vector<128x1xf32> to vector<128x256xf32>
    %45 = arith.subf %7, %44 : vector<128x256xf32>
    %46 = math.exp %45 : vector<128x256xf32>
    %cst_19 = arith.constant dense<0.000000e+00> : vector<128xf32>
    %47 = vector.multi_reduction <add>, %46, %cst_19 [1] : vector<128x256xf32> to vector<128xf32>
    %48 = vector.shape_cast %47 : vector<128xf32> to vector<128x1xf32>
    %49 = math.log %48 : vector<128x1xf32>
    %50 = arith.addf %43, %49 : vector<128x1xf32>
    %cst_20 = arith.constant dense<0xFF800000> : vector<256xf32>
    %51 = vector.multi_reduction <maximumf>, %7, %cst_20 [0] : vector<128x256xf32> to vector<256xf32>
    %52 = vector.shape_cast %51 : vector<256xf32> to vector<1x256xf32>
    %c0_21 = arith.constant 0 : index
    %c0_22 = arith.constant 0 : index
    %53 = vector.load %arg10[%c0_21, %c0_22] : memref<1x256xf32, #tpu.memory_space<vmem>>, vector<1x256xf32>
    %54 = arith.maximumf %53, %52 : vector<1x256xf32>
    %c0_23 = arith.constant 0 : index
    %c0_24 = arith.constant 0 : index
    %55 = vector.load %arg11[%c0_23, %c0_24] : memref<1x256xf32, #tpu.memory_space<vmem>>, vector<1x256xf32>
    %c0_25 = arith.constant 0 : index
    %c0_26 = arith.constant 0 : index
    %56 = vector.load %arg10[%c0_25, %c0_26] : memref<1x256xf32, #tpu.memory_space<vmem>>, vector<1x256xf32>
    %57 = arith.subf %56, %54 : vector<1x256xf32>
    %58 = math.exp %57 : vector<1x256xf32>
    %59 = arith.mulf %55, %58 : vector<1x256xf32>
    %60 = vector.broadcast %54 : vector<1x256xf32> to vector<128x256xf32>
    %61 = arith.subf %7, %60 : vector<128x256xf32>
    %62 = math.exp %61 : vector<128x256xf32>
    %cst_27 = arith.constant dense<0.000000e+00> : vector<256xf32>
    %63 = vector.multi_reduction <add>, %62, %cst_27 [0] : vector<128x256xf32> to vector<256xf32>
    %64 = vector.shape_cast %63 : vector<256xf32> to vector<1x256xf32>
    %65 = arith.addf %59, %64 : vector<1x256xf32>
    %c0_28 = arith.constant 0 : index
    %c0_29 = arith.constant 0 : index
    %66 = vector.load %arg11[%c0_28, %c0_29] : memref<1x256xf32, #tpu.memory_space<vmem>>, vector<1x256xf32>
    tpu.vector_store %arg11[%c0_28, %c0_29], %65 {strides = array<i32>} : memref<1x256xf32, #tpu.memory_space<vmem>>, vector<1x256xf32>,
    %c0_30 = arith.constant 0 : index
    %c0_31 = arith.constant 0 : index
    %67 = vector.load %arg10[%c0_30, %c0_31] : memref<1x256xf32, #tpu.memory_space<vmem>>, vector<1x256xf32>
    tpu.vector_store %arg10[%c0_30, %c0_31], %54 {strides = array<i32>} : memref<1x256xf32, #tpu.memory_space<vmem>>, vector<1x256xf32>,
    %cst_32 = arith.constant dense<0x7F800000> : vector<128xf32>
    %68 = vector.multi_reduction <minimumf>, %41, %cst_32 [1] : vector<128x256xf32> to vector<128xf32>
    %69 = vector.shape_cast %68 : vector<128xf32> to vector<128x1xf32>
    %70 = vector.broadcast %69 : vector<128x1xf32> to vector<128x256xf32>
    %71 = arith.cmpf ole, %41, %70 : vector<128x256xf32>
    %cst_33 = arith.constant 9.99999974E-5 : f32
    %72 = vector.broadcast %cst_33 : f32 to vector<128x256xf32>
    %73 = arith.cmpf olt, %41, %72 : vector<128x256xf32>
    %74 = arith.andi %71, %73 : vector<128x256xi1>
    %cst_34 = arith.constant 9.99999974E-5 : f32
    %75 = vector.broadcast %cst_34 : f32 to vector<128x256xf32>
    %76 = arith.cmpf olt, %28, %75 : vector<128x256xf32>
    %77 = arith.andi %74, %76 : vector<128x256xi1>
    %78 = arith.extui %77 : vector<128x256xi1> to vector<128x256xi32>
    %79 = arith.sitofp %78 : vector<128x256xi32> to vector<128x256xf32>
    %cst_35 = arith.constant dense<0x7F800000> : vector<256xf32>
    %80 = vector.multi_reduction <minimumf>, %28, %cst_35 [0] : vector<128x256xf32> to vector<256xf32>
    %81 = vector.shape_cast %80 : vector<256xf32> to vector<1x256xf32>
    %82 = vector.broadcast %81 : vector<1x256xf32> to vector<128x256xf32>
    %83 = arith.cmpf ole, %28, %82 : vector<128x256xf32>
    %84 = tpu.iota {dimensions = array<i32: 0>} : vector<128x256xi32>
    %c128_i32 = arith.constant 128 : i32
    %85 = vector.broadcast %c128_i32 : i32 to vector<128x256xi32>
    %86 = arith.select %83, %84, %85 : vector<128x256xi1>, vector<128x256xi32>
    %cst_36 = arith.constant dense<2147483647> : vector<256xi32>
    %87 = vector.multi_reduction <minsi>, %86, %cst_36 [0] : vector<128x256xi32> to vector<256xi32>
    %88 = vector.shape_cast %87 : vector<256xi32> to vector<1x256xi32>
    %89 = vector.broadcast %88 : vector<1x256xi32> to vector<128x256xi32>
    %90 = arith.cmpi eq, %84, %89 : vector<128x256xi32>
    %91 = arith.andi %83, %90 : vector<128x256xi1>
    %92 = arith.extui %91 : vector<128x256xi1> to vector<128x256xi32>
    %93 = arith.sitofp %92 : vector<128x256xi32> to vector<128x256xf32>
    %94 = vector.broadcast %50 : vector<128x1xf32> to vector<128x256xf32>
    %95 = arith.mulf %93, %94 : vector<128x256xf32>
    %cst_37 = arith.constant dense<0.000000e+00> : vector<256xf32>
    %96 = vector.multi_reduction <add>, %95, %cst_37 [0] : vector<128x256xf32> to vector<256xf32>
    %97 = vector.shape_cast %96 : vector<256xf32> to vector<1x256xf32>
    %98 = arith.mulf %93, %7 : vector<128x256xf32>
    %cst_38 = arith.constant dense<0.000000e+00> : vector<256xf32>
    %99 = vector.multi_reduction <add>, %98, %cst_38 [0] : vector<128x256xf32> to vector<256xf32>
    %100 = vector.shape_cast %99 : vector<256xf32> to vector<1x256xf32>
    %101 = arith.mulf %93, %79 : vector<128x256xf32>
    %cst_39 = arith.constant dense<0.000000e+00> : vector<256xf32>
    %102 = vector.multi_reduction <add>, %101, %cst_39 [0] : vector<128x256xf32> to vector<256xf32>
    %103 = vector.shape_cast %102 : vector<256xf32> to vector<1x256xf32>
    %c0_40 = arith.constant 0 : index
    %c0_41 = arith.constant 0 : index
    %104 = vector.load %arg12[%c0_40, %c0_41] : memref<1x256xf32, #tpu.memory_space<vmem>>, vector<1x256xf32>
    %105 = arith.cmpf olt, %81, %104 : vector<1x256xf32>
    %c0_42 = arith.constant 0 : index
    %c0_43 = arith.constant 0 : index
    %106 = vector.load %arg13[%c0_42, %c0_43] : memref<1x256xf32, #tpu.memory_space<vmem>>, vector<1x256xf32>
    %107 = arith.select %105, %97, %106 : vector<1x256xi1>, vector<1x256xf32>
    %c0_44 = arith.constant 0 : index
    %c0_45 = arith.constant 0 : index
    %108 = vector.load %arg13[%c0_44, %c0_45] : memref<1x256xf32, #tpu.memory_space<vmem>>, vector<1x256xf32>
    tpu.vector_store %arg13[%c0_44, %c0_45], %107 {strides = array<i32>} : memref<1x256xf32, #tpu.memory_space<vmem>>, vector<1x256xf32>,
    %c0_46 = arith.constant 0 : index
    %c0_47 = arith.constant 0 : index
    %109 = vector.load %arg14[%c0_46, %c0_47] : memref<1x256xf32, #tpu.memory_space<vmem>>, vector<1x256xf32>
    %110 = arith.select %105, %100, %109 : vector<1x256xi1>, vector<1x256xf32>
    %c0_48 = arith.constant 0 : index
    %c0_49 = arith.constant 0 : index
    %111 = vector.load %arg14[%c0_48, %c0_49] : memref<1x256xf32, #tpu.memory_space<vmem>>, vector<1x256xf32>
    tpu.vector_store %arg14[%c0_48, %c0_49], %110 {strides = array<i32>} : memref<1x256xf32, #tpu.memory_space<vmem>>, vector<1x256xf32>,
    %c0_50 = arith.constant 0 : index
    %c0_51 = arith.constant 0 : index
    %112 = vector.load %arg15[%c0_50, %c0_51] : memref<1x256xf32, #tpu.memory_space<vmem>>, vector<1x256xf32>
    %113 = arith.select %105, %103, %112 : vector<1x256xi1>, vector<1x256xf32>
    %c0_52 = arith.constant 0 : index
    %c0_53 = arith.constant 0 : index
    %114 = vector.load %arg15[%c0_52, %c0_53] : memref<1x256xf32, #tpu.memory_space<vmem>>, vector<1x256xf32>
    tpu.vector_store %arg15[%c0_52, %c0_53], %113 {strides = array<i32>} : memref<1x256xf32, #tpu.memory_space<vmem>>, vector<1x256xf32>,
    %c0_54 = arith.constant 0 : index
    %c0_55 = arith.constant 0 : index
    %115 = vector.load %arg12[%c0_54, %c0_55] : memref<1x256xf32, #tpu.memory_space<vmem>>, vector<1x256xf32>
    %116 = arith.select %105, %81, %115 : vector<1x256xi1>, vector<1x256xf32>
    %c0_56 = arith.constant 0 : index
    %c0_57 = arith.constant 0 : index
    %117 = vector.load %arg12[%c0_56, %c0_57] : memref<1x256xf32, #tpu.memory_space<vmem>>, vector<1x256xf32>
    tpu.vector_store %arg12[%c0_56, %c0_57], %116 {strides = array<i32>} : memref<1x256xf32, #tpu.memory_space<vmem>>, vector<1x256xf32>,
    %c1_i32 = arith.constant 1 : i32
    %118 = arith.cmpi eq, %arg1, %c1_i32 : i32
    %119 = arith.extui %118 : i1 to i32
    %c0_i32_58 = arith.constant 0 : i32
    %120 = arith.cmpi ne, %119, %c0_i32_58 : i32
    scf.if %120 {
      %c0_59 = arith.constant 0 : index
      %c0_60 = arith.constant 0 : index
      %121 = vector.load %arg10[%c0_59, %c0_60] : memref<1x256xf32, #tpu.memory_space<vmem>>, vector<1x256xf32>
      %c0_61 = arith.constant 0 : index
      %c0_62 = arith.constant 0 : index
      %122 = vector.load %arg11[%c0_61, %c0_62] : memref<1x256xf32, #tpu.memory_space<vmem>>, vector<1x256xf32>
      %123 = math.log %122 : vector<1x256xf32>
      %124 = arith.addf %121, %123 : vector<1x256xf32>
      %c0_63 = arith.constant 0 : index
      %c0_64 = arith.constant 0 : index
      %125 = vector.load %arg15[%c0_63, %c0_64] : memref<1x256xf32, #tpu.memory_space<vmem>>, vector<1x256xf32>
      %c0_65 = arith.constant 0 : index
      %c0_66 = arith.constant 0 : index
      %126 = vector.load %arg13[%c0_65, %c0_66] : memref<1x256xf32, #tpu.memory_space<vmem>>, vector<1x256xf32>
      %127 = arith.addf %126, %124 : vector<1x256xf32>
      %c0_67 = arith.constant 0 : index
      %c0_68 = arith.constant 0 : index
      %128 = vector.load %arg14[%c0_67, %c0_68] : memref<1x256xf32, #tpu.memory_space<vmem>>, vector<1x256xf32>
      %cst_69 = arith.constant 2.000000e+00 : f32
      %129 = vector.broadcast %cst_69 : f32 to vector<1x256xf32>
      %130 = arith.mulf %129, %128 : vector<1x256xf32>
      %131 = arith.subf %127, %130 : vector<1x256xf32>
      %132 = arith.mulf %125, %131 : vector<1x256xf32>
      %cst_70 = arith.constant dense<0.000000e+00> : vector<1xf32>
      %133 = vector.multi_reduction <add>, %132, %cst_70 [1] : vector<1x256xf32> to vector<1xf32>
      %134 = vector.shape_cast %133 : vector<1xf32> to vector<1x1xf32>
      %cst_71 = arith.constant dense<0.000000e+00> : vector<1xf32>
      %135 = vector.multi_reduction <add>, %125, %cst_71 [1] : vector<1x256xf32> to vector<1xf32>
      %136 = vector.shape_cast %135 : vector<1xf32> to vector<1x1xf32>
      %c0_72 = arith.constant 0 : index
      %c0_73 = arith.constant 0 : index
      %c0_74 = arith.constant 0 : index
      %137 = vector.load %arg8[%c0_72, %c0_73, %c0_74] : memref<1x1x1xf32, #tpu.memory_space<vmem>>, vector<1x1x1xf32>
      %138 = vector.shape_cast %137 : vector<1x1x1xf32> to vector<1x1xf32>
      %139 = vector.shape_cast %134 : vector<1x1xf32> to vector<1x1x1xf32>
      tpu.vector_store %arg8[%c0_72, %c0_73, %c0_74], %139 {strides = array<i32>} : memref<1x1x1xf32, #tpu.memory_space<vmem>>, vector<1x1x1xf32>,
      %c0_75 = arith.constant 0 : index
      %c0_76 = arith.constant 0 : index
      %c0_77 = arith.constant 0 : index
      %140 = vector.load %arg9[%c0_75, %c0_76, %c0_77] : memref<1x1x1xf32, #tpu.memory_space<vmem>>, vector<1x1x1xf32>
      %141 = vector.shape_cast %140 : vector<1x1x1xf32> to vector<1x1xf32>
      %142 = vector.shape_cast %136 : vector<1x1xf32> to vector<1x1x1xf32>
      tpu.vector_store %arg9[%c0_75, %c0_76, %c0_77], %142 {strides = array<i32>} : memref<1x1x1xf32, #tpu.memory_space<vmem>>, vector<1x1x1xf32>,
    } else {
    }
    return
  }
  func.func @transform_0(%arg0: i32, %arg1: i32) -> (i32, i32, i32) {
    %c0_i32 = arith.constant 0 : i32
    %c0_i32_0 = arith.constant 0 : i32
    return %arg0, %arg1, %c0_i32 : i32, i32, i32
  }
  func.func @transform_1(%arg0: i32, %arg1: i32) -> (i32, i32, i32) {
    %c0_i32 = arith.constant 0 : i32
    %c0_i32_0 = arith.constant 0 : i32
    %c0_i32_1 = arith.constant 0 : i32
    return %arg0, %c0_i32, %c0_i32_0 : i32, i32, i32
  }
  func.func @transform_2(%arg0: i32, %arg1: i32) -> (i32, i32, i32) {
    %c0_i32 = arith.constant 0 : i32
    %c0_i32_0 = arith.constant 0 : i32
    return %arg0, %arg1, %c0_i32 : i32, i32, i32
  }
  func.func @transform_3(%arg0: i32, %arg1: i32) -> (i32, i32, i32) {
    %c0_i32 = arith.constant 0 : i32
    %c0_i32_0 = arith.constant 0 : i32
    return %arg0, %arg1, %c0_i32 : i32, i32, i32
  }
  func.func @transform_4(%arg0: i32, %arg1: i32) -> (i32, i32, i32) {
    %c0_i32 = arith.constant 0 : i32
    %c0_i32_0 = arith.constant 0 : i32
    %c0_i32_1 = arith.constant 0 : i32
    return %arg0, %c0_i32, %c0_i32_0 : i32, i32, i32
  }
  func.func @transform_5(%arg0: i32, %arg1: i32) -> (i32, i32, i32) {
    %c0_i32 = arith.constant 0 : i32
    %c0_i32_0 = arith.constant 0 : i32
    %c0_i32_1 = arith.constant 0 : i32
    return %arg0, %c0_i32, %c0_i32_0 : i32, i32, i32
  }
  func.func @transform_6(%arg0: i32, %arg1: i32) -> (i32, i32, i32) {
    %c0_i32 = arith.constant 0 : i32
    %c0_i32_0 = arith.constant 0 : i32
    %c0_i32_1 = arith.constant 0 : i32
    return %arg0, %c0_i32, %c0_i32_0 : i32, i32, i32
  }
  func.func @transform_7(%arg0: i32, %arg1: i32) -> (i32, i32, i32) {
    %c0_i32 = arith.constant 0 : i32
    %c0_i32_0 = arith.constant 0 : i32
    %c0_i32_1 = arith.constant 0 : i32
    return %arg0, %c0_i32, %c0_i32_0 : i32, i32, i32
  }
}

</mosaic_0001>

<bundles_post_ra>
// kernel: tpu_custom_call.1
= control target key start
LH: loop header
LB: loop body
LE: loop exit
PB: predicated region body
PF: predicated region fallthrough
CT: control target
= control target key end

     0   :  { %s3582_s24 = smov 0   ;;  %s3584_s25 = smov 0   ;;  %s6035_s0 = inlined_call_operand.vmem [shape: bf16[2,256,128], index: 0, kind: input, shape index: {}]   ;;  %s6036_s1 = inlined_call_operand.vmem [shape: bf16[2,128,256], index: 1, kind: input, shape index: {}]   ;;  %s6037_s2 = inlined_call_operand.vmem [shape: f32[2,256,2], index: 2, kind: input, shape index: {}]   ;;  %s6038_s3 = inlined_call_operand.vmem [shape: f32[2,256,2], index: 3, kind: input, shape index: {}]   ;;  %s6039_s4 = inlined_call_operand.vmem [shape: f32[2,2,256], index: 4, kind: input, shape index: {}]   ;;  %s6040_s5 = inlined_call_operand.vmem [shape: f32[2,2,256], index: 5, kind: input, shape index: {}]   ;;  %s6041_s6 = inlined_call_operand.vmem [shape: f32[2,1,1], index: 6, kind: output, shape index: {0}]   ;;  %s6042_s7 = inlined_call_operand.vmem [shape: f32[2,1,1], index: 7, kind: output, shape index: {1}]  }
   0x1   :  { %6312 = sst [smem:[#allocation114_spill]] %s6035_s0  ;;  %s3586_s26 = smov 0  }
   0x2   :  { %s3588_s27 = smov 0   ;;  %s3590_s28 = smov 0  }
   0x3 LB: > { %s27_s29 = sadd.s32 1, %s3525_s26  ;;  %s30_s30 = sadd.s32 1, %s3529_s27  ;;  %s3533_s28 = sphi %s3590_s28, %s18_s28   ;;  %s3529_s27 = sphi %s3588_s27, %s6814_s27   ;;  %s3525_s26 = sphi %s3586_s26, %s6813_s26   ;;  %s3521_s25 = sphi %s3584_s25, %s6812_s25   ;;  %s3517_s24 = sphi %s3582_s24, %s6811_s24  }
   0x4   : > { %p28_p0 = scmp.ge.s32.totalorder %s27_s29, 2  ;;  %p3118_p1 = scmp.ge.s32.totalorder %s3533_s28, 1 }
   0x5   : > { %p323_p2 = scmp.lt.s32.totalorder %s3533_s28, 5 }
   0x6   : > { %s6816_s29 = smov (%p28_p0, %s27_s29), 0  ;;  %s6818_s30 = smov (!%p28_p0, %s30_s30), %s3529_s27 }
   0x7   : > { %p324_p3 = pnand %p3118_p1, %p323_p2  ;;  %p32_p4 = scmp.ge.s32.totalorder %s6818_s30, 2 }
   0x9   : > { %s6820_s30 = smov (%p32_p4, %s6818_s30), 0  ;;  %327 = sbr.rel (%p324_p3) target bundleno = 878 (0x36e), region = 44 }
   0xa   : > { %6313 = sst [smem:[#allocation8_spill]] %s6820_s30 }
  0x10   : > { %s3119_s8 = sshll.u32 %s3517_s24, 4  ;;  %p394_p5 = scmp.lt.s32.totalorder %s3521_s25, 1 }
  0x11   : > { %p396_p6 = scmp.lt.s32.totalorder %s3119_s8, 31  ;;  %s6314_s0 = sld [smem:[#allocation114_spill]] }
  0x12   : > { %s6822_s25 = smov (!%p394_p5, %s3521_s25), 1  ;;  %p3134_p7 = scmp.ne.s32.totalorder %s3517_s24, 0 }
  0x13   : > { %s6824_s8 = smov (!%p396_p6, %s3119_s8), 31  ;;  %s3120_s9 = sshll.u32 %s6822_s25, 5  ;;  %v449_v0 = vlaneseq (!%p3134_p7)  ;;  %vm459_vm0 = vcmask (!%p3134_p7), 0   ;;  %v3535_v1 = vmov (!%p3134_p7), 0.0   ;;  %v3536_v2 = vmov (!%p3134_p7), -1e+30  }
  0x14   : > { %s3226_s10 = sshll.u32 %s6822_s25, 7  ;;  %s399_s11 = sadd.s32 %s3120_s9, %s6824_s8  ;;  %v3537_v3 = vmov (!%p3134_p7), 1e+30  }
  0x15   : > { %s3618_s14 = scalar_lea.vmem %s6036_s1, %s3226_s10  ;;  %s3121_s15 = sshll.u32 %s399_s11, 2  ;;  %vm451_vm1 = vcmp.lt.s32.totalorder (!%p3134_p7), %v449_v0, 256 }
  0x16   : > { %s3126_s16 = sshll.u32 %s399_s11, 3  ;;  %s3227_s9 = sshll.u32 %s6822_s25, 2  ;;  %453 = vst.msk [vmem:[#allocation2] sm:$0x3] (!%p3134_p7), %vm451_vm1, %v3536_v2  ;;  %454 = vst.msk [vmem:[#allocation3] sm:$0x3] (!%p3134_p7), %vm451_vm1, %v3535_v1 }
  0x17   : > { %s3623_s19 = scalar_lea.vmem %s6314_s0, %s3121_s15  ;;  %s3628_s22 = scalar_lea.vmem %s6037_s2, %s3126_s16  ;;  %456 = vst.msk [vmem:[#allocation5] sm:$0x3] (!%p3134_p7), %vm451_vm1, %v3535_v1  ;;  %457 = vst.msk [vmem:[#allocation6] sm:$0x3] (!%p3134_p7), %vm451_vm1, %v3535_v1 }
  0x18   : > { %s3633_s8 = scalar_lea.vmem %s6038_s3, %s3126_s16  ;;  %s3638_s11 = scalar_lea.vmem %s6039_s4, %s3227_s9  ;;  %458 = vst.msk [vmem:[#allocation7] sm:$0x3] (!%p3134_p7), %vm451_vm1, %v3535_v1  ;;  %455 = vst.msk [vmem:[#allocation4] sm:$0x3] (!%p3134_p7), %vm451_vm1, %v3537_v3 }
  0x19   : > { %s3643_s15 = scalar_lea.vmem %s6040_s5, %s3227_s9  ;;  %s3648_s21 = scalar_lea.vmem %s6041_s6, %s6822_s25 }
  0x1a   : > { %s3653_s16 = scalar_lea.vmem %s6042_s7, %s6822_s25  ;;  %448 = sbr.rel (%p3134_p7) target bundleno = 33 (0x21), region = 48  ;;  %460 = vst.msk [vmem:[%s3648_s21] sm:$0x1] (!%p3134_p7), %vm459_vm0, %v3535_v1 }
  0x1b   : > { %461 = vst.msk [vmem:[%s3653_s16] sm:$0x1] (!%p3134_p7), %vm459_vm0, %v3535_v1 }
  0x21 PF: > { %v3659_v4 = vld [vmem:[%s3628_s22] sm:$0xff]  ;;  %v3538_v5 = vmov 0   ;;  %v3302_v8 = vld [vmem:[%s3618_s14 + $0x14] ss:$8 sps:$4 sm:$0xff]   ;;  %v3669_v9 = vld [vmem:[%s3628_s22 + $0x8] sm:$0xff]  ;;  %v3539_v41 = vmov 1   ;;  %v6043_v63 = vlaneseq }
  0x22   : > { %3292 = vset.pattern.permute.xlu0 %v3538_v5  ;;  %v3299_v6 = vld [vmem:[%s3618_s14 + $0x4] ss:$8 sps:$4 sm:$0xff]   ;;  %v3301_v7 = vld [vmem:[%s3618_s14] ss:$8 sps:$4 sm:$0xff]   ;;  %3293 = vset.pattern.permute.xlu1 %v3538_v5  ;;  %v3304_v10 = vld [vmem:[%s3618_s14 + $0x10] ss:$8 sps:$4 sm:$0xff]  }
  0x23   : > { %771 = vperm.xlu0 %3292, %v3659_v4   ;;  %654 = vmatprep.mubr.bf16.mxu0 %v3538_v5  ;;  %v3305_v11 = vld [vmem:[%s3618_s14 + $0x24] ss:$8 sps:$4 sm:$0xff]   ;;  %v3674_v12 = vld [vmem:[%s3628_s22 + $0x10] sm:$0xff]  ;;  %v3682_v14 = vld [vmem:[%s3628_s22 + $0x18] sm:$0xff]  ;;  %v3777_v2 = vshrl.u32 %v6043_v63, 7  ;;  %p3223_p8 = scmp.ne.s32.totalorder %s3517_s24, 1 }
  0x24   : > { %622 = vmatprep.subr.bf16.mxu0 %v3299_v6  ;;  %3229 = vmatprep.subr.bf16.mxu1 %v3299_v6  ;;  %v3679_v13 = vld [vmem:[%s3628_s22 + $0x20] sm:$0xff]  ;;  %v3308_v16 = vld [vmem:[%s3618_s14 + $0x34] ss:$8 sps:$4 sm:$0xff]   ;;  %v3693_v18 = vld [vmem:[%s3628_s22 + $0x28] sm:$0xff] }
  0x25   : > { %623 = vmatpush1.bf16.msra.mxu0 %v3301_v7  ;;  %3237 = vmatpush1.bf16.msra.mxu1 %v3301_v7  ;;  %v3307_v15 = vld [vmem:[%s3618_s14 + $0x20] ss:$8 sps:$4 sm:$0xff]   ;;  %v3690_v17 = vld [vmem:[%s3628_s22 + $0x30] sm:$0xff]  ;;  %v3311_v20 = vld [vmem:[%s3618_s14 + $0x44] ss:$8 sps:$4 sm:$0xff]   ;;  %v856_v6 = vsub.s32 2, %v3777_v2 }
  0x26   : > { %624 = vmatprep.subr.bf16.mxu0 %v3302_v8  ;;  %3230 = vmatprep.subr.bf16.mxu1 %v3302_v8  ;;  %v3310_v19 = vld [vmem:[%s3618_s14 + $0x30] ss:$8 sps:$4 sm:$0xff]   ;;  %v3700_v21 = vld [vmem:[%s3628_s22 + $0x40] sm:$0xff]  ;;  %v3314_v24 = vld [vmem:[%s3618_s14 + $0x54] ss:$8 sps:$4 sm:$0xff]  }
  0x27   : > { %776 = vperm.xlu0 %3292, %v3669_v9   ;;  %781 = vperm.xlu1 %3293, %v3674_v12   ;;  %v3703_v22 = vld [vmem:[%s3628_s22 + $0x38] sm:$0xff]  ;;  %v3313_v23 = vld [vmem:[%s3618_s14 + $0x40] ss:$8 sps:$4 sm:$0xff]   ;;  %v3709_v25 = vld [vmem:[%s3628_s22 + $0x50] sm:$0xff] }
  0x28   : > { %694 = vmatprep.mubr.bf16.mxu1 %v3538_v5  ;;  %v3713_v26 = vld [vmem:[%s3628_s22 + $0x48] sm:$0xff]  ;;  %v3316_v27 = vld [vmem:[%s3618_s14 + $0x50] ss:$8 sps:$4 sm:$0xff]   ;;  %v3719_v29 = vld [vmem:[%s3628_s22 + $0x60] sm:$0xff] }
  0x29   : > { %625 = vmatpush1.bf16.msra.mxu0 %v3304_v10  ;;  %3238 = vmatpush1.bf16.msra.mxu1 %v3304_v10  ;;  %v3317_v28 = vld [vmem:[%s3618_s14 + $0x64] ss:$8 sps:$4 sm:$0xff]   ;;  %v3723_v30 = vld [vmem:[%s3628_s22 + $0x58] sm:$0xff]  ;;  %v3319_v31 = vld [vmem:[%s3618_s14 + $0x60] ss:$8 sps:$4 sm:$0xff]  }
  0x2a   : > { %626 = vmatprep.subr.bf16.mxu0 %v3305_v11  ;;  %3231 = vmatprep.subr.bf16.mxu1 %v3305_v11  ;;  %v3320_v32 = vld [vmem:[%s3618_s14 + $0x74] ss:$8 sps:$4 sm:$0xff]   ;;  %v748_v34 = vld [vmem:[%s3628_s22 + $0x68] sm:$0xff]  ;;  %v3322_v35 = vld [vmem:[%s3618_s14 + $0x70] ss:$8 sps:$4 sm:$0xff]  }
  0x2b   : > { %791 = vperm.xlu0 %3292, %v3679_v13   ;;  %786 = vperm.xlu1 %3293, %v3682_v14   ;;  %v749_v33 = vld [vmem:[%s3628_s22 + $0x70] sm:$0xff]  ;;  %v752_v36 = vld [vmem:[%s3633_s8 + $0x8] sm:$0xff]  ;;  %v3323_v37 = vld [vmem:[%s3623_s19] sm:$0xff]  }
  0x2c   : > { %v3324_v38 = vld [vmem:[%s3623_s19 + $0x20] sm:$0xff]   ;;  %v750_v39 = vld [vmem:[%s3628_s22 + $0x78] sm:$0xff]  ;;  %v3325_v43 = vld [vmem:[%s3623_s19 + $0x8] sm:$0xff]  }
  0x2d   : > { %627 = vmatpush1.bf16.msra.mxu0 %v3307_v15  ;;  %3239 = vmatpush1.bf16.msra.mxu1 %v3307_v15  ;;  %v754_v40 = vld [vmem:[%s3633_s8 + $0x18] sm:$0xff]  ;;  %v755_v42 = vld [vmem:[%s3633_s8 + $0x20] sm:$0xff]  ;;  %v3326_v44 = vld [vmem:[%s3623_s19 + $0x28] sm:$0xff]   ;;  %v970_v15 = vsub.s32 3, %v3777_v2 }
  0x2e   : > { %628 = vmatprep.subr.bf16.mxu0 %v3308_v16  ;;  %3232 = vmatprep.subr.bf16.mxu1 %v3308_v16  ;;  %v3327_v45 = vld [vmem:[%s3623_s19 + $0x10] sm:$0xff]   ;;  %v3329_v47 = vld [vmem:[%s3623_s19 + $0x18] sm:$0xff]   ;;  %v751_v49 = vld [vmem:[%s3633_s8] sm:$0xff] }
  0x2f   : > { %801 = vperm.xlu0 %3292, %v3690_v17   ;;  %796 = vperm.xlu1 %3293, %v3693_v18   ;;  %v3328_v46 = vld [vmem:[%s3623_s19 + $0x30] sm:$0xff]   ;;  %v3330_v48 = vld [vmem:[%s3623_s19 + $0x38] sm:$0xff]   ;;  %v756_v51 = vld [vmem:[%s3633_s8 + $0x28] sm:$0xff] }
  0x30   : > { %v753_v50 = vld [vmem:[%s3633_s8 + $0x10] sm:$0xff]  ;;  %v758_v53 = vld [vmem:[%s3633_s8 + $0x38] sm:$0xff]  ;;  %v759_v54 = vld [vmem:[%s3633_s8 + $0x40] sm:$0xff] }
  0x31   : > { %629 = vmatpush1.bf16.msra.mxu0 %v3310_v19  ;;  %3240 = vmatpush1.bf16.msra.mxu1 %v3310_v19  ;;  %v757_v52 = vld [vmem:[%s3633_s8 + $0x30] sm:$0xff]  ;;  %v760_v55 = vld [vmem:[%s3633_s8 + $0x48] sm:$0xff]  ;;  %v762_v57 = vld [vmem:[%s3633_s8 + $0x58] sm:$0xff] }
  0x32   : > { %630 = vmatprep.subr.bf16.mxu0 %v3311_v20  ;;  %3233 = vmatprep.subr.bf16.mxu1 %v3311_v20  ;;  %v761_v56 = vld [vmem:[%s3633_s8 + $0x50] sm:$0xff]  ;;  %v763_v58 = vld [vmem:[%s3633_s8 + $0x60] sm:$0xff]  ;;  %v764_v59 = vld [vmem:[%s3633_s8 + $0x68] sm:$0xff] }
  0x33   : > { %811 = vperm.xlu0 %3292, %v3700_v21   ;;  %806 = vperm.xlu1 %3293, %v3703_v22  }
  0x35   : > { %631 = vmatpush1.bf16.msra.mxu0 %v3313_v23  ;;  %3241 = vmatpush1.bf16.msra.mxu1 %v3313_v23 }
  0x36   : > { %632 = vmatprep.subr.bf16.mxu0 %v3314_v24  ;;  %3234 = vmatprep.subr.bf16.mxu1 %v3314_v24 }
  0x37   : > { %821 = vperm.xlu0 %3292, %v3709_v25   ;;  %816 = vperm.xlu1 %3293, %v3713_v26  }
  0x39   : > { %633 = vmatpush1.bf16.msra.mxu0 %v3316_v27  ;;  %3242 = vmatpush1.bf16.msra.mxu1 %v3316_v27 }
  0x3a   : > { %634 = vmatprep.subr.bf16.mxu0 %v3317_v28  ;;  %3235 = vmatprep.subr.bf16.mxu1 %v3317_v28 }
  0x3b   : > { %831 = vperm.xlu0 %3292, %v3719_v29   ;;  %826 = vperm.xlu1 %3293, %v3723_v30  }
  0x3d   : > { %635 = vmatpush1.bf16.msra.mxu0 %v3319_v31  ;;  %3243 = vmatpush1.bf16.msra.mxu1 %v3319_v31 }
  0x3e   : > { %636 = vmatprep.subr.bf16.mxu0 %v3320_v32  ;;  %3236 = vmatprep.subr.bf16.mxu1 %v3320_v32 }
  0x3f   : > { %841 = vperm.xlu0 %3292, %v749_v33   ;;  %836 = vperm.xlu1 %3293, %v748_v34  }
  0x41   : > { %637 = vmatpush1.bf16.msra.mxu0 %v3322_v35  ;;  %3244 = vmatpush1.bf16.msra.mxu1 %v3322_v35 }
  0x43   : > { %1117 = vperm.xlu0 %3292, %v752_v36   ;;  %846 = vperm.xlu1 %3293, %v750_v39  }
  0x44   : > { %655 = vmatmul.mubr.bf16.vlgmr.msra.gmra.mrb[0].mxu0 %v3323_v37  ;;  %695 = vmatmul.mubr.bf16.vlgmr.msra.gmra.mrb[0].mxu1 %v3324_v38 }
  0x45   : > { %664 = vmatprep.mubr.bf16.mxu0 %v3538_v5  ;;  %704 = vmatprep.mubr.bf16.mxu1 %v3538_v5 }
  0x47   : > { %1127 = vperm.xlu0 %3292, %v754_v40   ;;  %3294 = vset.pattern.permute.xlu1 %v3539_v41 }
  0x48   : > { %905 = vperm.xlu1 %3294, %v3669_v9   ;;  %v768_v9 = vld [vmem:[%s3643_s15] sm:$0xf] }
  0x49   : > { %v857_v11 = vrot.slane %v768_v9, %v856_v6 }
  0x4b   : > { %1132 = vperm.xlu0 %3292, %v755_v42  }
  0x4c   : > { %665 = vmatmul.mubr.bf16.gmra.mrb[4].mxu0 %v3325_v43  ;;  %705 = vmatmul.mubr.bf16.gmra.mrb[4].mxu1 %v3326_v44 }
  0x4d   : > { %674 = vmatprep.mubr.bf16.mxu0 %v3538_v5  ;;  %714 = vmatprep.mubr.bf16.mxu1 %v3538_v5 }
  0x4e   : > { %909 = vperm.xlu1 %3294, %v3674_v12  }
  0x4f   : > { %3297 = vset.pattern.permute.xlu0 %v3539_v41 }
  0x50   : > { %901 = vperm.xlu0 %3297, %v3659_v4  }
  0x52   : > { %917 = vperm.xlu1 %3294, %v3679_v13  }
  0x54   : > { %913 = vperm.xlu0 %3297, %v3682_v14   ;;  %675 = vmatmul.mubr.bf16.gmra.mrb[8].mxu0 %v3327_v45  ;;  %v3788_v14 = vsub.s32 1, %v3777_v2 }
  0x55   : > { %715 = vmatmul.mubr.bf16.gmra.mrb[8].mxu1 %v3328_v46  ;;  %684 = vmatprep.mubr.bf16.mxu0 %v3538_v5 }
  0x56   : > { %724 = vmatprep.mubr.bf16.mxu1 %v3538_v5  ;;  %925 = vperm.xlu1 %3294, %v3690_v17   ;;  %6316 = vst [vmem:[#allocation10_spill] sm:$0xff] %v3788_v14  ;;  %v967_v20 = vrot.slane %v768_v9, %v3788_v14 }
  0x58   : > { %921 = vperm.xlu0 %3297, %v3693_v18  }
  0x5a   : > { %933 = vperm.xlu1 %3294, %v3700_v21   ;;  %v971_v21 = vrot.slane %v768_v9, %v970_v15 }
  0x5c   : > { %929 = vperm.xlu0 %3297, %v3703_v22   ;;  %685 = vmatmul.mubr.bf16.gmra.mrb[12].mxu0 %v3329_v47  ;;  %v3810_v31 = vrot.slane %v971_v21, %v3788_v14 }
  0x5d   : > { %725 = vmatmul.mubr.bf16.gmra.mrb[12].mxu1 %v3330_v48 }
  0x5e   : > { %941 = vperm.xlu1 %3294, %v3709_v25  }
  0x60   : > { %937 = vperm.xlu0 %3297, %v3713_v26  }
  0x62   : > { %949 = vperm.xlu1 %3294, %v3719_v29  }
  0x64   : > { %945 = vperm.xlu0 %3297, %v3723_v30   ;;  %v3807_v30 = vrot.slane %v967_v20, %v3788_v14 }
  0x66   : > { %957 = vperm.xlu1 %3294, %v749_v33  }
  0x68   : > { %953 = vperm.xlu0 %3297, %v748_v34  }
  0x6a   : > { %3295 = vset.pattern.permute.xlu1 %v3538_v5 }
  0x6b   : > { %1112 = vperm.xlu1 %3295, %v751_v49  }
  0x6c   : > { %961 = vperm.xlu0 %3297, %v750_v39  }
  0x6f   : > { %1122 = vperm.xlu1 %3295, %v753_v50  }
  0x70   : > { %1246 = vperm.xlu0 %3297, %v752_v36  }
  0x73   : > { %3296 = vset.pattern.permute.xlu1 %v3539_v41 }
  0x74   : > { %1242 = vperm.xlu1 %3296, %v751_v49   ;;  %1250 = vperm.xlu0 %3297, %v753_v50  }
  0x78   : > { %1254 = vperm.xlu1 %3296, %v754_v40   ;;  %1258 = vperm.xlu0 %3297, %v755_v42  }
  0x7c   : > { %3298 = vset.pattern.permute.xlu1 %v3538_v5  ;;  %1262 = vperm.xlu0 %3297, %v756_v51   ;;  %v3780_v5 = vsub.s32 0, %v3777_v2 }
  0x7d   : > { %1137 = vperm.xlu1 %3298, %v756_v51  }
  0x7e   : > { %6315 = vst [vmem:[#allocation9_spill] sm:$0xff] %v3780_v5  ;;  %v853_v10 = vrot.slane %v768_v9, %v3780_v5  ;;  %v3795_v17 = vrot.slane %v857_v11, %v3780_v5 }
  0x80   : > { %1266 = vperm.xlu0 %3297, %v757_v52   ;;  %v3792_v16 = vrot.slane %v853_v10, %v3780_v5 }
  0x81   : > { %1142 = vperm.xlu1 %3298, %v757_v52  }
  0x84   : > { %1270 = vperm.xlu0 %3297, %v758_v53  }
  0x85   : > { %1147 = vperm.xlu1 %3298, %v758_v53  }
  0x88   : > { %1274 = vperm.xlu0 %3297, %v759_v54  }
  0x89   : > { %1152 = vperm.xlu1 %3298, %v759_v54  }
  0x8c   : > { %1278 = vperm.xlu0 %3297, %v760_v55  }
  0x8d   : > { %1157 = vperm.xlu1 %3298, %v760_v55  }
  0x90   : > { %1282 = vperm.xlu0 %3297, %v761_v56  }
  0x91   : > { %1162 = vperm.xlu1 %3298, %v761_v56  }
  0x94   : > { %1286 = vperm.xlu0 %3297, %v762_v57  }
  0x95   : > { %1167 = vperm.xlu1 %3298, %v762_v57  }
  0x98   : > { %1290 = vperm.xlu0 %3297, %v763_v58  }
  0x99   : > { %1172 = vperm.xlu1 %3298, %v763_v58  }
  0x9c   : > { %1294 = vperm.xlu0 %3297, %v764_v59  }
  0x9d   : > { %1177 = vperm.xlu1 %3298, %v764_v59  }
  0xa2   : > { %v772_v60 = vpop.permute.xlu0 %771 }
  0xa3   : > { %v868_v22 = vsub.f32 %v772_v60, %v3792_v16  ;;  %v869_v23 = vsub.f32 %v772_v60, %v3795_v17 }
  0xa5   : > { %v3812_v32 = vmul.f32 %v868_v22, %v868_v22  ;;  %v3814_v33 = vmul.f32 %v869_v23, %v869_v23 }
  0xa6   : > { %v777_v61 = vpop.permute.xlu0 %776  ;;  %v782_v62 = vpop.permute.xlu1 %781 }
  0xa7   : > { %v870_v26 = vsub.f32 %v777_v61, %v3792_v16  ;;  %v871_v27 = vsub.f32 %v777_v61, %v3795_v17  ;;  %v872_v28 = vsub.f32 %v782_v62, %v3792_v16  ;;  %v873_v29 = vsub.f32 %v782_v62, %v3795_v17 }
  0xa9   : > { %v3826_v42 = vmul.f32 %v870_v26, %v870_v26  ;;  %v3828_v43 = vmul.f32 %v871_v27, %v871_v27  ;;  %v1018_v44 = vmul.f32 %v872_v28, %v872_v28  ;;  %v1019_v45 = vmul.f32 %v873_v29, %v873_v29 }
  0xaa   : > { %v792_v0 = vpop.permute.xlu0 %791  ;;  %v787_v1 = vpop.permute.xlu1 %786 }
  0xab   : > { %v876_v34 = vsub.f32 %v792_v0, %v3792_v16  ;;  %v877_v35 = vsub.f32 %v792_v0, %v3795_v17  ;;  %v874_v40 = vsub.f32 %v787_v1, %v3792_v16  ;;  %v875_v41 = vsub.f32 %v787_v1, %v3795_v17 }
  0xad   : > { %v3834_v50 = vmul.f32 %v876_v34, %v876_v34  ;;  %v3836_v51 = vmul.f32 %v877_v35, %v877_v35  ;;  %v3846_v57 = vmul.f32 %v874_v40, %v874_v40  ;;  %v3848_v58 = vmul.f32 %v875_v41, %v875_v41 }
  0xae   : > { %v802_v3 = vpop.permute.xlu0 %801  ;;  %v797_v4 = vpop.permute.xlu1 %796 }
  0xaf   : > { %v880_v38 = vsub.f32 %v802_v3, %v3792_v16  ;;  %v881_v39 = vsub.f32 %v802_v3, %v3795_v17  ;;  %v878_v48 = vsub.f32 %v797_v4, %v3792_v16  ;;  %v879_v49 = vsub.f32 %v797_v4, %v3795_v17 }
  0xb1   : > { %v3842_v55 = vmul.f32 %v880_v38, %v880_v38  ;;  %v3844_v56 = vmul.f32 %v881_v39, %v881_v39  ;;  %v3858_v4 = vmul.f32 %v878_v48, %v878_v48 }
  0xb2   : > { %v812_v7 = vpop.permute.xlu0 %811  ;;  %v807_v8 = vpop.permute.xlu1 %806 }
  0xb3   : > { %v884_v46 = vsub.f32 %v812_v7, %v3792_v16  ;;  %v885_v47 = vsub.f32 %v812_v7, %v3795_v17  ;;  %v882_v52 = vsub.f32 %v807_v8, %v3792_v16  ;;  %v883_v53 = vsub.f32 %v807_v8, %v3795_v17 }
  0xb4   : > { %v3860_v7 = vmul.f32 %v879_v49, %v879_v49 }
  0xb5   : > { %v3854_v1 = vmul.f32 %v884_v46, %v884_v46  ;;  %v3856_v3 = vmul.f32 %v885_v47, %v885_v47  ;;  %v3862_v8 = vmul.f32 %v882_v52, %v882_v52  ;;  %v3864_v9 = vmul.f32 %v883_v53, %v883_v53 }
  0xb6   : > { %v822_v12 = vpop.permute.xlu0 %821  ;;  %v817_v13 = vpop.permute.xlu1 %816 }
  0xb7   : > { %v888_v60 = vsub.f32 %v822_v12, %v3792_v16  ;;  %v889_v61 = vsub.f32 %v822_v12, %v3795_v17  ;;  %v886_v62 = vsub.f32 %v817_v13, %v3792_v16  ;;  %v887_v0 = vsub.f32 %v817_v13, %v3795_v17 }
  0xb9   : > { %v3874_v23 = vmul.f32 %v888_v60, %v888_v60  ;;  %v3876_v26 = vmul.f32 %v889_v61, %v889_v61  ;;  %v3878_v27 = vmul.f32 %v886_v62, %v886_v62  ;;  %v3880_v28 = vmul.f32 %v887_v0, %v887_v0 }
  0xba   : > { %v832_v18 = vpop.permute.xlu0 %831  ;;  %v827_v19 = vpop.permute.xlu1 %826 }
  0xbb   : > { %v892_v10 = vsub.f32 %v832_v18, %v3792_v16  ;;  %v893_v11 = vsub.f32 %v832_v18, %v3795_v17  ;;  %v890_v21 = vsub.f32 %v827_v19, %v3792_v16  ;;  %v891_v22 = vsub.f32 %v827_v19, %v3795_v17 }
  0xbd   : > { %v3886_v38 = vmul.f32 %v892_v10, %v892_v10  ;;  %v3888_v19 = vmul.f32 %v893_v11, %v893_v11  ;;  %v3896_v47 = vmul.f32 %v890_v21, %v890_v21 }
  0xbe   : > { %v842_v24 = vpop.permute.xlu0 %841  ;;  %v837_v25 = vpop.permute.xlu1 %836 }
  0xbf   : > { %v896_v13 = vsub.f32 %v842_v24, %v3792_v16  ;;  %v897_v20 = vsub.f32 %v842_v24, %v3795_v17  ;;  %v894_v18 = vsub.f32 %v837_v25, %v3792_v16  ;;  %v895_v29 = vsub.f32 %v837_v25, %v3795_v17 }
  0xc0   : > { %v3898_v25 = vmul.f32 %v891_v22, %v891_v22 }
  0xc1   : > { %v3892_v41 = vmul.f32 %v896_v13, %v896_v13  ;;  %v3894_v46 = vmul.f32 %v897_v20, %v897_v20  ;;  %v3902_v60 = vmul.f32 %v894_v18, %v894_v18  ;;  %v3904_v61 = vmul.f32 %v895_v29, %v895_v29 }
  0xc2   : > { %v3818_v36 = vpop.permute.xlu0 %1117  ;;  %v3820_v37 = vpop.permute.xlu1 %846 }
  0xc3   : > { %6317 = vst [vmem:[#allocation11_spill] sm:$0xff] %v3818_v36  ;;  %v3912_v22 = vsub.f32 %v3820_v37, %v3792_v16 }
  0xc6   : > { %v3840_v54 = vpop.permute.xlu0 %1127 }
  0xc7   : > { %6318 = vst [vmem:[#allocation12_spill] sm:$0xff] %v3840_v54  ;;  %v906_v59 = vpop.permute.xlu1 %905 }
  0xc8   : > { %v984_v34 = vsub.f32 %v906_v59, %v3807_v30  ;;  %v985_v24 = vsub.f32 %v906_v59, %v3810_v31 }
  0xca   : > { %v3868_v12 = vpop.permute.xlu0 %1132  ;;  %v1048_v62 = vmul.f32 %v984_v34, %v984_v34  ;;  %v1049_v0 = vmul.f32 %v985_v24, %v985_v24 }
  0xcb   : > { %6319 = vst [vmem:[#allocation13_spill] sm:$0xff] %v3868_v12  ;;  %v4118_v12 = vadd.s32 56, %v3777_v2 }
  0xcd   : > { %v910_v35 = vpop.permute.xlu1 %909  ;;  %6367 = vst [vmem:[#allocation61_spill] sm:$0xff] %v4118_v12 }
  0xce   : > { %v986_v39 = vsub.f32 %v910_v35, %v3807_v30  ;;  %v987_v40 = vsub.f32 %v910_v35, %v3810_v31  ;;  %v3916_v35 = vsub.f32 %v3820_v37, %v3795_v17  ;;  %v3932_v17 = vadd.f32 %v1049_v0, %v3828_v43 }
  0xcf   : > { %v902_v48 = vpop.permute.xlu0 %901 }
  0xd0   : > { %v982_v49 = vsub.f32 %v902_v48, %v3807_v30  ;;  %v983_v52 = vsub.f32 %v902_v48, %v3810_v31  ;;  %v1050_v53 = vmul.f32 %v986_v39, %v986_v39  ;;  %v1051_v59 = vmul.f32 %v987_v40, %v987_v40  ;;  %6325 = vst [vmem:[#allocation19_spill] sm:$0xff] %v3932_v17 }
  0xd1   : > { %v918_v10 = vpop.permute.xlu1 %917  ;;  %v3929_v39 = vadd.f32 %v1048_v62, %v3826_v42 }
  0xd2   : > { %v1046_v11 = vmul.f32 %v982_v49, %v982_v49  ;;  %v1047_v13 = vmul.f32 %v983_v52, %v983_v52  ;;  %v3906_v20 = vadd.f32 %v1050_v53, %v1018_v44  ;;  %v3908_v21 = vadd.f32 %v1051_v59, %v1019_v45 }
  0xd3   : > { %v914_v18 = vpop.permute.xlu0 %913  ;;  %v990_v29 = vsub.f32 %v918_v10, %v3807_v30  ;;  %v991_v34 = vsub.f32 %v918_v10, %v3810_v31  ;;  %6324 = vst [vmem:[#allocation18_spill] sm:$0xff] %v3929_v39 }
  0xd4   : > { %6320 = vst [vmem:[#allocation14_spill] sm:$0xff] %v3906_v20  ;;  %6321 = vst [vmem:[#allocation15_spill] sm:$0xff] %v3908_v21  ;;  %v3921_v24 = vadd.f32 %v1046_v11, %v3812_v32  ;;  %v3924_v44 = vadd.f32 %v1047_v13, %v3814_v33  ;;  %v988_v45 = vsub.f32 %v914_v18, %v3807_v30 }
  0xd5   : > { %v989_v16 = vsub.f32 %v914_v18, %v3810_v31  ;;  %v1054_v37 = vmul.f32 %v990_v29, %v990_v29  ;;  %v1055_v40 = vmul.f32 %v991_v34, %v991_v34  ;;  %v926_v48 = vpop.permute.xlu1 %925 }
  0xd6   : > { %6322 = vst [vmem:[#allocation16_spill] sm:$0xff] %v3921_v24  ;;  %6323 = vst [vmem:[#allocation17_spill] sm:$0xff] %v3924_v44  ;;  %v2204_v32 = vmin.f32 %v3921_v24, %v3906_v20  ;;  %v2225_v33 = vmin.f32 %v3924_v44, %v3908_v21  ;;  %v1052_v49 = vmul.f32 %v988_v45, %v988_v45 }
  0xd7   : > { %v1053_v52 = vmul.f32 %v989_v16, %v989_v16  ;;  %v3939_v53 = vadd.f32 %v1054_v37, %v3834_v50  ;;  %v3942_v42 = vadd.f32 %v1055_v40, %v3836_v51  ;;  %v922_v59 = vpop.permute.xlu0 %921  ;;  %v994_v43 = vsub.f32 %v926_v48, %v3807_v30 }
  0xd8   : > { %v995_v62 = vsub.f32 %v926_v48, %v3810_v31  ;;  %v3947_v0 = vadd.f32 %v1052_v49, %v3846_v57  ;;  %v992_v11 = vsub.f32 %v922_v59, %v3807_v30  ;;  %v993_v13 = vsub.f32 %v922_v59, %v3810_v31 }
  0xd9   : > { %6326 = vst [vmem:[#allocation20_spill] sm:$0xff] %v3939_v53  ;;  %6327 = vst [vmem:[#allocation21_spill] sm:$0xff] %v3942_v42  ;;  %v3950_v10 = vadd.f32 %v1053_v52, %v3848_v58  ;;  %v2206_v50 = vmin.f32 %v2204_v32, %v3939_v53  ;;  %v2227_v51 = vmin.f32 %v2225_v33, %v3942_v42  ;;  %v934_v34 = vpop.permute.xlu1 %933 }
  0xda   : > { %6328 = vst [vmem:[#allocation22_spill] sm:$0xff] %v3947_v0  ;;  %v1058_v18 = vmul.f32 %v994_v43, %v994_v43  ;;  %v1059_v29 = vmul.f32 %v995_v62, %v995_v62  ;;  %v2205_v45 = vmin.f32 %v3929_v39, %v3947_v0  ;;  %v1056_v16 = vmul.f32 %v992_v11, %v992_v11 }
  0xdb   : > { %6329 = vst [vmem:[#allocation23_spill] sm:$0xff] %v3950_v10  ;;  %v2226_v57 = vmin.f32 %v3932_v17, %v3950_v10  ;;  %v1057_v58 = vmul.f32 %v993_v13, %v993_v13  ;;  %v930_v48 = vpop.permute.xlu0 %929  ;;  %v998_v32 = vsub.f32 %v934_v34, %v3807_v30  ;;  %v999_v33 = vsub.f32 %v934_v34, %v3810_v31 }
  0xdc   : > { %v3961_v37 = vadd.f32 %v1058_v18, %v3842_v55  ;;  %v3964_v40 = vadd.f32 %v1059_v29, %v3844_v56  ;;  %v3969_v49 = vadd.f32 %v1056_v16, %v3858_v4  ;;  %v996_v59 = vsub.f32 %v930_v48, %v3807_v30 }
  0xdd   : > { %v3972_v52 = vadd.f32 %v1057_v58, %v3860_v7  ;;  %v997_v43 = vsub.f32 %v930_v48, %v3810_v31  ;;  %v1062_v62 = vmul.f32 %v998_v32, %v998_v32  ;;  %v1063_v11 = vmul.f32 %v999_v33, %v999_v33  ;;  %v942_v13 = vpop.permute.xlu1 %941 }
  0xde   : > { %6330 = vst [vmem:[#allocation24_spill] sm:$0xff] %v3961_v37  ;;  %6331 = vst [vmem:[#allocation25_spill] sm:$0xff] %v3964_v40  ;;  %v2208_v55 = vmin.f32 %v2206_v50, %v3961_v37  ;;  %v2229_v56 = vmin.f32 %v2227_v51, %v3964_v40  ;;  %v2207_v18 = vmin.f32 %v2205_v45, %v3969_v49 }
  0xdf   : > { %6332 = vst [vmem:[#allocation26_spill] sm:$0xff] %v3969_v49  ;;  %6333 = vst [vmem:[#allocation27_spill] sm:$0xff] %v3972_v52  ;;  %v2228_v29 = vmin.f32 %v2226_v57, %v3972_v52  ;;  %v1060_v4 = vmul.f32 %v996_v59, %v996_v59  ;;  %v1061_v34 = vmul.f32 %v997_v43, %v997_v43  ;;  %v938_v58 = vpop.permute.xlu0 %937 }
  0xe0   : > { %v3981_v7 = vadd.f32 %v1062_v62, %v3854_v1  ;;  %v3984_v16 = vadd.f32 %v1063_v11, %v3856_v3  ;;  %v1002_v50 = vsub.f32 %v942_v13, %v3807_v30  ;;  %v1003_v51 = vsub.f32 %v942_v13, %v3810_v31 }
  0xe1   : > { %v3989_v48 = vadd.f32 %v1060_v4, %v3862_v8  ;;  %v3992_v45 = vadd.f32 %v1061_v34, %v3864_v9  ;;  %v1000_v57 = vsub.f32 %v938_v58, %v3807_v30  ;;  %v1001_v32 = vsub.f32 %v938_v58, %v3810_v31  ;;  %v950_v43 = vpop.permute.xlu1 %949 }
  0xe2   : > { %6334 = vst [vmem:[#allocation28_spill] sm:$0xff] %v3981_v7  ;;  %6335 = vst [vmem:[#allocation29_spill] sm:$0xff] %v3984_v16  ;;  %v2210_v1 = vmin.f32 %v2208_v55, %v3981_v7  ;;  %v2231_v3 = vmin.f32 %v2229_v56, %v3984_v16  ;;  %v1066_v33 = vmul.f32 %v1002_v50, %v1002_v50 }
  0xe3   : > { %6336 = vst [vmem:[#allocation30_spill] sm:$0xff] %v3989_v48  ;;  %6337 = vst [vmem:[#allocation31_spill] sm:$0xff] %v3992_v45  ;;  %v1067_v59 = vmul.f32 %v1003_v51, %v1003_v51  ;;  %v2209_v62 = vmin.f32 %v2207_v18, %v3989_v48  ;;  %v2230_v11 = vmin.f32 %v2228_v29, %v3992_v45  ;;  %v946_v34 = vpop.permute.xlu0 %945 }
  0xe4   : > { %v1064_v8 = vmul.f32 %v1000_v57, %v1000_v57  ;;  %v1065_v13 = vmul.f32 %v1001_v32, %v1001_v32  ;;  %v4001_v9 = vadd.f32 %v1066_v33, %v3874_v23  ;;  %v1006_v55 = vsub.f32 %v950_v43, %v3807_v30 }
  0xe5   : > { %v4004_v4 = vadd.f32 %v1067_v59, %v3876_v26  ;;  %v1007_v56 = vsub.f32 %v950_v43, %v3810_v31  ;;  %v1004_v29 = vsub.f32 %v946_v34, %v3807_v30  ;;  %v1005_v50 = vsub.f32 %v946_v34, %v3810_v31  ;;  %v958_v32 = vpop.permute.xlu1 %957 }
  0xe6   : > { %6338 = vst [vmem:[#allocation32_spill] sm:$0xff] %v4001_v9  ;;  %v4009_v58 = vadd.f32 %v1064_v8, %v3878_v27  ;;  %v4012_v18 = vadd.f32 %v1065_v13, %v3880_v28  ;;  %v2212_v23 = vmin.f32 %v2210_v1, %v4001_v9  ;;  %v1070_v51 = vmul.f32 %v1006_v55, %v1006_v55 }
  0xe7   : > { %6339 = vst [vmem:[#allocation33_spill] sm:$0xff] %v4004_v4  ;;  %v2233_v26 = vmin.f32 %v2231_v3, %v4004_v4  ;;  %v1071_v57 = vmul.f32 %v1007_v56, %v1007_v56  ;;  %v1068_v27 = vmul.f32 %v1004_v29, %v1004_v29  ;;  %v1069_v43 = vmul.f32 %v1005_v50, %v1005_v50  ;;  %v954_v13 = vpop.permute.xlu0 %953 }
  0xe8   : > { %6340 = vst [vmem:[#allocation34_spill] sm:$0xff] %v4009_v58  ;;  %6341 = vst [vmem:[#allocation35_spill] sm:$0xff] %v4012_v18  ;;  %v2211_v33 = vmin.f32 %v2209_v62, %v4009_v58  ;;  %v2232_v59 = vmin.f32 %v2230_v11, %v4012_v18  ;;  %v4021_v28 = vadd.f32 %v1070_v51, %v3886_v38 }
  0xe9   : > { %v4024_v8 = vadd.f32 %v1071_v57, %v3888_v19  ;;  %v1010_v1 = vsub.f32 %v958_v32, %v3807_v30  ;;  %v1011_v3 = vsub.f32 %v958_v32, %v3810_v31  ;;  %v4029_v34 = vadd.f32 %v1068_v27, %v3896_v47 }
  0xea   : > { %6342 = vst [vmem:[#allocation36_spill] sm:$0xff] %v4021_v28  ;;  %v4032_v62 = vadd.f32 %v1069_v43, %v3898_v25  ;;  %v1008_v11 = vsub.f32 %v954_v13, %v3807_v30  ;;  %v1009_v55 = vsub.f32 %v954_v13, %v3810_v31  ;;  %v1044_v38 = vmul.f32 %v3912_v22, %v3912_v22  ;;  %v4042_v25 = vpop.permute.xlu1 %1112 }
  0xeb   : > { %6343 = vst [vmem:[#allocation37_spill] sm:$0xff] %v4024_v8  ;;  %6344 = vst [vmem:[#allocation38_spill] sm:$0xff] %v4029_v34  ;;  %v1045_v19 = vmul.f32 %v3916_v35, %v3916_v35  ;;  %v1074_v56 = vmul.f32 %v1010_v1, %v1010_v1  ;;  %v1075_v29 = vmul.f32 %v1011_v3, %v1011_v3  ;;  %v962_v35 = vpop.permute.xlu0 %961 }
  0xec   : > { %6345 = vst [vmem:[#allocation39_spill] sm:$0xff] %v4032_v62  ;;  %v2213_v50 = vmin.f32 %v2211_v33, %v4029_v34  ;;  %v2234_v47 = vmin.f32 %v2232_v59, %v4032_v62  ;;  %v1072_v51 = vmul.f32 %v1008_v11, %v1008_v11  ;;  %v1073_v57 = vmul.f32 %v1009_v55, %v1009_v55 }
  0xed   : > { %6346 = vst [vmem:[#allocation40_spill] sm:$0xff] %v4042_v25  ;;  %v2214_v32 = vmin.f32 %v2212_v23, %v4021_v28  ;;  %v2235_v27 = vmin.f32 %v2233_v26, %v4024_v8  ;;  %v4047_v43 = vadd.f32 %v1074_v56, %v3892_v41  ;;  %v4050_v22 = vadd.f32 %v1075_v29, %v3894_v46 }
  0xee   : > { %v4053_v33 = vadd.f32 %v1072_v51, %v3902_v60  ;;  %v4056_v59 = vadd.f32 %v1073_v57, %v3904_v61  ;;  %v1012_v13 = vsub.f32 %v962_v35, %v3807_v30  ;;  %v1013_v23 = vsub.f32 %v962_v35, %v3810_v31  ;;  %v4062_v46 = vpop.permute.xlu1 %1122  ;;  %v767_v30 = vld [vmem:[%s3638_s11] sm:$0xf] }
  0xef   : > { %6347 = vst [vmem:[#allocation41_spill] sm:$0xff] %v4047_v43  ;;  %6348 = vst [vmem:[#allocation42_spill] sm:$0xff] %v4050_v22  ;;  %v4064_v11 = vpop.permute.xlu0 %1246  ;;  %v2216_v60 = vmin.f32 %v2214_v32, %v4047_v43  ;;  %v2237_v55 = vmin.f32 %v2235_v27, %v4050_v22  ;;  %v1194_v35 = vrot.slane %v767_v30, %v3780_v5 }
  0xf0   : > { %6349 = vst [vmem:[#allocation43_spill] sm:$0xff] %v4053_v33  ;;  %6350 = vst [vmem:[#allocation44_spill] sm:$0xff] %v4056_v59  ;;  %v2215_v26 = vmin.f32 %v2213_v50, %v4053_v33  ;;  %v2236_v41 = vmin.f32 %v2234_v47, %v4056_v59  ;;  %v1076_v1 = vmul.f32 %v1012_v13, %v1012_v13 }
  0xf1   : > { %v1077_v3 = vmul.f32 %v1013_v23, %v1013_v23  ;;  %6351 = vst [vmem:[#allocation45_spill] sm:$0xff] %v4062_v46  ;;  %6352 = vst [vmem:[#allocation46_spill] sm:$0xff] %v4064_v11  ;;  %v1198_v32 = vrot.slane %v767_v30, %v856_v6  ;;  %v4096_v6 = vadd.s32 16, %v3777_v2  ;;  %v4145_v11 = vadd.s32 112, %v3777_v2 }
  0xf2   : > { %v4068_v61 = vadd.f32 %v1076_v1, %v1044_v38  ;;  %v4148_v46 = vadd.s32 120, %v3777_v2 }
  0xf3   : > { %v4070_v56 = vadd.f32 %v1077_v3, %v1045_v19  ;;  %v4075_v50 = vpop.permute.xlu1 %1242  ;;  %v4077_v47 = vpop.permute.xlu0 %1250  ;;  %v4090_v1 = vrot.slane %v1198_v32, %v3780_v5  ;;  %v4093_v3 = vadd.s32 8, %v3777_v2  ;;  %6360 = vst [vmem:[#allocation54_spill] sm:$0xff] %v4096_v6  ;;  %v4110_v32 = vadd.s32 40, %v3777_v2  ;;  %6376 = vst [vmem:[#allocation70_spill] sm:$0xff] %v4145_v11 }
  0xf4   : > { %6353 = vst [vmem:[#allocation47_spill] sm:$0xff] %v4068_v61  ;;  %v2217_v31 = vmin.f32 %v2215_v26, %v4068_v61  ;;  %6355 = vst [vmem:[#allocation49_spill] sm:$0xff] %v4075_v50 }
  0xf5   : > { %6354 = vst [vmem:[#allocation48_spill] sm:$0xff] %v4070_v56  ;;  %v2238_v29 = vmin.f32 %v2236_v41, %v4070_v56  ;;  %6356 = vst [vmem:[#allocation50_spill] sm:$0xff] %v4077_v47  ;;  %v4087_v41 = vrot.slane %v1194_v35, %v3780_v5  ;;  %v4107_v35 = vadd.s32 32, %v3777_v2 }
  0xf6   : > { %v2218_v51 = vmin.f32 %v2216_v60, %v2217_v31  ;;  %6359 = vst [vmem:[#allocation53_spill] sm:$0xff] %v4093_v3  ;;  %v4099_v31 = vadd.s32 24, %v3777_v2  ;;  %6364 = vst [vmem:[#allocation58_spill] sm:$0xff] %v4110_v32 }
  0xf7   : > { %v2239_v57 = vmin.f32 %v2237_v55, %v2238_v29  ;;  %v4082_v19 = vpop.permute.xlu0 %1258  ;;  %v4084_v26 = vpop.permute.xlu1 %1254  ;;  %v1308_v29 = vrot.slane %v767_v30, %v3788_v14  ;;  %6363 = vst [vmem:[#allocation57_spill] sm:$0xff] %v4107_v35  ;;  %6377 = vst [vmem:[#allocation71_spill] sm:$0xff] %v4148_v46 }
  0xf8   : > { %v2219_v38 = vrot.slane %v2218_v51, 4  ;;  %6357 = vst [vmem:[#allocation51_spill] sm:$0xff] %v4082_v19  ;;  %6358 = vst [vmem:[#allocation52_spill] sm:$0xff] %v4084_v26  ;;  %v4115_v19 = vadd.s32 48, %v3777_v2 }
  0xf9   : > { %v2240_v27 = vrot.slane %v2239_v57, 4  ;;  %6361 = vst [vmem:[#allocation55_spill] sm:$0xff] %v4099_v31  ;;  %v4139_v26 = vrot.slane %v1308_v29, %v3788_v14 }
  0xfa   : > { %v2220_v13 = vmin.f32 %v2218_v51, %v2219_v38  ;;  %v1312_v51 = vrot.slane %v767_v30, %v970_v15  ;;  %6366 = vst [vmem:[#allocation60_spill] sm:$0xff] %v4115_v19  ;;  %v4121_v15 = vadd.s32 64, %v3777_v2  ;;  %v4124_v30 = vadd.s32 72, %v3777_v2 }
  0xfb   : > { %v2241_v23 = vmin.f32 %v2239_v57, %v2240_v27  ;;  %v4104_v57 = vpop.permute.xlu0 %1262  ;;  %6374 = vst [vmem:[#allocation68_spill] sm:$0xff] %v4139_v26 }
  0xfc   : > { %v2221_v60 = vrot.slane %v2220_v13, 2  ;;  %6362 = vst [vmem:[#allocation56_spill] sm:$0xff] %v4104_v57  ;;  %v4112_v63 = vpop.permute.xlu1 %1137  ;;  %6368 = vst [vmem:[#allocation62_spill] sm:$0xff] %v4121_v15  ;;  %v4127_v57 = vadd.s32 80, %v3777_v2  ;;  %v4142_v47 = vrot.slane %v1312_v51, %v3788_v14 }
  0xfd   : > { %v2242_v55 = vrot.slane %v2241_v23, 2  ;;  %6365 = vst [vmem:[#allocation59_spill] sm:$0xff] %v4112_v63  ;;  %6369 = vst [vmem:[#allocation63_spill] sm:$0xff] %v4124_v30  ;;  %v4136_v63 = vadd.s32 104, %v3777_v2 }
  0xfe   : > { %v2222_v38 = vmin.f32 %v2220_v13, %v2221_v60  ;;  %6370 = vst [vmem:[#allocation64_spill] sm:$0xff] %v4127_v57  ;;  %v4130_v13 = vadd.s32 88, %v3777_v2  ;;  %6375 = vst [vmem:[#allocation69_spill] sm:$0xff] %v4142_v47 }
  0xff   : > { %v2243_v27 = vmin.f32 %v2241_v23, %v2242_v55  ;;  %v4133_v55 = vadd.s32 96, %v3777_v2  ;;  %6373 = vst [vmem:[#allocation67_spill] sm:$0xff] %v4136_v63  ;;  %v1267_v50 = vpop.permute.xlu0 %1266 }
 0x100   : > { %6371 = vst [vmem:[#allocation65_spill] sm:$0xff] %v4130_v13  ;;  %v2223_v23 = vrot.slane %v2222_v38, 1  ;;  %v1143_v5 = vpop.permute.xlu1 %1142  ;;  %v4161_v51 = vsub.f32 %v1267_v50, %v4139_v26  ;;  %v4164_v14 = vsub.f32 %v1267_v50, %v4142_v47 }
 0x101   : > { %v2244_v60 = vrot.slane %v2243_v27, 1  ;;  %6372 = vst [vmem:[#allocation66_spill] sm:$0xff] %v4133_v55  ;;  %v4155_v25 = vsub.f32 %v1143_v5, %v4087_v41  ;;  %v4158_v29 = vsub.f32 %v1143_v5, %v4090_v1 }
 0x102   : > { %v4150_v54 = vmin.f32 %v2222_v38, %v2223_v23 }
 0x103   : > { %v4152_v36 = vmin.f32 %v2243_v27, %v2244_v60 }
 0x104   : > { %6378 = vst [vmem:[#allocation72_spill] sm:$0xff] %v4150_v54  ;;  %vm6077_vm2 = vcmp.le.f32.partialorder %v3921_v24, %v4150_v54  ;;  %vm6071_vm4 = vcmp.le.f32.partialorder %v3929_v39, %v4150_v54  ;;  %vm6068_vm6 = vcmp.le.f32.partialorder %v3906_v20, %v4150_v54  ;;  %vm6074_vm8 = vcmp.le.f32.partialorder %v3947_v0, %v4150_v54 }
 0x105   : > { %6379 = vst [vmem:[#allocation73_spill] sm:$0xff] %v4152_v36  ;;  %vm2247_vm3 = vcmp.le.f32.partialorder %v3924_v44, %v4152_v36  ;;  %vm2249_vm5 = vcmp.le.f32.partialorder %v3932_v17, %v4152_v36  ;;  %vm2251_vm7 = vcmp.le.f32.partialorder %v3908_v21, %v4152_v36  ;;  %vm2253_vm9 = vcmp.le.f32.partialorder %v3950_v10, %v4152_v36 }
 0x106   : > { %vm6080_vm10 = vcmp.le.f32.partialorder %v3939_v53, %v4150_v54  ;;  %vm6141_vm13 = vcmp.le.f32.partialorder %v4024_v8, %v4152_v36  ;;  %vm6139_vm14 = vcmp.le.f32.partialorder %v4053_v33, %v4150_v54  ;;  %vm6129_vm15 = vcmp.le.f32.partialorder %v4056_v59, %v4152_v36 }
 0x107   : > { %vm6128_vm0 = vcmp.le.f32.partialorder %v4047_v43, %v4150_v54  ;;  %vm6127_vm1 = vcmp.le.f32.partialorder %v4050_v22, %v4152_v36  ;;  %vm6138_vm11 = vcmp.le.f32.partialorder %v4068_v61, %v4150_v54  ;;  %vm6140_vm12 = vcmp.le.f32.partialorder %v4070_v56, %v4152_v36 }
 0x108   : > { %v2295_v5 = vsel %vm6077_vm2, %v3777_v2, 128  ;;  %v2296_v50 = vsel %vm2247_vm3, %v3777_v2, 128  ;;  %v2297_v38 = vsel %vm6071_vm4, %v4093_v3, 128  ;;  %v2298_v27 = vsel %vm2249_vm5, %v4093_v3, 128 }
 0x109   : > { %v2299_v23 = vsel %vm6068_vm6, %v4096_v6, 128  ;;  %v2300_v60 = vsel %vm2251_vm7, %v4096_v6, 128  ;;  %v2301_v39 = vsel %vm6074_vm8, %v4099_v31, 128  ;;  %v2302_v24 = vsel %vm2253_vm9, %v4099_v31, 128 }
 0x10a   : > { %v2303_v20 = vsel %vm6080_vm10, %v4107_v35, 128  ;;  %vm6380_vm6 = vcmp.le.f32.partialorder %v3942_v42, %v4152_v36  ;;  %vm6381_vm4 = vcmp.le.f32.partialorder %v3969_v49, %v4150_v54  ;;  %vm6382_vm8 = vcmp.le.f32.partialorder %v3972_v52, %v4152_v36 }
 0x10b   : > { %v2304_v47 = vsel %vm6380_vm6, %v4107_v35, 128  ;;  %v2305_v0 = vsel %vm6381_vm4, %v4110_v32, 128  ;;  %v2306_v10 = vsel %vm6382_vm8, %v4110_v32, 128  ;;  %vm6383_vm2 = vcmp.le.f32.partialorder %v3961_v37, %v4150_v54 }
 0x10c   : > { %v2307_v53 = vsel %vm6383_vm2, %v4115_v19, 128  ;;  %vm6384_vm10 = vcmp.le.f32.partialorder %v3964_v40, %v4152_v36  ;;  %vm6385_vm6 = vcmp.le.f32.partialorder %v3989_v48, %v4150_v54  ;;  %vm6386_vm4 = vcmp.le.f32.partialorder %v3992_v45, %v4152_v36 }
 0x10d   : > { %v2308_v42 = vsel %vm6384_vm10, %v4115_v19, 128  ;;  %v2309_v49 = vsel %vm6385_vm6, %v4118_v12, 128  ;;  %v2310_v52 = vsel %vm6386_vm4, %v4118_v12, 128  ;;  %vm6387_vm8 = vcmp.le.f32.partialorder %v3981_v7, %v4150_v54 }
 0x10e   : > { %v2311_v37 = vsel %vm6387_vm8, %v4121_v15, 128  ;;  %vm6388_vm2 = vcmp.le.f32.partialorder %v3984_v16, %v4152_v36  ;;  %vm6389_vm10 = vcmp.le.f32.partialorder %v4009_v58, %v4150_v54  ;;  %vm6390_vm6 = vcmp.le.f32.partialorder %v4012_v18, %v4152_v36 }
 0x10f   : > { %v2312_v40 = vsel %vm6388_vm2, %v4121_v15, 128  ;;  %v2313_v48 = vsel %vm6389_vm10, %v4124_v30, 128  ;;  %v2314_v45 = vsel %vm6390_vm6, %v4124_v30, 128  ;;  %vm6391_vm4 = vcmp.le.f32.partialorder %v4001_v9, %v4150_v54 }
 0x110   : > { %v2315_v7 = vsel %vm6391_vm4, %v4127_v57, 128  ;;  %vm6392_vm8 = vcmp.le.f32.partialorder %v4004_v4, %v4152_v36  ;;  %vm6393_vm2 = vcmp.le.f32.partialorder %v4029_v34, %v4150_v54  ;;  %vm6394_vm10 = vcmp.le.f32.partialorder %v4032_v62, %v4152_v36 }
 0x111   : > { %v2316_v16 = vsel %vm6392_vm8, %v4127_v57, 128  ;;  %v2317_v58 = vsel %vm6393_vm2, %v4130_v13, 128  ;;  %v2318_v18 = vsel %vm6394_vm10, %v4130_v13, 128  ;;  %vm6395_vm6 = vcmp.le.f32.partialorder %v4021_v28, %v4150_v54  ;;  %v1271_v54 = vpop.permute.xlu0 %1270 }
 0x112   : > { %v2319_v9 = vsel %vm6395_vm6, %v4133_v55, 128  ;;  %v2320_v4 = vsel %vm6141_vm13, %v4133_v55, 128  ;;  %v2321_v34 = vsel %vm6139_vm14, %v4136_v63, 128  ;;  %v2322_v62 = vsel %vm6129_vm15, %v4136_v63, 128 }
 0x113   : > { %v4346_v28 = vsel %vm6128_vm0, %v4145_v11, 128  ;;  %v4352_v8 = vsel %vm6127_vm1, %v4145_v11, 128  ;;  %v4358_v33 = vsel %vm6138_vm11, %v4148_v46, 128  ;;  %v4364_v59 = vsel %vm6140_vm12, %v4148_v46, 128 }
 0x114   : > { %vm2327_vm4 = vcmp.lt.s32.totalorder %v2295_v5, %v2299_v23  ;;  %vm2329_vm8 = vcmp.lt.s32.totalorder %v2297_v38, %v2301_v39  ;;  %vm2366_vm2 = vcmp.lt.s32.totalorder %v2296_v50, %v2300_v60  ;;  %vm2368_vm10 = vcmp.lt.s32.totalorder %v2298_v27, %v2302_v24 }
 0x115   : > { %v2328_v43 = vsel %vm2327_vm4, %v2295_v5, %v2299_v23  ;;  %v2330_v22 = vsel %vm2329_vm8, %v2297_v38, %v2301_v39  ;;  %v2367_v11 = vsel %vm2366_vm2, %v2296_v50, %v2300_v60  ;;  %v2369_v63 = vsel %vm2368_vm10, %v2298_v27, %v2302_v24 }
 0x116   : > { %vm2331_vm6 = vcmp.lt.s32.totalorder %v2328_v43, %v2303_v20  ;;  %vm2333_vm1 = vcmp.lt.s32.totalorder %v2330_v22, %v2305_v0  ;;  %vm2370_vm0 = vcmp.lt.s32.totalorder %v2367_v11, %v2304_v47  ;;  %vm2372_vm15 = vcmp.lt.s32.totalorder %v2369_v63, %v2306_v10 }
 0x117   : > { %v2332_v61 = vsel %vm2331_vm6, %v2328_v43, %v2303_v20  ;;  %v2334_v55 = vsel %vm2333_vm1, %v2330_v22, %v2305_v0  ;;  %v2371_v13 = vsel %vm2370_vm0, %v2367_v11, %v2304_v47  ;;  %v2373_v57 = vsel %vm2372_vm15, %v2369_v63, %v2306_v10  ;;  %v4366_v5 = vpop.f32.mrb[0].mxu0  ;;  %v4368_v39 = vpop.f32.mrb[0].mxu1 }
 0x118   : > { %vm2335_vm11 = vcmp.lt.s32.totalorder %v2332_v61, %v2307_v53  ;;  %vm2337_vm14 = vcmp.lt.s32.totalorder %v2334_v55, %v2309_v49  ;;  %vm2374_vm12 = vcmp.lt.s32.totalorder %v2371_v13, %v2308_v42  ;;  %vm2376_vm13 = vcmp.lt.s32.totalorder %v2373_v57, %v2310_v52  ;;  %6396 = vst [vmem:[#allocation74_spill] sm:$0xff] %v4368_v39  ;;  %v4370_v20 = vpop.f32.mrb[1].mxu0  ;;  %v4372_v24 = vpop.f32.mrb[1].mxu1 }
 0x119   : > { %v2336_v56 = vsel %vm2335_vm11, %v2332_v61, %v2307_v53  ;;  %v2338_v46 = vsel %vm2337_vm14, %v2334_v55, %v2309_v49  ;;  %v2375_v30 = vsel %vm2374_vm12, %v2371_v13, %v2308_v42  ;;  %v2377_v15 = vsel %vm2376_vm13, %v2373_v57, %v2310_v52  ;;  %6397 = vst [vmem:[#allocation75_spill] sm:$0xff] %v4370_v20  ;;  %v4374_v53 = vpop.f32.mrb[2].mxu0  ;;  %v4376_v42 = vpop.f32.mrb[2].mxu1 }
 0x11a   : > { %vm2339_vm4 = vcmp.lt.s32.totalorder %v2336_v56, %v2311_v37  ;;  %vm2341_vm8 = vcmp.lt.s32.totalorder %v2338_v46, %v2313_v48  ;;  %vm2378_vm2 = vcmp.lt.s32.totalorder %v2375_v30, %v2312_v40  ;;  %vm2380_vm10 = vcmp.lt.s32.totalorder %v2377_v15, %v2314_v45  ;;  %6398 = vst [vmem:[#allocation76_spill] sm:$0xff] %v4376_v42  ;;  %v4378_v49 = vpop.f32.mrb[3].mxu0  ;;  %v4380_v52 = vpop.f32.mrb[3].mxu1 }
 0x11b   : > { %v2340_v63 = vsel %vm2339_vm4, %v2336_v56, %v2311_v37  ;;  %v2342_v0 = vsel %vm2341_vm8, %v2338_v46, %v2313_v48  ;;  %v2379_v10 = vsel %vm2378_vm2, %v2375_v30, %v2312_v40  ;;  %v2381_v43 = vsel %vm2380_vm10, %v2377_v15, %v2314_v45  ;;  %6399 = vst [vmem:[#allocation77_spill] sm:$0xff] %v4378_v49 }
 0x11c   : > { %vm2343_vm11 = vcmp.lt.s32.totalorder %v2340_v63, %v2315_v7  ;;  %vm2345_vm12 = vcmp.lt.s32.totalorder %v2342_v0, %v2317_v58  ;;  %vm2382_vm13 = vcmp.lt.s32.totalorder %v2379_v10, %v2316_v16  ;;  %vm2384_vm14 = vcmp.lt.s32.totalorder %v2381_v43, %v2318_v18 }
 0x11d   : > { %v2344_v22 = vsel %vm2343_vm11, %v2340_v63, %v2315_v7  ;;  %v2346_v11 = vsel %vm2345_vm12, %v2342_v0, %v2317_v58  ;;  %v2383_v61 = vsel %vm2382_vm13, %v2379_v10, %v2316_v16  ;;  %v2385_v47 = vsel %vm2384_vm14, %v2381_v43, %v2318_v18 }
 0x11e   : > { %vm2347_vm15 = vcmp.lt.s32.totalorder %v2344_v22, %v2319_v9  ;;  %vm2349_vm0 = vcmp.lt.s32.totalorder %v2346_v11, %v2321_v34  ;;  %vm2386_vm1 = vcmp.lt.s32.totalorder %v2383_v61, %v2320_v4  ;;  %vm2388_vm6 = vcmp.lt.s32.totalorder %v2385_v47, %v2322_v62 }
 0x11f   : > { %v2348_v37 = vsel %vm2347_vm15, %v2344_v22, %v2319_v9  ;;  %v2350_v40 = vsel %vm2349_vm0, %v2346_v11, %v2321_v34  ;;  %v2387_v48 = vsel %vm2386_vm1, %v2383_v61, %v2320_v4  ;;  %v2389_v45 = vsel %vm2388_vm6, %v2385_v47, %v2322_v62  ;;  %v4390_v9 = vpop.f32.mrb[4].mxu1  ;;  %v4392_v4 = vpop.f32.mrb[4].mxu0 }
 0x120   : > { %vm2351_vm4 = vcmp.lt.s32.totalorder %v2348_v37, %v4346_v28  ;;  %vm2353_vm8 = vcmp.lt.s32.totalorder %v2350_v40, %v4358_v33  ;;  %vm2390_vm2 = vcmp.lt.s32.totalorder %v2387_v48, %v4352_v8  ;;  %vm2392_vm10 = vcmp.lt.s32.totalorder %v2389_v45, %v4364_v59  ;;  %6400 = vst [vmem:[#allocation78_spill] sm:$0xff] %v4390_v9  ;;  %v4398_v46 = vpop.f32.mrb[5].mxu0 }
 0x121   : > { %v2352_v7 = vsel %vm2351_vm4, %v2348_v37, %v4346_v28  ;;  %v2354_v16 = vsel %vm2353_vm8, %v2350_v40, %v4358_v33  ;;  %v2391_v58 = vsel %vm2390_vm2, %v2387_v48, %v4352_v8  ;;  %v2393_v18 = vsel %vm2392_vm10, %v2389_v45, %v4364_v59  ;;  %6401 = vst [vmem:[#allocation79_spill] sm:$0xff] %v4398_v46  ;;  %v4400_v28 = vpop.f32.mrb[5].mxu1  ;;  %v4406_v57 = vpop.f32.mrb[6].mxu0 }
 0x122   : > { %vm2355_vm11 = vcmp.lt.s32.totalorder %v2352_v7, %v2354_v16  ;;  %vm2394_vm12 = vcmp.lt.s32.totalorder %v2391_v58, %v2393_v18  ;;  %v1475_v34 = vmax.f32 %v4368_v39, %v4372_v24  ;;  %v1451_v62 = vmax.f32 %v4366_v5, %v4370_v20  ;;  %v4408_v15 = vpop.f32.mrb[6].mxu1  ;;  %v4414_v38 = vpop.f32.mrb[7].mxu0 }
 0x123   : > { %v2356_v33 = vsel %vm2355_vm11, %v2352_v7, %v2354_v16  ;;  %v2395_v8 = vsel %vm2394_vm12, %v2391_v58, %v2393_v18  ;;  %v1478_v59 = vmax.f32 %v4376_v42, %v4380_v52  ;;  %v1454_v56 = vmax.f32 %v4374_v53, %v4378_v49  ;;  %6402 = vst [vmem:[#allocation80_spill] sm:$0xff] %v4414_v38  ;;  %v4416_v27 = vpop.f32.mrb[7].mxu1  ;;  %v1148_v45 = vpop.permute.xlu1 %1147 }
 0x124   : > { %v2357_v30 = vrot.slane %v2356_v33, 4  ;;  %v2396_v13 = vrot.slane %v2395_v8, 4  ;;  %1476 = vmax.xlane.f32.xlu0 %v1475_v34  ;;  %1452 = vmax.xlane.f32.xlu1 %v1451_v62  ;;  %v1691_v55 = vmax.f32 %v4366_v5, %v4392_v4  ;;  %v1712_v50 = vmax.f32 %v4370_v20, %v4398_v46 }
 0x125   : > { %v1692_v23 = vmax.f32 %v4374_v53, %v4406_v57  ;;  %v1713_v60 = vmax.f32 %v4378_v49, %v4414_v38  ;;  %v1457_v63 = vmax.f32 %v4392_v4, %v4398_v46  ;;  %v1460_v0 = vmax.f32 %v4406_v57, %v4414_v38 }
 0x126   : > { %vm2397_vm13 = vcmp.lt.s32.totalorder %v2395_v8, %v2396_v13  ;;  %v1481_v10 = vmax.f32 %v4390_v9, %v4400_v28  ;;  %v1484_v43 = vmax.f32 %v4408_v15, %v4416_v27  ;;  %vm2358_vm14 = vcmp.lt.s32.totalorder %v2356_v33, %v2357_v30 }
 0x127   : > { %v2398_v22 = vsel %vm2397_vm13, %v2395_v8, %v2396_v13  ;;  %v4430_v61 = vpop.f32.mrb[8].mxu0  ;;  %v1367_v47 = vmul.f32 %v4155_v25, %v4155_v25  ;;  %v1368_v37 = vmul.f32 %v4158_v29, %v4158_v29  ;;  %v1399_v40 = vmul.f32 %v4161_v51, %v4161_v51 }
 0x128   : > { %v2399_v11 = vrot.slane %v2398_v22, 2  ;;  %1479 = vmax.xlane.f32.xlu1 %v1478_v59  ;;  %1455 = vmax.xlane.f32.xlu0 %v1454_v56  ;;  %6403 = vst [vmem:[#allocation81_spill] sm:$0xff] %v4430_v61  ;;  %v1400_v48 = vmul.f32 %v4164_v14, %v4164_v14  ;;  %v4440_v7 = vsel %vm2358_vm14, %v2356_v33, %v2357_v30  ;;  %v4442_v16 = vpop.f32.mrb[8].mxu1  ;;  %v4445_v18 = vpop.f32.mrb[9].mxu0  ;;  %v3540_v25 = vmov 1966171168  }
 0x129   : > { %v1693_v58 = vmax.f32 %v1691_v55, %v4430_v61  ;;  %6404 = vst [vmem:[#allocation82_spill] sm:$0xff] %v4445_v18  ;;  %v4447_v34 = vunpack.c.l.s4 %v3540_v25  ;;  %v1714_v62 = vmax.f32 %v1712_v50, %v4445_v18  ;;  %v4450_v51 = vpop.f32.mrb[9].mxu1  ;;  %v4452_v8 = vpop.f32.mrb[10].mxu0  ;;  %v1463_v14 = vmax.f32 %v4430_v61, %v4445_v18 }
 0x12a   : > { %vm2400_vm15 = vcmp.lt.s32.totalorder %v2398_v22, %v2399_v11  ;;  %6405 = vst [vmem:[#allocation83_spill] sm:$0xff] %v4450_v51  ;;  %6406 = vst [vmem:[#allocation84_spill] sm:$0xff] %v4452_v8  ;;  %v1223_v33 = vsub.f32 %v1148_v45, %v4087_v41  ;;  %v4457_v56 = vpop.f32.mrb[10].mxu1  ;;  %v1694_v30 = vmax.f32 %v1692_v23, %v4452_v8  ;;  %v4460_v13 = vpop.f32.mrb[11].mxu0 }
 0x12b   : > { %v2401_v29 = vsel %vm2400_vm15, %v2398_v22, %v2399_v11  ;;  %6407 = vst [vmem:[#allocation85_spill] sm:$0xff] %v4460_v13  ;;  %v1224_v50 = vsub.f32 %v1148_v45, %v4090_v1  ;;  %v4465_v22 = vpop.f32.mrb[11].mxu1  ;;  %v1466_v11 = vmax.f32 %v4452_v8, %v4460_v13  ;;  %v4469_v25 = vadd.f32 %v1399_v40, %v1367_v47 }
 0x12c   : > { %v2402_v59 = vrot.slane %v2401_v29, 1  ;;  %1458 = vmax.xlane.f32.xlu0 %v1457_v63  ;;  %1461 = vmax.xlane.f32.xlu1 %v1460_v0  ;;  %v4471_v63 = vadd.f32 %v1400_v48, %v1368_v37  ;;  %v1715_v0 = vmax.f32 %v1713_v60, %v4460_v13  ;;  %v1490_v23 = vmax.f32 %v4457_v56, %v4465_v22 }
 0x12d   : > { %6408 = vst [vmem:[#allocation86_spill] sm:$0xff] %v4469_v25  ;;  %v4480_v55 = vsub.f32 %v1271_v54, %v4139_v26  ;;  %v6164_v48 = vmov 0.0  }
 0x12e   : > { %6409 = vst [vmem:[#allocation87_spill] sm:$0xff] %v4471_v63  ;;  %vm2403_vm0 = vcmp.lt.s32.totalorder %v2401_v29, %v2402_v59 }
 0x12f   : > { %v4476_v61 = vsel %vm2403_vm0, %v2401_v29, %v2402_v59  ;;  %v4489_v60 = vpop.f32.mrb[12].mxu0 }
 0x130   : > { %6410 = vst [vmem:[#allocation88_spill] sm:$0xff] %v4476_v61  ;;  %1482 = vmax.xlane.f32.xlu0 %v1481_v10  ;;  %1485 = vmax.xlane.f32.xlu1 %v1484_v43  ;;  %vm2406_vm1 = vcmp.eq.s32.totalorder %v3777_v2, %v4476_v61  ;;  %vm2408_vm6 = vcmp.eq.s32.totalorder %v4093_v3, %v4476_v61  ;;  %6411 = vst [vmem:[#allocation89_spill] sm:$0xff] %v4489_v60  ;;  %v4502_v47 = vpop.f32.mrb[12].mxu1  ;;  %v4505_v40 = vpop.f32.mrb[13].mxu0 }
 0x131   : > { %vm2410_vm4 = vcmp.eq.s32.totalorder %v4096_v6, %v4476_v61  ;;  %vm2412_vm8 = vcmp.eq.s32.totalorder %v4099_v31, %v4476_v61  ;;  %vm2414_vm2 = vcmp.eq.s32.totalorder %v4107_v35, %v4476_v61  ;;  %vm2438_vm10 = vmand %vm2247_vm3, %vm2406_vm1  ;;  %v4498_v10 = vmul.f32 %v1223_v33, %v1223_v33  ;;  %6412 = vst [vmem:[#allocation90_spill] sm:$0xff] %v4505_v40  ;;  %v4518_v59 = vpop.f32.mrb[13].mxu1  ;;  %v1153_v6 = vpop.permute.xlu1 %1152 }
 0x132   : > { %v4500_v43 = vmul.f32 %v1224_v50, %v1224_v50  ;;  %v1695_v37 = vmax.f32 %v1693_v58, %v4489_v60  ;;  %vm2416_vm11 = vcmp.eq.s32.totalorder %v4110_v32, %v4476_v61  ;;  %vm2418_vm12 = vcmp.eq.s32.totalorder %v4115_v19, %v4476_v61  ;;  %vm2440_vm3 = vmand %vm2249_vm5, %vm2408_vm6  ;;  %6414 = vst [vmem:[#allocation92_spill] sm:$0xff] %v4518_v59  ;;  %v4520_v58 = vpop.f32.mrb[14].mxu0  ;;  %v4536_v8 = vpop.f32.mrb[14].mxu1  ;;  %v6428_v32 = vld [vmem:[#allocation25_spill] sm:$0xff] }
 0x133   : > { %v4515_v29 = vsel %vm2438_vm10, 1.0, %v6164_v48  ;;  %v1716_v33 = vmax.f32 %v1714_v62, %v4505_v40  ;;  %6415 = vst [vmem:[#allocation93_spill] sm:$0xff] %v4520_v58  ;;  %vm2420_vm13 = vcmp.eq.s32.totalorder %v4118_v12, %v4476_v61  ;;  %vm2442_vm5 = vmand %vm2251_vm7, %vm2410_vm4  ;;  %v4531_v50 = vsel %vm2440_vm3, 1.0, %v6164_v48  ;;  %v4539_v44 = vpop.f32.mrb[15].mxu0  ;;  %v4565_v31 = vpop.f32.mrb[15].mxu1 }
 0x134   : > { %6413 = vst [vmem:[#allocation91_spill] sm:$0xff] %v4515_v29  ;;  %6416 = vst [vmem:[#allocation94_spill] sm:$0xff] %v4531_v50  ;;  %v1469_v62 = vmax.f32 %v4489_v60, %v4505_v40  ;;  %1464 = vmax.xlane.f32.xlu0 %v1463_v14  ;;  %1467 = vmax.xlane.f32.xlu1 %v1466_v11  ;;  %v1697_v45 = vmax.f32 %v1695_v37, %v4368_v39  ;;  %v4548_v25 = vsel %vm2442_vm5, 1.0, %v6164_v48  ;;  %v1275_v3 = vpop.permute.xlu0 %1274 }
 0x135   : > { %v1696_v17 = vmax.f32 %v1694_v30, %v4520_v58  ;;  %6417 = vst [vmem:[#allocation95_spill] sm:$0xff] %v4539_v44  ;;  %vm2444_vm7 = vmand %vm2253_vm9, %vm2412_vm8  ;;  %v2608_v14 = vmul.f32 %v4515_v29, %v4370_v20  ;;  %v1718_v11 = vmax.f32 %v1716_v33, %v4372_v24  ;;  %v1717_v37 = vmax.f32 %v1715_v0, %v4539_v44  ;;  %v6420_v30 = vld [vmem:[#allocation21_spill] sm:$0xff]  ;;  %v6423_v0 = vld [vmem:[#allocation27_spill] sm:$0xff] }
 0x136   : > { %6419 = vst [vmem:[#allocation96_spill] sm:$0xff] %v4548_v25  ;;  %vm6421_vm14 = vcmp.le.f32.partialorder %v6420_v30, %v4152_v36  ;;  %v4561_v21 = vsel %vm2444_vm7, 1.0, %v6164_v48  ;;  %v2610_v63 = vmul.f32 %v4531_v50, %v4378_v49  ;;  %v1699_v29 = vmax.f32 %v1697_v45, %v4390_v9  ;;  %v6427_v50 = vld [vmem:[#allocation69_spill] sm:$0xff] }
 0x137   : > { %vm2446_vm15 = vmand %vm6421_vm14, %vm2414_vm2  ;;  %6422 = vst [vmem:[#allocation97_spill] sm:$0xff] %v4561_v21  ;;  %v1698_v33 = vmax.f32 %v1696_v17, %v4376_v42  ;;  %vm6424_vm9 = vcmp.le.f32.partialorder %v6423_v0, %v4152_v36  ;;  %v2612_v48 = vmul.f32 %v4548_v25, %v4398_v46  ;;  %v1338_v35 = vsub.f32 %v1271_v54, %v6427_v50 }
 0x138   : > { %vm4575_vm0 = vmand %vm6424_vm9, %vm2416_vm11  ;;  %v1720_v45 = vmax.f32 %v1718_v11, %v4400_v28  ;;  %v1719_v17 = vmax.f32 %v1717_v37, %v4380_v52  ;;  %vm6429_vm1 = vcmp.le.f32.partialorder %v6428_v32, %v4152_v36  ;;  %v6430_v0 = vmov 0.0   ;;  %1491 = vmax.xlane.f32.xlu1 %v1490_v23  ;;  %v6433_v32 = vld [vmem:[#allocation31_spill] sm:$0xff] }
 0x139   : > { %vm2450_vm6 = vmand %vm6429_vm1, %vm2418_vm12  ;;  %v4591_v9 = vsel %vm2446_vm15, 1.0, %v6430_v0  ;;  %v2614_v25 = vmul.f32 %v4561_v21, %v4414_v38  ;;  %v6432_v54 = vmax.f32 %v4442_v16, %v4450_v51  ;;  %v1701_v11 = vmax.f32 %v1699_v29, %v4442_v16 }
 0x13a   : > { %6431 = vst [vmem:[#allocation98_spill] sm:$0xff] %v4591_v9  ;;  %v1700_v37 = vmax.f32 %v1698_v33, %v4408_v15  ;;  %vm6434_vm4 = vcmp.le.f32.partialorder %v6433_v32, %v4152_v36  ;;  %v4609_v21 = vsel %vm4575_vm0, 1.0, %v6430_v0  ;;  %v1722_v29 = vmax.f32 %v1720_v45, %v4450_v51 }
 0x13b   : > { %1488 = vmax.xlane.f32.xlu0 %v6432_v54  ;;  %vm2452_vm8 = vmand %vm6434_vm4, %vm2420_vm13  ;;  %6435 = vst [vmem:[#allocation99_spill] sm:$0xff] %v4609_v21  ;;  %v2616_v54 = vmul.f32 %v4591_v9, %v4445_v18  ;;  %v4615_v23 = vsel %vm2450_vm6, 1.0, %v6430_v0  ;;  %v2618_v33 = vmul.f32 %v4609_v21, %v4460_v13  ;;  %v2660_v12 = vadd.f32 %v2610_v63, %v2608_v14 }
 0x13c   : > { %6436 = vst [vmem:[#allocation100_spill] sm:$0xff] %v4615_v23  ;;  %v1703_v32 = vmax.f32 %v1701_v11, %v4502_v47  ;;  %v1702_v19 = vmax.f32 %v1700_v37, %v4457_v56  ;;  %v4622_v30 = vsel %vm2452_vm8, 1.0, %v6430_v0  ;;  %v1721_v36 = vmax.f32 %v1719_v17, %v4416_v27  ;;  %v1158_v37 = vpop.permute.xlu1 %1157 }
 0x13d   : > { %6437 = vst [vmem:[#allocation101_spill] sm:$0xff] %v4622_v30  ;;  %v1724_v9 = vmax.f32 %v1722_v29, %v4518_v59  ;;  %v2620_v45 = vmul.f32 %v4615_v23, %v4505_v40  ;;  %v2661_v61 = vadd.f32 %v2660_v12, %v2612_v48  ;;  %v1472_v51 = vmax.f32 %v4520_v58, %v4539_v44  ;;  %v1279_v29 = vpop.permute.xlu0 %1278 }
 0x13e   : > { %v1704_v63 = vmax.f32 %v1702_v19, %v4536_v8  ;;  %v2622_v14 = vmul.f32 %v4622_v30, %v4539_v44  ;;  %v1723_v11 = vmax.f32 %v1721_v36, %v4465_v22  ;;  %v1401_v17 = vmul.f32 %v4480_v55, %v4480_v55 }
 0x13f   : > { %1470 = vmax.xlane.f32.xlu0 %v1469_v62  ;;  %v2662_v21 = vadd.f32 %v2661_v61, %v2614_v25  ;;  %1473 = vmax.xlane.f32.xlu1 %v1472_v51  ;;  %v1402_v23 = vmul.f32 %v1338_v35, %v1338_v35  ;;  %v1493_v12 = vmax.f32 %v4502_v47, %v4518_v59 }
 0x140   : > { %v1225_v48 = vsub.f32 %v1153_v6, %v4087_v41  ;;  %v1705_v19 = vmax.f32 %v1703_v32, %v1704_v63  ;;  %v1725_v0 = vmax.f32 %v1723_v11, %v4565_v31  ;;  %v4641_v30 = vadd.f32 %v1401_v17, %v4498_v10 }
 0x141   : > { %v1226_v36 = vsub.f32 %v1153_v6, %v4090_v1  ;;  %v2663_v62 = vadd.f32 %v2662_v21, %v2616_v54  ;;  %v4645_v55 = vadd.f32 %v1402_v23, %v4500_v43  ;;  %v1339_v35 = vsub.f32 %v1275_v3, %v4139_v26  ;;  %v1163_v23 = vpop.permute.xlu1 %1162 }
 0x142   : > { %6438 = vst [vmem:[#allocation102_spill] sm:$0xff] %v4641_v30  ;;  %v1371_v61 = vmul.f32 %v1225_v48, %v1225_v48  ;;  %v1706_v51 = vrot.slane %v1705_v19, 4  ;;  %v1726_v25 = vmax.f32 %v1724_v9, %v1725_v0  ;;  %v1340_v32 = vsub.f32 %v1275_v3, %v6427_v50  ;;  %v1283_v48 = vpop.permute.xlu0 %1282 }
 0x143   : > { %6439 = vst [vmem:[#allocation103_spill] sm:$0xff] %v4645_v55  ;;  %1494 = vmax.xlane.f32.xlu0 %v1493_v12  ;;  %v1372_v59 = vmul.f32 %v1226_v36, %v1226_v36  ;;  %v2664_v63 = vadd.f32 %v2663_v62, %v2618_v33  ;;  %v1403_v11 = vmul.f32 %v1339_v35, %v1339_v35 }
 0x144   : > { %v1227_v10 = vsub.f32 %v1158_v37, %v4087_v41  ;;  %v1228_v17 = vsub.f32 %v1158_v37, %v4090_v1  ;;  %v1707_v6 = vmax.f32 %v1705_v19, %v1706_v51  ;;  %v1727_v21 = vrot.slane %v1726_v25, 4 }
 0x145   : > { %v1404_v54 = vmul.f32 %v1340_v32, %v1340_v32  ;;  %v1341_v43 = vsub.f32 %v1279_v29, %v4139_v26  ;;  %v2665_v30 = vadd.f32 %v2664_v63, %v2620_v45  ;;  %v4652_v55 = vadd.f32 %v1403_v11, %v1371_v61 }
 0x146   : > { %v1373_v9 = vmul.f32 %v1227_v10, %v1227_v10  ;;  %v1374_v0 = vmul.f32 %v1228_v17, %v1228_v17  ;;  %v1708_v12 = vrot.slane %v1707_v6, 2  ;;  %v1728_v3 = vmax.f32 %v1726_v25, %v1727_v21  ;;  %v1168_v17 = vpop.permute.xlu1 %1167  ;;  %v1287_v21 = vpop.permute.xlu0 %1286 }
 0x147   : > { %6440 = vst [vmem:[#allocation104_spill] sm:$0xff] %v4652_v55  ;;  %v4654_v33 = vadd.f32 %v1404_v54, %v1372_v59  ;;  %v1342_v36 = vsub.f32 %v1279_v29, %v6427_v50  ;;  %v4657_v62 = vadd.f32 %v2665_v30, %v2622_v14  ;;  %v1405_v37 = vmul.f32 %v1341_v43, %v1341_v43 }
 0x148   : > { %v1229_v19 = vsub.f32 %v1163_v23, %v4087_v41  ;;  %v1230_v35 = vsub.f32 %v1163_v23, %v4090_v1  ;;  %v1709_v51 = vmax.f32 %v1707_v6, %v1708_v12  ;;  %v1729_v32 = vrot.slane %v1728_v3, 2 }
 0x149   : > { %6441 = vst [vmem:[#allocation105_spill] sm:$0xff] %v4654_v33  ;;  %v1406_v45 = vmul.f32 %v1342_v36, %v1342_v36  ;;  %v1343_v61 = vsub.f32 %v1283_v48, %v4139_v26  ;;  %v4662_v63 = vadd.f32 %v1405_v37, %v1373_v9  ;;  %v1344_v59 = vsub.f32 %v1283_v48, %v6427_v50 }
 0x14a   : > { %v1375_v11 = vmul.f32 %v1229_v19, %v1229_v19  ;;  %v1376_v25 = vmul.f32 %v1230_v35, %v1230_v35  ;;  %v1710_v10 = vrot.slane %v1709_v51, 1  ;;  %v1730_v29 = vmax.f32 %v1728_v3, %v1729_v32  ;;  %v765_v35 = vld [vmem:[%s3633_s8 + $0x70] sm:$0xff] }
 0x14b   : > { %6442 = vst [vmem:[#allocation106_spill] sm:$0xff] %v4662_v63  ;;  %v4665_v30 = vadd.f32 %v1406_v45, %v1374_v0  ;;  %v1407_v14 = vmul.f32 %v1343_v61, %v1343_v61  ;;  %v1408_v54 = vmul.f32 %v1344_v59, %v1344_v59  ;;  %v1231_v6 = vsub.f32 %v1168_v17, %v4087_v41  ;;  %v6463_v63 = vld [vmem:[#allocation84_spill] sm:$0xff] }
 0x14c   : > { %v1232_v43 = vsub.f32 %v1168_v17, %v4090_v1  ;;  %v1345_v23 = vsub.f32 %v1287_v21, %v4139_v26  ;;  %v1711_v9 = vmax.f32 %v1709_v51, %v1710_v10  ;;  %v1731_v12 = vrot.slane %v1730_v29, 1 }
 0x14d   : > { %6443 = vst [vmem:[#allocation107_spill] sm:$0xff] %v4665_v30  ;;  %v4670_v36 = vadd.f32 %v1407_v14, %v1375_v11  ;;  %v1346_v48 = vsub.f32 %v1287_v21, %v6427_v50  ;;  %v4673_v3 = vadd.f32 %v1408_v54, %v1376_v25  ;;  %v1377_v0 = vmul.f32 %v1231_v6, %v1231_v6  ;;  %v4694_v54 = vld [vmem:[#allocation2] sm:$0x3] }
 0x14e   : > { %v1378_v37 = vmul.f32 %v1232_v43, %v1232_v43  ;;  %v1409_v19 = vmul.f32 %v1345_v23, %v1345_v23  ;;  %v1732_v32 = vmax.f32 %v1730_v29, %v1731_v12  ;;  %v6446_v61 = vrot.slane %v4440_v7, 2  ;;  %6452 = vst [vmem:[#allocation113_spill] sm:$0xff] %v4694_v54  ;;  %v6453_v43 = vld [vmem:[#allocation40_spill] sm:$0xff]  ;;  %v6454_v12 = vld [vmem:[#allocation49_spill] sm:$0xff] }
 0x14f   : > { %6444 = vst [vmem:[#allocation108_spill] sm:$0xff] %v4670_v36  ;;  %6445 = vst [vmem:[#allocation109_spill] sm:$0xff] %v4673_v3  ;;  %v1410_v45 = vmul.f32 %v1346_v48, %v1346_v48  ;;  %v6448_v11 = vunpack.c.0.s8 %v4447_v34  ;;  %v1209_v23 = vsub.f32 %v6453_v43, %v4087_v41 }
 0x150   : > { %vm2361_vm2 = vcmp.lt.s32.totalorder %v4440_v7, %v6446_v61  ;;  %v4679_v59 = vadd.f32 %v1409_v19, %v1377_v0  ;;  %v1736_v51 = vcombine.low %v1711_v9, %v1732_v32  ;;  %1182 = vperm.xlu1 %3298, %v765_v35   ;;  %v6451_v14 = vmov %v6446_v61  ;;  %v6460_v19 = vld [vmem:[#allocation9_spill] sm:$0xff] }
 0x151   : > { %v4684_v10 = vsub.s32 %v6448_v11, %v3777_v2  ;;  %v4686_v25 = vadd.f32 %v1410_v45, %v1378_v37  ;;  %v2362_v29 = vsel %vm2361_vm2, %v4440_v7, %v6451_v14  ;;  %v1210_v9 = vsub.f32 %v6453_v43, %v4090_v1  ;;  %v6461_v45 = vld [vmem:[#allocation10_spill] sm:$0xff] }
 0x152   : > { %6447 = vst [vmem:[#allocation110_spill] sm:$0xff] %v4679_v59  ;;  %v2363_v34 = vrot.slane %v2362_v29, 1  ;;  %v1323_v7 = vsub.f32 %v6454_v12, %v4139_v26  ;;  %v6456_v0 = vlaneseq  ;;  %v6457_v37 = vmov 0 }
 0x153   : > { %6449 = vst [vmem:[#allocation111_spill] sm:$0xff] %v4684_v10  ;;  %6450 = vst [vmem:[#allocation112_spill] sm:$0xff] %v4686_v25  ;;  %v1743_v17 = vrot.slane %v1736_v51, %v4684_v10  ;;  %v1355_v51 = vmul.f32 %v1209_v23, %v1209_v23  ;;  %v1356_v11 = vmul.f32 %v1210_v9, %v1210_v9  ;;  %v6462_v25 = vld [vmem:[#allocation81_spill] sm:$0xff] }
 0x154   : > { %vm4707_vm10 = vcmp.lt.s32.totalorder %v6456_v0, 256  ;;  %vm2364_vm11 = vcmp.lt.s32.totalorder %v2362_v29, %v2363_v34  ;;  %v1324_v14 = vsub.f32 %v6454_v12, %v6427_v50 }
 0x155   : > { %v1750_v6 = vrot.slane %v1743_v17, %v4684_v10  ;;  %v6458_v37 = vsel %vm4707_vm10, 4294967295, %v6457_v37  ;;  %v4725_v17 = vld [vmem:[%s3633_s8 + $0x78] sm:$0xff] }
 0x156   : > { %6459 = vst [vmem:[#allocation49_spill] sm:$0xff] %v6458_v37 }
 0x157   : > { %v4704_v48 = vmax.f32 %v4694_v54, %v1750_v6  ;;  %v1387_v6 = vmul.f32 %v1323_v7, %v1323_v7  ;;  %v4741_v7 = vsel %vm2364_vm11, %v2362_v29, %v2363_v34 }
 0x158   : > { %vm2405_vm12 = vcmp.eq.s32.totalorder %v3777_v2, %v4741_v7 }
 0x159   : > { %6455 = vst [vmem:[#allocation40_spill] sm:$0xff] %v4704_v48  ;;  %v4713_v32 = vrot.slane %v4704_v48, %v6460_v19  ;;  %v4717_v61 = vrot.slane %v4704_v48, %v6461_v45  ;;  %1931 = vst.msk [vmem:[#allocation2] sm:$0x3] %vm4707_vm10, %v4704_v48  ;;  %1298 = vperm.xlu0 %3297, %v765_v35   ;;  %v6465_v45 = vld [vmem:[#allocation83_spill] sm:$0xff]  ;;  %v4796_v54 = vadd.f32 %v1387_v6, %v1355_v51  ;;  %v6468_v19 = vld [vmem:[#allocation16_spill] sm:$0xff] }
 0x15a   : > { %v6469_v48 = vld [vmem:[#allocation72_spill] sm:$0xff]  ;;  %v6475_v6 = vld [vmem:[#allocation18_spill] sm:$0xff] }
 0x15b   : > { %v1769_v43 = vsub.f32 %v4366_v5, %v4713_v32  ;;  %v1770_v0 = vsub.f32 %v4370_v20, %v4717_v61  ;;  %v1771_v21 = vsub.f32 %v4374_v53, %v4713_v32  ;;  %v1772_v35 = vsub.f32 %v4378_v49, %v4717_v61  ;;  %6467 = vst [vmem:[#allocation81_spill] sm:$0xff] %v4796_v54 }
 0x15c   : > { %v1773_v23 = vsub.f32 %v4392_v4, %v4713_v32  ;;  %v1774_v9 = vsub.f32 %v4398_v46, %v4717_v61  ;;  %v1775_v12 = vsub.f32 %v4406_v57, %v4713_v32  ;;  %v1776_v59 = vsub.f32 %v4414_v38, %v4717_v61 }
 0x15d   : > { %v1777_v36 = vsub.f32 %v6462_v25, %v4713_v32  ;;  %v1778_v3 = vsub.f32 %v4445_v18, %v4717_v61  ;;  %1302 = vperm.xlu0 %3297, %v4725_v17   ;;  %v1779_v30 = vsub.f32 %v6463_v63, %v4713_v32  ;;  %v1780_v55 = vsub.f32 %v4460_v13, %v4717_v61 }
 0x15e   : > { %v1781_v29 = vsub.f32 %v4489_v60, %v4713_v32  ;;  %v1782_v34 = vsub.f32 %v4505_v40, %v4717_v61  ;;  %v1783_v33 = vsub.f32 %v4520_v58, %v4713_v32  ;;  %v1784_v18 = vsub.f32 %v4539_v44, %v4717_v61  ;;  %v6464_v40 = vld [vmem:[#allocation78_spill] sm:$0xff]  ;;  %v6466_v44 = vld [vmem:[#allocation92_spill] sm:$0xff] }
 0x15f   : > { %v1785_v38 = vsub.f32 %v4368_v39, %v4713_v32  ;;  %v1786_v46 = vsub.f32 %v4372_v24, %v4717_v61  ;;  %v1787_v13 = vsub.f32 %v4376_v42, %v4713_v32  ;;  %v1788_v49 = vsub.f32 %v4380_v52, %v4717_v61 }
 0x160   : > { %v1801_v39 = vmul.f32 1.442695, %v1769_v43  ;;  %v1803_v50 = vmul.f32 1.442695, %v1770_v0  ;;  %v1388_v58 = vmul.f32 %v1324_v14, %v1324_v14  ;;  %v1805_v60 = vmul.f32 1.442695, %v1771_v21 }
 0x161   : > { %v1807_v26 = vmul.f32 1.442695, %v1772_v35  ;;  %v1809_v20 = vmul.f32 1.442695, %v1773_v23  ;;  %v1811_v37 = vmul.f32 1.442695, %v1774_v9  ;;  %vm6470_vm3 = vcmp.le.f32.partialorder %v6468_v19, %v6469_v48 }
 0x162   : > { %3331 = vpow2.f32 %v1801_v39  ;;  %v1813_v42 = vmul.f32 1.442695, %v1775_v12  ;;  %vm2437_vm13 = vmand %vm6470_vm3, %vm2405_vm12  ;;  %v4801_v43 = vadd.f32 %v1388_v58, %v1356_v11  ;;  %v1815_v21 = vmul.f32 1.442695, %v1776_v59  ;;  %v6472_v14 = vld [vmem:[#allocation53_spill] sm:$0xff]  ;;  %v6478_v0 = vld [vmem:[#allocation54_spill] sm:$0xff] }
 0x163   : > { %3333 = vpow2.f32 %v1803_v50  ;;  %vm2407_vm5 = vcmp.eq.s32.totalorder %v6472_v14, %v4741_v7  ;;  %v1817_v2 = vmul.f32 1.442695, %v1777_v36  ;;  %v1819_v39 = vmul.f32 1.442695, %v1778_v3  ;;  %v6479_v12 = vld [vmem:[#allocation14_spill] sm:$0xff] }
 0x164   : > { %3335 = vpow2.f32 %v1805_v60  ;;  %6471 = vst [vmem:[#allocation84_spill] sm:$0xff] %v4801_v43  ;;  %v6473_v50 = vmov 0.0   ;;  %v1821_v60 = vmul.f32 1.442695, %v1779_v30  ;;  %vm6476_vm7 = vcmp.le.f32.partialorder %v6475_v6, %v6469_v48 }
 0x165   : > { %3337 = vpow2.f32 %v1807_v26  ;;  %v4806_v51 = vsel %vm2437_vm13, 1.0, %v6473_v50  ;;  %vm2439_vm14 = vmand %vm6476_vm7, %vm2407_vm5  ;;  %v1823_v58 = vmul.f32 1.442695, %v1780_v55  ;;  %v1825_v59 = vmul.f32 1.442695, %v1781_v29 }
 0x166   : > { %3339 = vpow2.f32 %v1809_v20  ;;  %6474 = vst [vmem:[#allocation78_spill] sm:$0xff] %v4806_v51  ;;  %v1827_v20 = vmul.f32 1.442695, %v1782_v34  ;;  %v2607_v36 = vmul.f32 %v4806_v51, %v4366_v5  ;;  %v1829_v3 = vmul.f32 1.442695, %v1783_v33  ;;  %v6570_v51 = vld [vmem:[#allocation43_spill] sm:$0xff] }
 0x167   : > { %3341 = vpow2.f32 %v1811_v37  ;;  %v1831_v37 = vmul.f32 1.442695, %v1784_v18  ;;  %v1833_v11 = vmul.f32 1.442695, %v1785_v38  ;;  %vm2409_vm15 = vcmp.eq.s32.totalorder %v6478_v0, %v4741_v7  ;;  %v6481_v18 = vld [vmem:[#allocation55_spill] sm:$0xff] }
 0x168   : > { %3343 = vpow2.f32 %v1813_v42  ;;  %v4816_v42 = vsel %vm2439_vm14, 1.0, %v6473_v50  ;;  %v1835_v23 = vmul.f32 1.442695, %v1786_v46  ;;  %v1837_v9 = vmul.f32 1.442695, %v1787_v13 }
 0x169   : > { %3345 = vpow2.f32 %v1815_v21  ;;  %6477 = vst [vmem:[#allocation83_spill] sm:$0xff] %v4816_v42  ;;  %v2609_v55 = vmul.f32 %v4816_v42, %v4374_v53  ;;  %vm6480_vm9 = vcmp.le.f32.partialorder %v6479_v12, %v6469_v48  ;;  %vm2411_vm1 = vcmp.eq.s32.totalorder %v6481_v18, %v4741_v7  ;;  %v6483_v21 = vld [vmem:[#allocation22_spill] sm:$0xff] }
 0x16a   : > { %3347 = vpow2.f32 %v1817_v2  ;;  %vm2441_vm0 = vmand %vm6480_vm9, %vm2409_vm15  ;;  %v1839_v38 = vmul.f32 1.442695, %v1788_v49  ;;  %vm6484_vm6 = vcmp.le.f32.partialorder %v6483_v21, %v6469_v48  ;;  %v6486_v49 = vsub.f32 %v6464_v40, %v4713_v32  ;;  %v6558_v21 = vld [vmem:[#allocation76_spill] sm:$0xff] }
 0x16b   : > { %3349 = vpow2.f32 %v1819_v39  ;;  %v2639_v29 = vadd.f32 %v2609_v55, %v2607_v36  ;;  %v4828_v34 = vsel %vm2441_vm0, 1.0, %v6473_v50  ;;  %vm2443_vm4 = vmand %vm6484_vm6, %vm2411_vm1 }
 0x16c   : > { %v3332_v30 = vpop.eup %3331  ;;  %3351 = vpow2.f32 %v1821_v60  ;;  %6482 = vst [vmem:[#allocation72_spill] sm:$0xff] %v4828_v34  ;;  %v2611_v14 = vmul.f32 %v4828_v34, %v4392_v4  ;;  %v4836_v2 = vsel %vm2443_vm4, 1.0, %v6473_v50  ;;  %v1841_v60 = vmul.f32 1.442695, %v6486_v49 }
 0x16d   : > { %v3334_v35 = vpop.eup %3333  ;;  %3353 = vpow2.f32 %v1823_v58  ;;  %6485 = vst [vmem:[#allocation53_spill] sm:$0xff] %v4836_v2  ;;  %v6487_v58 = vsub.f32 %v4400_v28, %v4717_v61  ;;  %v2613_v0 = vmul.f32 %v4836_v2, %v4406_v57  ;;  %v6489_v49 = vmax.f32 %v4536_v8, %v4565_v31  ;;  %v6555_v2 = vld [vmem:[#allocation74_spill] sm:$0xff] }
 0x16e   : > { %v3336_v33 = vpop.eup %3335  ;;  %3355 = vpow2.f32 %v1825_v59 }
 0x16f   : > { %v3338_v46 = vpop.eup %3337  ;;  %3357 = vpow2.f32 %v1827_v20  ;;  %v1865_v13 = vadd.f32 %v3336_v33, %v3332_v30  ;;  %v1843_v59 = vmul.f32 1.442695, %v6487_v58  ;;  %v2640_v30 = vadd.f32 %v2639_v29, %v2611_v14  ;;  %v6494_v14 = vld [vmem:[#allocation62_spill] sm:$0xff] }
 0x170   : > { %v3340_v39 = vpop.eup %3339  ;;  %3359 = vpow2.f32 %v1829_v3  ;;  %v1886_v36 = vadd.f32 %v3338_v46, %v3334_v35  ;;  %v6488_v3 = vsub.f32 %v4408_v15, %v4713_v32  ;;  %v6490_v35 = vld [vmem:[#allocation57_spill] sm:$0xff]  ;;  %v6495_v58 = vsub.f32 %v4416_v27, %v4717_v61 }
 0x171   : > { %v3342_v55 = vpop.eup %3341  ;;  %3361 = vpow2.f32 %v1831_v37  ;;  %v1866_v20 = vadd.f32 %v3340_v39, %v1865_v13  ;;  %vm2413_vm8 = vcmp.eq.s32.totalorder %v6490_v35, %v4741_v7  ;;  %v2641_v46 = vadd.f32 %v2640_v30, %v2613_v0  ;;  %v6491_v13 = vld [vmem:[#allocation20_spill] sm:$0xff] }
 0x172   : > { %v3344_v18 = vpop.eup %3343  ;;  %3363 = vpow2.f32 %v1833_v11  ;;  %v1845_v33 = vmul.f32 1.442695, %v6488_v3  ;;  %v1887_v10 = vadd.f32 %v3342_v55, %v1886_v36  ;;  %vm6492_vm2 = vcmp.le.f32.partialorder %v6491_v13, %v6469_v48  ;;  %v6493_v11 = vld [vmem:[#allocation88_spill] sm:$0xff] }
 0x173   : > { %v3346_v37 = vpop.eup %3345  ;;  %3365 = vpow2.f32 %v1835_v23  ;;  %v1867_v29 = vadd.f32 %v3344_v18, %v1866_v20  ;;  %vm2445_vm11 = vmand %vm6492_vm2, %vm2413_vm8  ;;  %vm2422_vm12 = vcmp.eq.s32.totalorder %v6494_v14, %v6493_v11  ;;  %v1847_v36 = vmul.f32 1.442695, %v6495_v58 }
 0x174   : > { %1497 = vmax.xlane.f32.xlu1 %v6489_v49  ;;  %v3348_v39 = vpop.eup %3347  ;;  %3367 = vpow2.f32 %v1837_v9  ;;  %v1888_v55 = vadd.f32 %v3346_v37, %v1887_v10  ;;  %v4863_v3 = vsel %vm2445_vm11, 1.0, %v6473_v50  ;;  %v6497_v20 = vsub.f32 %v4442_v16, %v4713_v32  ;;  %v6498_v49 = vld [vmem:[#allocation29_spill] sm:$0xff] }
 0x175   : > { %6496 = vst [vmem:[#allocation54_spill] sm:$0xff] %v4863_v3  ;;  %v3350_v23 = vpop.eup %3349  ;;  %3369 = vpow2.f32 %v1839_v38  ;;  %v1868_v0 = vadd.f32 %v3348_v39, %v1867_v29  ;;  %v2615_v18 = vmul.f32 %v4863_v3, %v6462_v25  ;;  %v6499_v9 = vld [vmem:[#allocation73_spill] sm:$0xff]  ;;  %v6501_v10 = vsub.f32 %v6465_v45, %v4717_v61 }
 0x176   : > { %v1849_v30 = vmul.f32 1.442695, %v6497_v20  ;;  %vm6500_vm3 = vcmp.le.f32.partialorder %v6498_v49, %v6499_v9  ;;  %v3352_v35 = vpop.eup %3351  ;;  %3371 = vpow2.f32 %v1841_v60  ;;  %v1889_v58 = vadd.f32 %v3350_v23, %v1888_v55 }
 0x177   : > { %vm2454_vm13 = vmand %vm6500_vm3, %vm2422_vm12  ;;  %v1851_v37 = vmul.f32 1.442695, %v6501_v10  ;;  %v3354_v26 = vpop.eup %3353  ;;  %3373 = vpow2.f32 %v1843_v59  ;;  %v1869_v29 = vadd.f32 %v3352_v35, %v1868_v0  ;;  %v2642_v39 = vadd.f32 %v2641_v46, %v2615_v18 }
 0x178   : > { %v4877_v38 = vsel %vm2454_vm13, 1.0, %v6473_v50  ;;  %v3356_v3 = vpop.eup %3355  ;;  %3375 = vpow2.f32 %v1845_v33  ;;  %v6503_v60 = vsub.f32 %v4457_v56, %v4713_v32  ;;  %v6504_v10 = vsub.f32 %v4465_v22, %v4717_v61 }
 0x179   : > { %6502 = vst [vmem:[#allocation55_spill] sm:$0xff] %v4877_v38  ;;  %v2624_v20 = vmul.f32 %v4877_v38, %v4372_v24  ;;  %v1890_v23 = vadd.f32 %v3354_v26, %v1889_v58  ;;  %v3358_v13 = vpop.eup %3357  ;;  %3377 = vpow2.f32 %v1847_v36  ;;  %v6505_v59 = vsub.f32 %v4502_v47, %v4713_v32  ;;  %v6508_v36 = vld [vmem:[#allocation58_spill] sm:$0xff] }
 0x17a   : > { %v1853_v49 = vmul.f32 1.442695, %v6503_v60  ;;  %v1855_v55 = vmul.f32 1.442695, %v6504_v10  ;;  %v1870_v0 = vadd.f32 %v3356_v3, %v1869_v29  ;;  %v6506_v18 = vmin.f32 %v4796_v54, %v4801_v43  ;;  %v3360_v35 = vpop.eup %3359 }
 0x17b   : > { %v1857_v46 = vmul.f32 1.442695, %v6505_v59  ;;  %v2667_v33 = vadd.f32 %v4657_v62, %v2624_v20  ;;  %3379 = vpow2.f32 %v1849_v30  ;;  %v6507_v60 = vsub.f32 %v6466_v44, %v4717_v61  ;;  %v3362_v58 = vpop.eup %3361  ;;  %v6512_v62 = vld [vmem:[#allocation63_spill] sm:$0xff] }
 0x17c   : > { %1933 = vmin.xlane.f32.xlu0 %v6506_v18  ;;  %v1891_v26 = vadd.f32 %v3358_v13, %v1890_v23  ;;  %vm2415_vm5 = vcmp.eq.s32.totalorder %v6508_v36, %v4741_v7  ;;  %3381 = vpow2.f32 %v1851_v37  ;;  %v6509_v3 = vsub.f32 %v4536_v8, %v4713_v32  ;;  %v6510_v18 = vld [vmem:[#allocation26_spill] sm:$0xff]  ;;  %v3364_v30 = vpop.eup %3363  ;;  %v6514_v37 = vld [vmem:[#allocation64_spill] sm:$0xff]  ;;  %v6516_v36 = vld [vmem:[#allocation35_spill] sm:$0xff] }
 0x17d   : > { %v1859_v10 = vmul.f32 1.442695, %v6507_v60  ;;  %v1871_v59 = vadd.f32 %v3360_v35, %v1870_v0  ;;  %vm6511_vm7 = vcmp.le.f32.partialorder %v6510_v18, %v6469_v48  ;;  %vm2424_vm15 = vcmp.eq.s32.totalorder %v6512_v62, %v6493_v11  ;;  %v3366_v23 = vpop.eup %3365 }
 0x17e   : > { %v1861_v29 = vmul.f32 1.442695, %v6509_v3  ;;  %vm2447_vm14 = vmand %vm6511_vm7, %vm2415_vm5  ;;  %3383 = vpow2.f32 %v1853_v49  ;;  %v1892_v13 = vadd.f32 %v3362_v58, %v1891_v26  ;;  %vm2426_vm9 = vcmp.eq.s32.totalorder %v6514_v37, %v6493_v11  ;;  %v3368_v49 = vpop.eup %3367 }
 0x17f   : > { %v4908_v20 = vsel %vm2447_vm14, 1.0, %v6473_v50  ;;  %3385 = vpow2.f32 %v1855_v55  ;;  %v6515_v32 = vsub.f32 %v4565_v31, %v4717_v61  ;;  %v1872_v35 = vadd.f32 %v3364_v30, %v1871_v59  ;;  %v3370_v3 = vpop.eup %3369  ;;  %v6519_v59 = vld [vmem:[#allocation33_spill] sm:$0xff] }
 0x180   : > { %6513 = vst [vmem:[#allocation57_spill] sm:$0xff] %v4908_v20  ;;  %v2617_v60 = vmul.f32 %v4908_v20, %v6463_v63  ;;  %vm6517_vm0 = vcmp.le.f32.partialorder %v6516_v36, %v6499_v9  ;;  %3387 = vpow2.f32 %v1857_v46  ;;  %v1893_v26 = vadd.f32 %v3366_v23, %v1892_v13  ;;  %v3372_v30 = vpop.eup %3371  ;;  %v6522_v13 = vld [vmem:[#allocation11_spill] sm:$0xff]  ;;  %v6543_v36 = vld [vmem:[#allocation89_spill] sm:$0xff] }
 0x181   : > { %v1863_v0 = vmul.f32 1.442695, %v6515_v32  ;;  %vm2456_vm1 = vmand %vm6517_vm0, %vm2424_vm15  ;;  %3389 = vpow2.f32 %v1859_v10  ;;  %v1873_v55 = vadd.f32 %v3368_v49, %v1872_v35  ;;  %vm6520_vm6 = vcmp.le.f32.partialorder %v6519_v59, %v6499_v9 }
 0x182   : > { %v4921_v58 = vsel %vm2456_vm1, 1.0, %v6473_v50  ;;  %v2643_v38 = vadd.f32 %v2642_v39, %v2617_v60  ;;  %vm2458_vm4 = vmand %vm6520_vm6, %vm2426_vm9  ;;  %3391 = vpow2.f32 %v1861_v29  ;;  %v1894_v46 = vadd.f32 %v3370_v3, %v1893_v26  ;;  %v3374_v39 = vpop.eup %3373  ;;  %v6523_v29 = vld [vmem:[#allocation65_spill] sm:$0xff]  ;;  %v6524_v3 = vld [vmem:[#allocation28_spill] sm:$0xff] }
 0x183   : > { %6518 = vst [vmem:[#allocation88_spill] sm:$0xff] %v4921_v58  ;;  %v2626_v61 = vmul.f32 %v4921_v58, %v4380_v52  ;;  %vm2421_vm8 = vcmp.eq.s32.totalorder %v6494_v14, %v4741_v7  ;;  %v4934_v10 = vsel %vm2458_vm4, 1.0, %v6473_v50  ;;  %v1211_v23 = vsub.f32 %v6522_v13, %v4087_v41  ;;  %v3376_v60 = vpop.eup %3375 }
 0x184   : > { %6521 = vst [vmem:[#allocation62_spill] sm:$0xff] %v4934_v10  ;;  %3393 = vpow2.f32 %v1863_v0  ;;  %v1874_v32 = vadd.f32 %v3372_v30, %v1873_v55  ;;  %v1895_v49 = vadd.f32 %v3374_v39, %v1894_v46  ;;  %v2628_v58 = vmul.f32 %v4934_v10, %v4400_v28  ;;  %v3378_v26 = vpop.eup %3377 }
 0x185   : > { %v2668_v35 = vadd.f32 %v2667_v33, %v2626_v61  ;;  %vm2428_vm2 = vcmp.eq.s32.totalorder %v6523_v29, %v6493_v11  ;;  %1187 = vperm.xlu1 %3298, %v4725_v17   ;;  %vm6525_vm11 = vcmp.le.f32.partialorder %v6524_v3, %v6469_v48  ;;  %vm2423_vm3 = vcmp.eq.s32.totalorder %v6512_v62, %v4741_v7  ;;  %v6528_v33 = vld [vmem:[#allocation60_spill] sm:$0xff]  ;;  %v3380_v0 = vpop.eup %3379  ;;  %v6529_v17 = vld [vmem:[#allocation39_spill] sm:$0xff] }
 0x186   : > { %v1875_v14 = vadd.f32 %v3376_v60, %v1874_v32  ;;  %vm4946_vm12 = vmand %vm6525_vm11, %vm2421_vm8  ;;  %vm2417_vm13 = vcmp.eq.s32.totalorder %v6528_v33, %v4741_v7  ;;  %v1212_v55 = vsub.f32 %v6522_v13, %v4090_v1  ;;  %v1896_v61 = vadd.f32 %v3378_v26, %v1895_v49  ;;  %v3382_v46 = vpop.eup %3381  ;;  %v6532_v33 = vld [vmem:[#allocation24_spill] sm:$0xff] }
 0x187   : > { %v2669_v30 = vadd.f32 %v2668_v35, %v2628_v58  ;;  %vm6530_vm5 = vcmp.le.f32.partialorder %v6529_v17, %v6499_v9  ;;  %v4959_v39 = vmul.f32 %v1211_v23, %v1211_v23  ;;  %vm2425_vm14 = vcmp.eq.s32.totalorder %v6514_v37, %v4741_v7  ;;  %v6534_v35 = vld [vmem:[#allocation34_spill] sm:$0xff]  ;;  %v6553_v23 = vld [vmem:[#allocation12_spill] sm:$0xff] }
 0x188   : > { %vm2460_vm7 = vmand %vm6530_vm5, %vm2428_vm2  ;;  %v1876_v32 = vadd.f32 %v3380_v0, %v1875_v14  ;;  %vm6533_vm15 = vcmp.le.f32.partialorder %v6532_v33, %v6469_v48  ;;  %v3384_v13 = vpop.eup %3383  ;;  %v1897_v58 = vadd.f32 %v3382_v46, %v1896_v61  ;;  %vm6535_vm0 = vcmp.le.f32.partialorder %v6534_v35, %v6469_v48  ;;  %v6539_v14 = vld [vmem:[#allocation61_spill] sm:$0xff]  ;;  %v6540_v61 = vld [vmem:[#allocation40_spill] sm:$0xff] }
 0x189   : > { %v4964_v60 = vsel %vm2460_vm7, 1.0, %v6473_v50  ;;  %vm2449_vm9 = vmand %vm6533_vm15, %vm2417_vm13  ;;  %vm2419_vm6 = vcmp.eq.s32.totalorder %v6539_v14, %v4741_v7  ;;  %v3386_v0 = vpop.eup %3385  ;;  %v6541_v46 = vld [vmem:[#allocation113_spill] sm:$0xff]  ;;  %v4991_v10 = vsel %vm4946_vm12, 1.0, %v6473_v50  ;;  %vm2427_vm2 = vcmp.eq.s32.totalorder %v6523_v29, %v4741_v7  ;;  %v6554_v37 = vld [vmem:[#allocation66_spill] sm:$0xff] }
 0x18a   : > { %6531 = vst [vmem:[#allocation73_spill] sm:$0xff] %v4964_v60  ;;  %vm4975_vm1 = vmand %vm6535_vm0, %vm2423_vm3  ;;  %v2630_v49 = vmul.f32 %v4964_v60, %v4416_v27  ;;  %v4982_v26 = vsel %vm2449_vm9, 1.0, %v6473_v50  ;;  %v1754_v62 = vsub.f32 %v6541_v46, %v6540_v61  ;;  %v1877_v17 = vadd.f32 %v3384_v13, %v1876_v32  ;;  %v6544_v60 = vld [vmem:[#allocation30_spill] sm:$0xff]  ;;  %v3388_v3 = vpop.eup %3387  ;;  %v6548_v46 = vld [vmem:[#allocation32_spill] sm:$0xff] }
 0x18b   : > { %6538 = vst [vmem:[#allocation58_spill] sm:$0xff] %v4982_v26  ;;  %6542 = vst [vmem:[#allocation63_spill] sm:$0xff] %v4991_v10  ;;  %v2619_v35 = vmul.f32 %v4982_v26, %v6543_v36  ;;  %vm6545_vm4 = vcmp.le.f32.partialorder %v6544_v60, %v6469_v48  ;;  %v1898_v20 = vadd.f32 %v3386_v0, %v1897_v58  ;;  %v3390_v13 = vpop.eup %3389  ;;  %v5006_v61 = vsel %vm4975_vm1, 1.0, %v6473_v50 }
 0x18c   : > { %vm2451_vm8 = vmand %vm6545_vm4, %vm2419_vm6  ;;  %v2670_v14 = vadd.f32 %v2669_v30, %v2630_v49  ;;  %v1878_v59 = vadd.f32 %v3388_v3, %v1877_v17  ;;  %6547 = vst [vmem:[#allocation11_spill] sm:$0xff] %v5006_v61  ;;  %vm6549_vm11 = vcmp.le.f32.partialorder %v6548_v46, %v6469_v48  ;;  %v6552_v49 = vld [vmem:[#allocation93_spill] sm:$0xff]  ;;  %v3392_v3 = vpop.eup %3391  ;;  %v5020_v17 = vmul.f32 %v1212_v55, %v1212_v55 }
 0x18d   : > { %v5001_v32 = vsel %vm2451_vm8, 1.0, %v6473_v50  ;;  %vm5014_vm12 = vmand %vm6549_vm11, %vm2425_vm14  ;;  %v2644_v30 = vadd.f32 %v2643_v38, %v2619_v35  ;;  %v5024_v26 = vsub.f32 %v6553_v23, %v4087_v41  ;;  %v1899_v60 = vadd.f32 %v3390_v13, %v1898_v20  ;;  %v6556_v35 = vld [vmem:[#allocation38_spill] sm:$0xff]  ;;  %v6560_v13 = vld [vmem:[#allocation37_spill] sm:$0xff] }
 0x18e   : > { %6546 = vst [vmem:[#allocation64_spill] sm:$0xff] %v5001_v32  ;;  %v2621_v0 = vmul.f32 %v5001_v32, %v6552_v49  ;;  %vm2430_vm3 = vcmp.eq.s32.totalorder %v6554_v37, %v6493_v11  ;;  %v3394_v46 = vpop.eup %3393  ;;  %v1755_v33 = vmul.f32 1.442695, %v1754_v62  ;;  %v1879_v18 = vadd.f32 %v3392_v3, %v1878_v59  ;;  %v6565_v3 = vld [vmem:[#allocation45_spill] sm:$0xff] }
 0x18f   : > { %v2623_v38 = vmul.f32 %v4991_v10, %v6555_v2  ;;  %vm6557_vm13 = vcmp.le.f32.partialorder %v6556_v35, %v6469_v48  ;;  %v1900_v32 = vadd.f32 %v3394_v46, %v1899_v60  ;;  %v2625_v20 = vmul.f32 %v5006_v61, %v6558_v21  ;;  %v6563_v60 = vld [vmem:[#allocation67_spill] sm:$0xff]  ;;  %v6566_v61 = vld [vmem:[#allocation36_spill] sm:$0xff] }
 0x190   : > { %vm2459_vm5 = vmand %vm6557_vm13, %vm2427_vm2  ;;  %v2645_v55 = vadd.f32 %v2644_v30, %v2621_v0  ;;  %v5041_v62 = vsel %vm5014_vm12, 1.0, %v6473_v50  ;;  %vm2429_vm7 = vcmp.eq.s32.totalorder %v6554_v37, %v4741_v7  ;;  %vm6561_vm14 = vcmp.le.f32.partialorder %v6560_v13, %v6499_v9  ;;  %v6568_v10 = vld [vmem:[#allocation68_spill] sm:$0xff] }
 0x191   : > { %6559 = vst [vmem:[#allocation65_spill] sm:$0xff] %v5041_v62  ;;  %vm2462_vm15 = vmand %vm6561_vm14, %vm2430_vm3  ;;  %v1880_v29 = vrot.slane %v1879_v18, 4  ;;  %vm2431_vm9 = vcmp.eq.s32.totalorder %v6563_v60, %v4741_v7  ;;  %v1901_v46 = vrot.slane %v1900_v32, 4  ;;  %v5054_v58 = vsel %vm2459_vm5, 1.0, %v6473_v50 }
 0x192   : > { %v2646_v59 = vadd.f32 %v2645_v55, %v2623_v38  ;;  %v5049_v30 = vsel %vm2462_vm15, 1.0, %v6473_v50  ;;  %6564 = vst [vmem:[#allocation61_spill] sm:$0xff] %v5054_v58  ;;  %vm2432_vm0 = vcmp.eq.s32.totalorder %v6563_v60, %v6493_v11  ;;  %v1213_v37 = vsub.f32 %v6565_v3, %v4087_v41 }
 0x193   : > { %6562 = vst [vmem:[#allocation60_spill] sm:$0xff] %v5049_v30  ;;  %v2632_v0 = vmul.f32 %v5049_v30, %v6465_v45  ;;  %v1881_v38 = vadd.f32 %v1880_v29, %v1879_v18  ;;  %v2627_v55 = vmul.f32 %v5041_v62, %v6464_v40  ;;  %vm6567_vm1 = vcmp.le.f32.partialorder %v6566_v61, %v6469_v48  ;;  %v6569_v30 = vld [vmem:[#allocation46_spill] sm:$0xff]  ;;  %v6582_v61 = vld [vmem:[#allocation41_spill] sm:$0xff] }
 0x194   : > { %v2647_v35 = vadd.f32 %v2646_v59, %v2625_v20  ;;  %vm2461_vm6 = vmand %vm6567_vm1, %vm2429_vm7  ;;  %v1214_v13 = vsub.f32 %v6565_v3, %v4090_v1  ;;  %v1325_v34 = vsub.f32 %v6569_v30, %v6568_v10  ;;  %v1902_v12 = vadd.f32 %v1901_v46, %v1900_v32  ;;  %v6574_v3 = vld [vmem:[#allocation44_spill] sm:$0xff]  ;;  %v6584_v18 = vld [vmem:[#allocation50_spill] sm:$0xff] }
 0x195   : > { %v2671_v42 = vadd.f32 %v2670_v14, %v2632_v0  ;;  %vm6571_vm4 = vcmp.le.f32.partialorder %v6570_v51, %v6469_v48  ;;  %3395 = vpow2.f32 %v1755_v33  ;;  %v1882_v20 = vrot.slane %v1881_v38, 2  ;;  %v6576_v14 = vld [vmem:[#allocation69_spill] sm:$0xff]  ;;  %v6578_v33 = vld [vmem:[#allocation70_spill] sm:$0xff] }
 0x196   : > { %vm5074_vm8 = vmand %vm6571_vm4, %vm2431_vm9  ;;  %v2629_v29 = vmul.f32 %v5054_v58, %v4408_v15  ;;  %v2648_v59 = vadd.f32 %v2647_v35, %v2627_v55  ;;  %vm6575_vm2 = vcmp.le.f32.partialorder %v6574_v3, %v6499_v9  ;;  %v1326_v32 = vsub.f32 %v6569_v30, %v6576_v14  ;;  %v6579_v35 = vld [vmem:[#allocation71_spill] sm:$0xff] }
 0x197   : > { %vm2464_vm11 = vmand %vm6575_vm2, %vm2432_vm0  ;;  %v1903_v46 = vrot.slane %v1902_v12, 2  ;;  %v5089_v0 = vsel %vm2461_vm6, 1.0, %v6473_v50  ;;  %vm2433_vm12 = vcmp.eq.s32.totalorder %v6578_v33, %v4741_v7  ;;  %v1883_v51 = vadd.f32 %v1882_v20, %v1881_v38 }
 0x198   : > { %6577 = vst [vmem:[#allocation40_spill] sm:$0xff] %v5089_v0  ;;  %vm2436_vm3 = vcmp.eq.s32.totalorder %v6579_v35, %v6493_v11  ;;  %v2631_v60 = vmul.f32 %v5089_v0, %v4442_v16  ;;  %v2649_v55 = vadd.f32 %v2648_v59, %v2629_v29  ;;  %v1389_v3 = vmul.f32 %v1325_v34, %v1325_v34 }
 0x199   : > { %v1904_v58 = vadd.f32 %v1903_v46, %v1902_v12  ;;  %v5100_v30 = vsel %vm5074_vm8, 1.0, %v6473_v50  ;;  %v5103_v62 = vsel %vm2464_vm11, 1.0, %v6473_v50  ;;  %vm6583_vm13 = vcmp.le.f32.partialorder %v6582_v61, %v6469_v48  ;;  %v6585_v46 = vld [vmem:[#allocation48_spill] sm:$0xff] }
 0x19a   : > { %6580 = vst [vmem:[#allocation113_spill] sm:$0xff] %v5100_v30  ;;  %6581 = vst [vmem:[#allocation89_spill] sm:$0xff] %v5103_v62  ;;  %v1884_v38 = vrot.slane %v1883_v51, 1  ;;  %v2650_v20 = vadd.f32 %v2649_v55, %v2631_v60  ;;  %v2633_v0 = vmul.f32 %v5100_v30, %v4457_v56  ;;  %v2634_v12 = vmul.f32 %v5103_v62, %v4465_v22  ;;  %v2755_v60 = vld [vmem:[#allocation4] sm:$0x3] }
 0x19b   : > { %vm2465_vm5 = vmand %vm6583_vm13, %vm2433_vm12  ;;  %v1390_v34 = vmul.f32 %v1326_v32, %v1326_v32  ;;  %v1327_v29 = vsub.f32 %v6584_v18, %v6568_v10  ;;  %v1905_v59 = vrot.slane %v1904_v58, 1  ;;  %vm6586_vm7 = vcmp.le.f32.partialorder %v6585_v46, %v6499_v9  ;;  %v6589_v32 = vld [vmem:[#allocation42_spill] sm:$0xff]  ;;  %v6595_v61 = vld [vmem:[#allocation52_spill] sm:$0xff] }
 0x19c   : > { %vm5120_vm14 = vmand %vm6586_vm7, %vm2436_vm3  ;;  %vm2434_vm15 = vcmp.eq.s32.totalorder %v6578_v33, %v6493_v11  ;;  %v1885_v55 = vadd.f32 %v1884_v38, %v1883_v51  ;;  %vm6590_vm9 = vcmp.le.f32.partialorder %v6589_v32, %v6499_v9  ;;  %v5130_v62 = vsel %vm2465_vm5, 1.0, %v6473_v50  ;;  %v6593_v32 = vld [vmem:[#allocation10_spill] sm:$0xff] }
 0x19d   : > { %vm2466_vm0 = vmand %vm6590_vm9, %vm2434_vm15  ;;  %6591 = vst [vmem:[#allocation93_spill] sm:$0xff] %v5130_v62  ;;  %v2651_v30 = vadd.f32 %v2650_v20, %v2633_v0  ;;  %v2672_v6 = vadd.f32 %v2671_v42, %v2634_v12  ;;  %v1328_v46 = vsub.f32 %v6584_v18, %v6576_v14  ;;  %v1906_v19 = vadd.f32 %v1905_v59, %v1904_v58 }
 0x19e   : > { %v5135_v43 = vsel %vm2466_vm0, 1.0, %v6473_v50  ;;  %v2635_v11 = vmul.f32 %v5130_v62, %v4502_v47  ;;  %v1216_v51 = vsub.f32 %v6553_v23, %v4090_v1  ;;  %v1359_v33 = vmul.f32 %v1213_v37, %v1213_v37  ;;  %v1753_v37 = vld [vmem:[#allocation3] sm:$0x3] }
 0x19f   : > { %6592 = vst [vmem:[#allocation12_spill] sm:$0xff] %v5135_v43  ;;  %v2636_v38 = vmul.f32 %v5135_v43, %v6466_v44  ;;  %v2764_v0 = vrot.slane %v2755_v60, %v6593_v32  ;;  %v1360_v42 = vmul.f32 %v1214_v13, %v1214_v13  ;;  %v1909_v20 = vcombine.low %v1885_v55, %v1906_v19  ;;  %v3396_v18 = vpop.eup %3395  ;;  %v2868_v13 = vld [vmem:[#allocation4] sm:$0x3]  ;;  %v6596_v44 = vld [vmem:[#allocation111_spill] sm:$0xff] }
 0x1a0   : > { %v5147_v58 = vsel %vm5120_vm14, 1.0, %v6473_v50  ;;  %v2652_v12 = vadd.f32 %v2651_v30, %v2635_v11  ;;  %v5150_v59 = vadd.f32 %v1389_v3, %v4959_v39  ;;  %v5153_v23 = vadd.f32 %v1390_v34, %v5020_v17  ;;  %v6600_v17 = vld [vmem:[#allocation9_spill] sm:$0xff] }
 0x1a1   : > { %6594 = vst [vmem:[#allocation66_spill] sm:$0xff] %v5147_v58  ;;  %v2638_v43 = vmul.f32 %v5147_v58, %v4565_v31  ;;  %v2673_v62 = vadd.f32 %v2672_v6, %v2636_v38  ;;  %v1391_v19 = vmul.f32 %v1327_v29, %v1327_v29  ;;  %v1392_v55 = vmul.f32 %v1328_v46, %v1328_v46  ;;  %v6601_v29 = vld [vmem:[#allocation47_spill] sm:$0xff]  ;;  %v5214_v58 = vpop.permute.xlu0 %1290 }
 0x1a2   : > { %v1329_v54 = vsub.f32 %v6595_v61, %v6568_v10  ;;  %v1916_v30 = vrot.slane %v1909_v20, %v6596_v44  ;;  %vm5161_vm1 = vcmp.lt.f32.partialorder %v6499_v9, %v2764_v0  ;;  %v6597_v39 = vmov 0 }
 0x1a3   : > { %v2674_v11 = vadd.f32 %v2673_v62, %v2638_v43  ;;  %v6598_v39 = vsel %vm5161_vm1, 4294967295, %v6597_v39  ;;  %vm2435_vm6 = vcmp.eq.s32.totalorder %v6579_v35, %v4741_v7  ;;  %v2760_v3 = vrot.slane %v2755_v60, %v6600_v17 }
 0x1a4   : > { %6599 = vst [vmem:[#allocation74_spill] sm:$0xff] %v6598_v39  ;;  %v1757_v6 = vmul.f32 %v3396_v18, %v1753_v37  ;;  %v1923_v34 = vrot.slane %v1916_v30, %v6596_v44  ;;  %vm6602_vm4 = vcmp.le.f32.partialorder %v6601_v29, %v6469_v48  ;;  %v2873_v46 = vrot.slane %v2868_v13, %v6600_v17 }
 0x1a5   : > { %vm2467_vm8 = vmand %vm6602_vm4, %vm2435_vm6  ;;  %v2877_v43 = vrot.slane %v2868_v13, %v6593_v32  ;;  %v1330_v62 = vsub.f32 %v6595_v61, %v6576_v14  ;;  %v2675_v38 = vrot.slane %v2674_v11, 4  ;;  %vm5180_vm2 = vcmp.lt.f32.partialorder %v6469_v48, %v2760_v3  ;;  %v6607_v3 = vld [vmem:[#allocation13_spill] sm:$0xff] }
 0x1a6   : > { %v5177_v0 = vsel %vm2467_vm8, 1.0, %v6473_v50  ;;  %v6604_v7 = vmov 0  ;;  %v1925_v35 = vadd.f32 %v1923_v34, %v1757_v6  ;;  %v2880_v20 = vsel %vm5180_vm2, %v6469_v48, %v2873_v46 }
 0x1a7   : > { %6603 = vst [vmem:[#allocation76_spill] sm:$0xff] %v5177_v0  ;;  %v6605_v7 = vsel %vm5180_vm2, 4294967295, %v6604_v7  ;;  %v2637_v60 = vmul.f32 %v5177_v0, %v4536_v8  ;;  %v2881_v18 = vsel %vm5161_vm1, %v6499_v9, %v2877_v43  ;;  %v1361_v37 = vmul.f32 %v5024_v26, %v5024_v26 }
 0x1a8   : > { %6606 = vst [vmem:[#allocation67_spill] sm:$0xff] %v6605_v7  ;;  %v2676_v13 = vadd.f32 %v2675_v38, %v2674_v11  ;;  %v2884_v61 = vcombine.low %v2880_v20, %v2881_v18  ;;  %v1362_v30 = vmul.f32 %v1216_v51, %v1216_v51  ;;  %v1217_v6 = vsub.f32 %v6607_v3, %v4087_v41  ;;  %v6610_v18 = vld [vmem:[#allocation51_spill] sm:$0xff] }
 0x1a9   : > { %v1218_v34 = vsub.f32 %v6607_v3, %v4090_v1  ;;  %1930 = vst.msk [vmem:[#allocation3] sm:$0x3] %vm4707_vm10, %v1925_v35  ;;  %v2653_v48 = vadd.f32 %v2652_v12, %v2637_v60  ;;  %v5200_v46 = vadd.f32 %v1391_v19, %v1359_v33  ;;  %v1935_v9 = vmin.f32 %v5150_v59, %v5153_v23  ;;  %v5212_v60 = vpop.permute.xlu1 %1172 }
 0x1aa   : > { %v2677_v43 = vrot.slane %v2676_v13, 2  ;;  %v2891_v26 = vrot.slane %v2884_v61, %v6596_v44  ;;  %v5205_v11 = vadd.f32 %v1392_v55, %v1360_v42  ;;  %v1393_v51 = vmul.f32 %v1329_v54, %v1329_v54  ;;  %v2802_v55 = vld [vmem:[#allocation6] sm:$0x3] }
 0x1ab   : > { %v1394_v38 = vmul.f32 %v1330_v62, %v1330_v62  ;;  %v2654_v20 = vrot.slane %v2653_v48, 4  ;;  %v1331_v3 = vsub.f32 %v6610_v18, %v6568_v10  ;;  %v1332_v35 = vsub.f32 %v6610_v18, %v6576_v14  ;;  %1936 = vmin.xlane.f32.xlu1 %v1935_v9 }
 0x1ac   : > { %6609 = vst [vmem:[#allocation45_spill] sm:$0xff] %v5205_v11  ;;  %v2678_v12 = vadd.f32 %v2677_v43, %v2676_v13  ;;  %v2898_v33 = vrot.slane %v2891_v26, %v6596_v44  ;;  %v1363_v54 = vmul.f32 %v1217_v6, %v1217_v6  ;;  %v1364_v62 = vmul.f32 %v1218_v34, %v1218_v34 }
 0x1ad   : > { %v2655_v19 = vadd.f32 %v2654_v20, %v2653_v48  ;;  %v1938_v61 = vmin.f32 %v5200_v46, %v5205_v11  ;;  %v5220_v13 = vadd.f32 %v1393_v51, %v1361_v37  ;;  %v5222_v43 = vadd.f32 %v1394_v38, %v1362_v30  ;;  %v5230_v11 = vpop.permute.xlu1 %1177  ;;  %v5232_v37 = vpop.permute.xlu0 %1294 }
 0x1ae   : > { %v2679_v42 = vrot.slane %v2678_v12, 1  ;;  %2900 = vst.msk [vmem:[#allocation4] sm:$0x3] %vm4707_vm10, %v2898_v33  ;;  %v1395_v48 = vmul.f32 %v1331_v3, %v1331_v3  ;;  %v1396_v26 = vmul.f32 %v1332_v35, %v1332_v35  ;;  %v2811_v9 = vrot.slane %v2802_v55, %v6593_v32 }
 0x1af   : > { %v2656_v18 = vrot.slane %v2655_v19, 2  ;;  %1939 = vmin.xlane.f32.xlu1 %v1938_v61  ;;  %v2807_v33 = vrot.slane %v2802_v55, %v6600_v17  ;;  %v1941_v30 = vmin.f32 %v5220_v13, %v5222_v43  ;;  %vm2014_vm6 = vcmp.lt.f32.partialorder %v5150_v59, 0.0001 }
 0x1b0   : > { %v2680_v20 = vadd.f32 %v2679_v42, %v2678_v12  ;;  %v5226_v6 = vadd.f32 %v1395_v48, %v1363_v54  ;;  %v5228_v34 = vadd.f32 %v1396_v26, %v1364_v62 }
 0x1b1   : > { %v2657_v29 = vadd.f32 %v2656_v18, %v2655_v19  ;;  %v5240_v35 = vpop.xlane.xlu0 %1476  ;;  %v5242_v12 = vpop.xlane.xlu1 %1452 }
 0x1b2   : > { %v2815_v51 = vsel %vm5161_vm1, %v2680_v20, %v2811_v9  ;;  %v1944_v19 = vmin.f32 %v5226_v6, %v5228_v34  ;;  %v1515_v55 = vsub.f32 %v6555_v2, %v5240_v35  ;;  %v1516_v54 = vsub.f32 %v4372_v24, %v5240_v35 }
 0x1b3   : > { %v2658_v50 = vrot.slane %v2657_v29, 1  ;;  %1942 = vmin.xlane.f32.xlu1 %v1941_v30 }
 0x1b4   : > { %v1563_v18 = vmul.f32 1.442695, %v1515_v55  ;;  %v1565_v48 = vmul.f32 1.442695, %v1516_v54 }
 0x1b5   : > { %v2659_v38 = vadd.f32 %v2658_v50, %v2657_v29  ;;  %v1499_v50 = vsub.f32 %v4366_v5, %v5242_v12  ;;  %v6611_v29 = vld [vmem:[#allocation75_spill] sm:$0xff]  ;;  %v5255_v9 = vpop.xlane.xlu1 %1479 }
 0x1b6   : > { %v1500_v62 = vsub.f32 %v6611_v29, %v5242_v12  ;;  %3397 = vpow2.f32 %v1563_v18  ;;  %v1517_v5 = vsub.f32 %v6558_v21, %v5255_v9  ;;  %v1518_v24 = vsub.f32 %v4380_v52, %v5255_v9  ;;  %v6613_v52 = vld [vmem:[#allocation79_spill] sm:$0xff]  ;;  %v6615_v18 = vld [vmem:[#allocation56_spill] sm:$0xff] }
 0x1b7   : > { %v2814_v3 = vsel %vm5180_vm2, %v2659_v38, %v2807_v33  ;;  %1945 = vmin.xlane.f32.xlu1 %v1944_v19  ;;  %v1531_v26 = vmul.f32 1.442695, %v1499_v50  ;;  %v5257_v33 = vpop.xlane.xlu0 %1455  ;;  %3399 = vpow2.f32 %v1565_v48  ;;  %v1333_v48 = vsub.f32 %v6615_v18, %v6568_v10 }
 0x1b8   : > { %v2818_v42 = vcombine.low %v2814_v3, %v2815_v51  ;;  %v1533_v20 = vmul.f32 1.442695, %v1500_v62  ;;  %v1501_v30 = vsub.f32 %v4374_v53, %v5257_v33  ;;  %v6612_v51 = vld [vmem:[#allocation77_spill] sm:$0xff]  ;;  %v1567_v3 = vmul.f32 1.442695, %v1517_v5  ;;  %v6614_v62 = vld [vmem:[#allocation59_spill] sm:$0xff] }
 0x1b9   : > { %v1502_v38 = vsub.f32 %v6612_v51, %v5257_v33  ;;  %3401 = vpow2.f32 %v1531_v26  ;;  %v1569_v19 = vmul.f32 1.442695, %v1518_v24  ;;  %v5272_v54 = vpop.xlane.xlu1 %1461  ;;  %v6616_v26 = vld [vmem:[#allocation80_spill] sm:$0xff]  ;;  %v1220_v24 = vsub.f32 %v6614_v62, %v4090_v1 }
 0x1ba   : > { %v2825_v61 = vrot.slane %v2818_v42, %v6596_v44  ;;  %v1535_v42 = vmul.f32 1.442695, %v1501_v30  ;;  %3403 = vpow2.f32 %v1533_v20  ;;  %v1505_v29 = vsub.f32 %v4406_v57, %v5272_v54 }
 0x1bb   : > { %v1537_v55 = vmul.f32 1.442695, %v1502_v38  ;;  %v5270_v21 = vpop.xlane.xlu0 %1458  ;;  %3405 = vpow2.f32 %v1567_v3  ;;  %v1506_v20 = vsub.f32 %v6616_v26, %v5272_v54  ;;  %v1334_v57 = vsub.f32 %v6615_v18, %v6576_v14 }
 0x1bc   : > { %v2832_v2 = vrot.slane %v2825_v61, %v6596_v44  ;;  %v1503_v53 = vsub.f32 %v4392_v4, %v5270_v21  ;;  %v1504_v50 = vsub.f32 %v6613_v52, %v5270_v21  ;;  %v1219_v61 = vsub.f32 %v6614_v62, %v4087_v41 }
 0x1bd   : > { %3407 = vpow2.f32 %v1569_v19  ;;  %v1543_v4 = vmul.f32 1.442695, %v1505_v29  ;;  %v1545_v30 = vmul.f32 1.442695, %v1506_v20  ;;  %v5292_v38 = vpop.xlane.xlu1 %1485  ;;  %v1397_v52 = vmul.f32 %v1333_v48, %v1333_v48 }
 0x1be   : > { %2834 = vst.msk [vmem:[#allocation6] sm:$0x3] %vm4707_vm10, %v2832_v2  ;;  %3409 = vpow2.f32 %v1535_v42  ;;  %v1539_v2 = vmul.f32 1.442695, %v1503_v53  ;;  %v1541_v5 = vmul.f32 1.442695, %v1504_v50  ;;  %v1521_v42 = vsub.f32 %v4408_v15, %v5292_v38 }
 0x1bf   : > { %3411 = vpow2.f32 %v1537_v55  ;;  %v5290_v51 = vpop.xlane.xlu0 %1482  ;;  %v1365_v53 = vmul.f32 %v1219_v61, %v1219_v61  ;;  %v1522_v55 = vsub.f32 %v4416_v27, %v5292_v38  ;;  %v1366_v20 = vmul.f32 %v1220_v24, %v1220_v24  ;;  %v6617_v27 = vld [vmem:[#allocation82_spill] sm:$0xff] }
 0x1c0   : > { %3413 = vpow2.f32 %v1539_v2  ;;  %v1519_v3 = vsub.f32 %v6464_v40, %v5290_v51  ;;  %v1520_v19 = vsub.f32 %v4400_v28, %v5290_v51  ;;  %v3398_v50 = vpop.eup %3397  ;;  %v1575_v18 = vmul.f32 1.442695, %v1521_v42 }
 0x1c1   : > { %3415 = vpow2.f32 %v1541_v5  ;;  %v3400_v26 = vpop.eup %3399  ;;  %v1398_v40 = vmul.f32 %v1334_v57, %v1334_v57  ;;  %v1577_v2 = vmul.f32 1.442695, %v1522_v55  ;;  %v5304_v0 = vpop.xlane.xlu1 %1467  ;;  %v5312_v24 = vadd.f32 %v1397_v52, %v1365_v53  ;;  %v6618_v57 = vld [vmem:[#allocation85_spill] sm:$0xff] }
 0x1c2   : > { %3417 = vpow2.f32 %v1543_v4  ;;  %v1571_v29 = vmul.f32 1.442695, %v1519_v3  ;;  %v1573_v62 = vmul.f32 1.442695, %v1520_v19  ;;  %v1509_v5 = vsub.f32 %v6463_v63, %v5304_v0 }
 0x1c3   : > { %3419 = vpow2.f32 %v1545_v30  ;;  %v5302_v28 = vpop.xlane.xlu0 %1464  ;;  %v3402_v15 = vpop.eup %3401  ;;  %v1510_v30 = vsub.f32 %v6618_v57, %v5304_v0  ;;  %v1619_v3 = vadd.f32 %v3400_v26, %v3398_v50  ;;  %v5316_v44 = vadd.f32 %v1398_v40, %v1366_v20 }
 0x1c4   : > { %3421 = vpow2.f32 %v1571_v29  ;;  %v1507_v61 = vsub.f32 %v6462_v25, %v5302_v28  ;;  %v1508_v48 = vsub.f32 %v6617_v27, %v5302_v28  ;;  %v3404_v4 = vpop.eup %3403  ;;  %v1551_v29 = vmul.f32 1.442695, %v1509_v5 }
 0x1c5   : > { %3423 = vpow2.f32 %v1573_v62  ;;  %v3406_v19 = vpop.eup %3405  ;;  %v1553_v27 = vmul.f32 1.442695, %v1510_v30  ;;  %1620 = vadd.xlane.f32.xlu0 %v1619_v3  ;;  %v1595_v63 = vadd.f32 %v3404_v4, %v3402_v15  ;;  %v5320_v53 = vpop.xlane.xlu1 %1491  ;;  %v6621_v30 = vld [vmem:[#allocation90_spill] sm:$0xff]  ;;  %vm2015_vm10 = vcmp.lt.f32.partialorder %v5153_v23, 0.0001 }
 0x1c6   : > { %3425 = vpow2.f32 %v1575_v18  ;;  %v1547_v42 = vmul.f32 1.442695, %v1507_v61  ;;  %v1549_v55 = vmul.f32 1.442695, %v1508_v48  ;;  %6620 = vst [vmem:[#allocation46_spill] sm:$0xff] %v5320_v53  ;;  %v1525_v18 = vsub.f32 %v4457_v56, %v5320_v53 }
 0x1c7   : > { %v3408_v25 = vpop.eup %3407  ;;  %3427 = vpow2.f32 %v1577_v2  ;;  %1596 = vadd.xlane.f32.xlu1 %v1595_v63  ;;  %v1526_v20 = vsub.f32 %v4465_v22, %v5320_v53 }
 0x1c8   : > { %v5318_v7 = vpop.xlane.xlu0 %1488  ;;  %v3410_v52 = vpop.eup %3409  ;;  %3429 = vpow2.f32 %v1547_v42  ;;  %v1622_v40 = vadd.f32 %v3408_v25, %v3406_v19  ;;  %v1583_v48 = vmul.f32 1.442695, %v1525_v18  ;;  %v6622_v25 = vld [vmem:[#allocation95_spill] sm:$0xff] }
 0x1c9   : > { %6619 = vst [vmem:[#allocation68_spill] sm:$0xff] %v5318_v7  ;;  %v1523_v50 = vsub.f32 %v4442_v16, %v5318_v7  ;;  %v1524_v62 = vsub.f32 %v6465_v45, %v5318_v7  ;;  %v3412_v26 = vpop.eup %3411  ;;  %3431 = vpow2.f32 %v1549_v55  ;;  %v1585_v16 = vmul.f32 1.442695, %v1526_v20 }
 0x1ca   : > { %v3414_v2 = vpop.eup %3413  ;;  %3433 = vpow2.f32 %v1551_v29  ;;  %v1598_v4 = vadd.f32 %v3412_v26, %v3410_v52  ;;  %v1947_v45 = vmin.f32 %v5312_v24, %v5316_v44 }
 0x1cb   : > { %v1579_v15 = vmul.f32 1.442695, %v1523_v50  ;;  %v1581_v61 = vmul.f32 1.442695, %v1524_v62  ;;  %v3416_v5 = vpop.eup %3415  ;;  %3435 = vpow2.f32 %v1553_v27 }
 0x1cc   : > { %v5332_v56 = vpop.xlane.xlu0 %1470  ;;  %v3418_v57 = vpop.eup %3417  ;;  %v1601_v42 = vadd.f32 %v3416_v5, %v3414_v2  ;;  %1599 = vadd.xlane.f32.xlu0 %v1598_v4  ;;  %1948 = vmin.xlane.f32.xlu1 %v1947_v45 }
 0x1cd   : > { %3437 = vpow2.f32 %v1579_v15  ;;  %v1511_v22 = vsub.f32 %v6543_v36, %v5332_v56  ;;  %v1512_v3 = vsub.f32 %v6621_v30, %v5332_v56  ;;  %v5338_v19 = vpop.xlane.xlu1 %1473  ;;  %v3420_v55 = vpop.eup %3419 }
 0x1ce   : > { %3439 = vpow2.f32 %v1581_v61  ;;  %v1513_v29 = vsub.f32 %v6552_v49, %v5338_v19  ;;  %v1514_v27 = vsub.f32 %v6622_v25, %v5338_v19  ;;  %v3422_v63 = vpop.eup %3421  ;;  %v1604_v50 = vadd.f32 %v3420_v55, %v3418_v57  ;;  %v6624_v49 = vld [vmem:[#allocation92_spill] sm:$0xff] }
 0x1cf   : > { %3441 = vpow2.f32 %v1583_v48  ;;  %v1555_v52 = vmul.f32 1.442695, %v1511_v22  ;;  %v1557_v36 = vmul.f32 1.442695, %v1512_v3  ;;  %v3424_v62 = vpop.eup %3423 }
 0x1d0   : > { %3443 = vpow2.f32 %v1585_v16  ;;  %v1559_v18 = vmul.f32 1.442695, %v1513_v29  ;;  %v1561_v26 = vmul.f32 1.442695, %v1514_v27  ;;  %v5344_v20 = vpop.xlane.xlu0 %1494  ;;  %v3426_v2 = vpop.eup %3425  ;;  %v1625_v5 = vadd.f32 %v3424_v62, %v3422_v63  ;;  %1623 = vadd.xlane.f32.xlu0 %v1622_v40 }
 0x1d1   : > { %6623 = vst [vmem:[#allocation69_spill] sm:$0xff] %v5344_v20  ;;  %3445 = vpow2.f32 %v1555_v52  ;;  %v1527_v15 = vsub.f32 %v4502_v47, %v5344_v20  ;;  %v1528_v61 = vsub.f32 %v6624_v49, %v5344_v20  ;;  %v3428_v4 = vpop.eup %3427 }
 0x1d2   : > { %3447 = vpow2.f32 %v1557_v36  ;;  %v3430_v48 = vpop.eup %3429  ;;  %v1628_v57 = vadd.f32 %v3428_v4, %v3426_v2  ;;  %v6625_v4 = vld [vmem:[#allocation87_spill] sm:$0xff] }
 0x1d3   : > { %3449 = vpow2.f32 %v1559_v18  ;;  %v1587_v45 = vmul.f32 1.442695, %v1527_v15  ;;  %v1589_v16 = vmul.f32 1.442695, %v1528_v61  ;;  %v3432_v22 = vpop.eup %3431 }
 0x1d4   : > { %3451 = vpow2.f32 %v1561_v26  ;;  %v3434_v30 = vpop.eup %3433  ;;  %v1607_v3 = vadd.f32 %v3432_v22, %v3430_v48  ;;  %1602 = vadd.xlane.f32.xlu0 %v1601_v42  ;;  %v6626_v48 = vld [vmem:[#allocation86_spill] sm:$0xff] }
 0x1d5   : > { %3453 = vpow2.f32 %v1587_v45  ;;  %v3436_v55 = vpop.eup %3435  ;;  %v1950_v45 = vmin.f32 %v6626_v48, %v6625_v4 }
 0x1d6   : > { %3455 = vpow2.f32 %v1589_v16  ;;  %1608 = vadd.xlane.f32.xlu1 %v1607_v3  ;;  %v1610_v29 = vadd.f32 %v3436_v55, %v3434_v30  ;;  %v6627_v16 = vld [vmem:[#allocation103_spill] sm:$0xff]  ;;  %v1233_v30 = vsub.f32 %v5212_v60, %v4087_v41  ;;  %v1347_v3 = vsub.f32 %v5214_v58, %v6568_v10  ;;  %v6629_v55 = vld [vmem:[#allocation105_spill] sm:$0xff] }
 0x1d7   : > { %v3438_v47 = vpop.eup %3437 }
 0x1d8   : > { %v3440_v25 = vpop.eup %3439  ;;  %1626 = vadd.xlane.f32.xlu0 %v1625_v5  ;;  %v6628_v5 = vld [vmem:[#allocation102_spill] sm:$0xff] }
 0x1d9   : > { %v3442_v27 = vpop.eup %3441  ;;  %v1631_v63 = vadd.f32 %v3440_v25, %v3438_v47  ;;  %v1953_v22 = vmin.f32 %v6628_v5, %v6627_v16  ;;  %v6630_v47 = vld [vmem:[#allocation104_spill] sm:$0xff]  ;;  %v1299_v25 = vpop.permute.xlu0 %1298 }
 0x1da   : > { %v3444_v40 = vpop.eup %3443 }
 0x1db   : > { %v3446_v52 = vpop.eup %3445  ;;  %v1634_v36 = vadd.f32 %v3444_v40, %v3442_v27  ;;  %v1379_v27 = vmul.f32 %v1233_v30, %v1233_v30 }
 0x1dc   : > { %v3448_v62 = vpop.eup %3447  ;;  %1605 = vadd.xlane.f32.xlu0 %v1604_v50  ;;  %v1234_v50 = vsub.f32 %v5212_v60, %v4090_v1  ;;  %v1352_v60 = vsub.f32 %v1299_v25, %v6576_v14 }
 0x1dd   : > { %v3450_v18 = vpop.eup %3449  ;;  %v1613_v26 = vadd.f32 %v3448_v62, %v3446_v52  ;;  %v1411_v52 = vmul.f32 %v1347_v3, %v1347_v3  ;;  %v1183_v62 = vpop.permute.xlu1 %1182  ;;  %v6633_v3 = vld [vmem:[#allocation109_spill] sm:$0xff] }
 0x1de   : > { %v3452_v2 = vpop.eup %3451  ;;  %v1380_v40 = vmul.f32 %v1234_v50, %v1234_v50  ;;  %v1416_v50 = vmul.f32 %v1352_v60, %v1352_v60  ;;  %v1236_v60 = vsub.f32 %v5230_v11, %v4090_v1 }
 0x1df   : > { %v3454_v15 = vpop.eup %3453  ;;  %v1616_v49 = vadd.f32 %v3452_v2, %v3450_v18  ;;  %1614 = vadd.xlane.f32.xlu1 %v1613_v26  ;;  %v1351_v2 = vsub.f32 %v1299_v25, %v6568_v10  ;;  %v6631_v26 = vld [vmem:[#allocation107_spill] sm:$0xff] }
 0x1e0   : > { %v3456_v61 = vpop.eup %3455  ;;  %1629 = vadd.xlane.f32.xlu0 %v1628_v57  ;;  %v1348_v57 = vsub.f32 %v5214_v58, %v6576_v14  ;;  %v1237_v58 = vsub.f32 %v1183_v62, %v4087_v41 }
 0x1e1   : > { %v1637_v42 = vadd.f32 %v3456_v61, %v3454_v15  ;;  %v6632_v15 = vld [vmem:[#allocation106_spill] sm:$0xff]  ;;  %v1415_v30 = vmul.f32 %v1351_v2, %v1351_v2 }
 0x1e2   : > { %v1412_v18 = vmul.f32 %v1348_v57, %v1348_v57  ;;  %v1959_v61 = vmin.f32 %v6632_v15, %v6631_v26  ;;  %v6634_v57 = vld [vmem:[#allocation108_spill] sm:$0xff]  ;;  %v1383_v25 = vmul.f32 %v1237_v58, %v1237_v58  ;;  %v1350_v58 = vsub.f32 %v5232_v37, %v6576_v14 }
 0x1e3   : > { %1951 = vmin.xlane.f32.xlu1 %v1950_v45  ;;  %v5370_v45 = vadd.f32 %v1411_v52, %v1379_v27 }
 0x1e4   : > { %1611 = vadd.xlane.f32.xlu0 %v1610_v29  ;;  %v1956_v29 = vmin.f32 %v6630_v47, %v6629_v55  ;;  %v5376_v39 = vadd.f32 %v1415_v30, %v1383_v25  ;;  %v1303_v25 = vpop.permute.xlu0 %1302 }
 0x1e7   : > { %1954 = vmin.xlane.f32.xlu1 %v1953_v22  ;;  %v5372_v22 = vadd.f32 %v1412_v18, %v1380_v40 }
 0x1e8   : > { %1617 = vadd.xlane.f32.xlu0 %v1616_v49  ;;  %v1238_v49 = vsub.f32 %v1183_v62, %v4090_v1 }
 0x1e9   : > { %v1968_v27 = vmin.f32 %v5370_v45, %v5372_v22 }
 0x1eb   : > { %1957 = vmin.xlane.f32.xlu1 %v1956_v29  ;;  %v1962_v29 = vmin.f32 %v6634_v57, %v6633_v3 }
 0x1ec   : > { %1632 = vadd.xlane.f32.xlu0 %v1631_v63  ;;  %v1384_v63 = vmul.f32 %v1238_v49, %v1238_v49 }
 0x1ee   : > { %v5378_v17 = vadd.f32 %v1416_v50, %v1384_v63  ;;  %v1382_v50 = vmul.f32 %v1236_v60, %v1236_v60  ;;  %v1414_v63 = vmul.f32 %v1350_v58, %v1350_v58  ;;  %v6638_v60 = vld [vmem:[#allocation112_spill] sm:$0xff] }
 0x1ef   : > { %1960 = vmin.xlane.f32.xlu1 %v1959_v61  ;;  %v1349_v61 = vsub.f32 %v5232_v37, %v6568_v10 }
 0x1f0   : > { %1635 = vadd.xlane.f32.xlu0 %v1634_v36  ;;  %v1974_v40 = vmin.f32 %v5376_v39, %v5378_v17  ;;  %v5404_v37 = vadd.f32 %v1414_v63, %v1382_v50  ;;  %v6646_v50 = vmov 0.0  }
 0x1f2   : > { %6637 = vst [vmem:[#allocation50_spill] sm:$0xff] %v5404_v37 }
 0x1f3   : > { %1963 = vmin.xlane.f32.xlu1 %v1962_v29  ;;  %v1413_v29 = vmul.f32 %v1349_v61, %v1349_v61  ;;  %v6639_v61 = vld [vmem:[#allocation110_spill] sm:$0xff] }
 0x1f4   : > { %1638 = vadd.xlane.f32.xlu0 %v1637_v42  ;;  %v1235_v42 = vsub.f32 %v5230_v11, %v4087_v41  ;;  %v1353_v11 = vsub.f32 %v1303_v25, %v6568_v10  ;;  %v1965_v32 = vmin.f32 %v6639_v61, %v6638_v60 }
 0x1f6   : > { %v1417_v58 = vmul.f32 %v1353_v11, %v1353_v11 }
 0x1f7   : > { %1969 = vmin.xlane.f32.xlu1 %v1968_v27 }
 0x1fb   : > { %1975 = vmin.xlane.f32.xlu1 %v1974_v40 }
 0x201   : > { %v5384_v36 = vpop.xlane.xlu1 %1497 }
 0x202   : > { %6635 = vst [vmem:[#allocation70_spill] sm:$0xff] %v5384_v36  ;;  %v1529_v52 = vsub.f32 %v4536_v8, %v5384_v36  ;;  %v1530_v62 = vsub.f32 %v4565_v31, %v5384_v36  ;;  %v1381_v31 = vmul.f32 %v1235_v42, %v1235_v42 }
 0x204   : > { %v1591_v18 = vmul.f32 1.442695, %v1529_v52  ;;  %v1593_v2 = vmul.f32 1.442695, %v1530_v62  ;;  %v1354_v62 = vsub.f32 %v1303_v25, %v6576_v14  ;;  %v6647_v25 = vld [vmem:[#allocation18_spill] sm:$0xff] }
 0x205   : > { %v1188_v8 = vpop.permute.xlu1 %1187 }
 0x206   : > { %3457 = vpow2.f32 %v1591_v18  ;;  %v1239_v27 = vsub.f32 %v1188_v8, %v4087_v41  ;;  %v1240_v40 = vsub.f32 %v1188_v8, %v4090_v1  ;;  %v5402_v18 = vadd.f32 %v1413_v29, %v1381_v31 }
 0x207   : > { %3459 = vpow2.f32 %v1593_v2  ;;  %v1418_v36 = vmul.f32 %v1354_v62, %v1354_v62 }
 0x208   : > { %6636 = vst [vmem:[#allocation71_spill] sm:$0xff] %v5402_v18  ;;  %v1385_v2 = vmul.f32 %v1239_v27, %v1239_v27  ;;  %v1386_v42 = vmul.f32 %v1240_v40, %v1240_v40  ;;  %v1971_v10 = vmin.f32 %v5402_v18, %v5404_v37  ;;  %v6648_v27 = vld [vmem:[#allocation19_spill] sm:$0xff] }
 0x209   : > { %v1934_v8 = vpop.xlane.xlu0 %1933 }
 0x20a   : > { %v5408_v41 = vadd.f32 %v1417_v58, %v1385_v2  ;;  %v5410_v1 = vadd.f32 %v1418_v36, %v1386_v42  ;;  %v6645_v36 = vld [vmem:[#allocation17_spill] sm:$0xff]  ;;  %v6651_v2 = vld [vmem:[#allocation83_spill] sm:$0xff] }
 0x20b   : > { %vm2077_vm15 = vcmp.lt.f32.partialorder %v6645_v36, 0.0001  ;;  %v6652_v58 = vld [vmem:[#allocation91_spill] sm:$0xff] }
 0x20c   : > { %6640 = vst [vmem:[#allocation52_spill] sm:$0xff] %v5408_v41  ;;  %6641 = vst [vmem:[#allocation13_spill] sm:$0xff] %v5410_v1  ;;  %v1977_v14 = vmin.f32 %v5408_v41, %v5410_v1 }
 0x210   : > { %v3458_v49 = vpop.eup %3457 }
 0x211   : > { %v3460_v30 = vpop.eup %3459 }
 0x212   : > { %v1640_v52 = vadd.f32 %v3460_v30, %v3458_v49  ;;  %v6642_v49 = vld [vmem:[#allocation81_spill] sm:$0xff]  ;;  %v6643_v30 = vld [vmem:[#allocation84_spill] sm:$0xff] }
 0x213   : > { %vm1980_vm11 = vcmp.le.f32.partialorder %v6642_v49, %v1934_v8  ;;  %vm1981_vm12 = vcmp.le.f32.partialorder %v6643_v30, %v1934_v8  ;;  %vm2012_vm3 = vcmp.lt.f32.partialorder %v6642_v49, 0.0001  ;;  %vm2013_vm13 = vcmp.lt.f32.partialorder %v6643_v30, 0.0001  ;;  %v6654_v49 = vld [vmem:[#allocation14_spill] sm:$0xff] }
 0x214   : > { %1641 = vadd.xlane.f32.xlu0 %v1640_v52  ;;  %vm2044_vm5 = vmand %vm1980_vm11, %vm2012_vm3  ;;  %vm2078_vm11 = vcmp.lt.f32.partialorder %v6647_v25, 0.0001  ;;  %vm2079_vm3 = vcmp.lt.f32.partialorder %v6648_v27, 0.0001  ;;  %v6656_v25 = vld [vmem:[#allocation72_spill] sm:$0xff] }
 0x215   : > { %vm2045_vm7 = vmand %vm1981_vm12, %vm2013_vm13  ;;  %v6657_v27 = vld [vmem:[#allocation96_spill] sm:$0xff] }
 0x216   : > { %vm2109_vm0 = vmand %vm2045_vm7, %vm2077_vm15  ;;  %vm2016_vm7 = vcmp.lt.f32.partialorder %v5200_v46, 0.0001 }
 0x217   : > { %v3160_v63 = vsel %vm2109_vm0, 1.0, %v6646_v50 }
 0x218   : > { %1966 = vmin.xlane.f32.xlu0 %v1965_v32  ;;  %v6644_v32 = vld [vmem:[#allocation16_spill] sm:$0xff] }
 0x219   : > { %vm2076_vm14 = vcmp.lt.f32.partialorder %v6644_v32, 0.0001 }
 0x21a   : > { %vm2108_vm9 = vmand %vm2044_vm5, %vm2076_vm14 }
 0x21b   : > { %v3159_v29 = vsel %vm2108_vm9, 1.0, %v6646_v50 }
 0x21c   : > { %1972 = vmin.xlane.f32.xlu0 %v1971_v10  ;;  %v2682_v10 = vmul.f32 %v6652_v58, %v3160_v63 }
 0x220   : > { %1978 = vmin.xlane.f32.xlu0 %v1977_v14  ;;  %v6653_v14 = vld [vmem:[#allocation94_spill] sm:$0xff] }
 0x238   : > { %v1937_v31 = vpop.xlane.xlu1 %1936 }
 0x239   : > { %vm1982_vm4 = vcmp.le.f32.partialorder %v5150_v59, %v1937_v31  ;;  %vm1983_vm8 = vcmp.le.f32.partialorder %v5153_v23, %v1937_v31  ;;  %v6649_v59 = vld [vmem:[#allocation45_spill] sm:$0xff]  ;;  %v6650_v23 = vld [vmem:[#allocation78_spill] sm:$0xff] }
 0x23a   : > { %vm2046_vm2 = vmand %vm1982_vm4, %vm2014_vm6  ;;  %v2681_v11 = vmul.f32 %v6650_v23, %v3159_v29 }
 0x23b   : > { %vm2047_vm12 = vmand %vm1983_vm8, %vm2015_vm10  ;;  %vm2017_vm10 = vcmp.lt.f32.partialorder %v6649_v59, 0.0001  ;;  %vm2018_vm8 = vcmp.lt.f32.partialorder %v5220_v13, 0.0001 }
 0x23c   : > { %vm2110_vm13 = vmand %vm2046_vm2, %vm2078_vm11  ;;  %v1940_v40 = vpop.xlane.xlu1 %1939  ;;  %vm2080_vm2 = vcmp.lt.f32.partialorder %v6654_v49, 0.0001  ;;  %v6661_v49 = vld [vmem:[#allocation97_spill] sm:$0xff] }
 0x23d   : > { %vm2111_vm5 = vmand %vm2047_vm12, %vm2079_vm3  ;;  %v3161_v52 = vsel %vm2110_vm13, 1.0, %v6646_v50  ;;  %vm1984_vm14 = vcmp.le.f32.partialorder %v5200_v46, %v1940_v40  ;;  %vm1985_vm15 = vcmp.le.f32.partialorder %v6649_v59, %v1940_v40  ;;  %v6655_v46 = vld [vmem:[#allocation15_spill] sm:$0xff]  ;;  %vm2019_vm13 = vcmp.lt.f32.partialorder %v5222_v43, 0.0001 }
 0x23e   : > { %v3162_v62 = vsel %vm2111_vm5, 1.0, %v6646_v50  ;;  %v2683_v42 = vmul.f32 %v6651_v2, %v3161_v52  ;;  %vm2048_vm9 = vmand %vm1984_vm14, %vm2016_vm7  ;;  %vm2081_vm6 = vcmp.lt.f32.partialorder %v6655_v46, 0.0001  ;;  %v6658_v52 = vld [vmem:[#allocation22_spill] sm:$0xff]  ;;  %v6662_v46 = vld [vmem:[#allocation20_spill] sm:$0xff] }
 0x23f   : > { %v2684_v8 = vmul.f32 %v6653_v14, %v3162_v62  ;;  %vm2049_vm0 = vmand %vm1985_vm15, %vm2017_vm10  ;;  %vm2082_vm7 = vcmp.lt.f32.partialorder %v6658_v52, 0.0001 }
 0x240   : > { %v2713_v30 = vadd.f32 %v2683_v42, %v2681_v11  ;;  %vm2112_vm4 = vmand %vm2048_vm9, %vm2080_vm2  ;;  %v1943_v32 = vpop.xlane.xlu1 %1942  ;;  %v6659_v11 = vld [vmem:[#allocation23_spill] sm:$0xff]  ;;  %vm2020_vm2 = vcmp.lt.f32.partialorder %v5226_v6, 0.0001 }
 0x241   : > { %v2734_v36 = vadd.f32 %v2684_v8, %v2682_v10  ;;  %vm2113_vm11 = vmand %vm2049_vm0, %vm2081_vm6  ;;  %v3163_v31 = vsel %vm2112_vm4, 1.0, %v6646_v50  ;;  %vm1986_vm12 = vcmp.le.f32.partialorder %v5220_v13, %v1943_v32  ;;  %vm1987_vm3 = vcmp.le.f32.partialorder %v5222_v43, %v1943_v32  ;;  %v6660_v10 = vld [vmem:[#allocation53_spill] sm:$0xff] }
 0x242   : > { %v3164_v29 = vsel %vm2113_vm11, 1.0, %v6646_v50  ;;  %v2685_v63 = vmul.f32 %v6656_v25, %v3163_v31  ;;  %vm2050_vm5 = vmand %vm1986_vm12, %vm2018_vm8  ;;  %vm2083_vm15 = vcmp.lt.f32.partialorder %v6659_v11, 0.0001  ;;  %vm2084_vm4 = vcmp.lt.f32.partialorder %v6662_v46, 0.0001 }
 0x243   : > { %v2686_v40 = vmul.f32 %v6657_v27, %v3164_v29  ;;  %vm2051_vm14 = vmand %vm1987_vm3, %vm2019_vm13  ;;  %v6663_v29 = vld [vmem:[#allocation54_spill] sm:$0xff]  ;;  %vm2021_vm11 = vcmp.lt.f32.partialorder %v5228_v34, 0.0001  ;;  %vm2022_vm13 = vcmp.lt.f32.partialorder %v5312_v24, 0.0001 }
 0x244   : > { %v2714_v59 = vadd.f32 %v2713_v30, %v2685_v63  ;;  %vm2114_vm10 = vmand %vm2050_vm5, %vm2082_vm7  ;;  %v5452_v62 = vpop.xlane.xlu1 %1945 }
 0x245   : > { %v2735_v13 = vadd.f32 %v2734_v36, %v2686_v40  ;;  %vm2115_vm9 = vmand %vm2051_vm14, %vm2083_vm15  ;;  %v3165_v42 = vsel %vm2114_vm10, 1.0, %v6646_v50  ;;  %vm1988_vm0 = vcmp.le.f32.partialorder %v5226_v6, %v5452_v62  ;;  %vm1989_vm12 = vcmp.le.f32.partialorder %v5228_v34, %v5452_v62  ;;  %v6667_v62 = vld [vmem:[#allocation26_spill] sm:$0xff] }
 0x246   : > { %v3166_v43 = vsel %vm2115_vm9, 1.0, %v6646_v50  ;;  %v2687_v8 = vmul.f32 %v6660_v10, %v3165_v42  ;;  %vm2052_vm6 = vmand %vm1988_vm0, %vm2020_vm2  ;;  %vm2023_vm14 = vcmp.lt.f32.partialorder %v5316_v44, 0.0001  ;;  %vm2086_vm10 = vcmp.lt.f32.partialorder %v6667_v62, 0.0001 }
 0x247   : > { %v2688_v30 = vmul.f32 %v6661_v49, %v3166_v43  ;;  %vm2116_vm8 = vmand %vm2052_vm6, %vm2084_vm4  ;;  %vm2024_vm0 = vcmp.lt.f32.partialorder %v6626_v48, 0.0001  ;;  %vm2025_vm4 = vcmp.lt.f32.partialorder %v6625_v4, 0.0001 }
 0x248   : > { %v2715_v32 = vadd.f32 %v2714_v59, %v2687_v8  ;;  %v3167_v31 = vsel %vm2116_vm8, 1.0, %v6646_v50  ;;  %vm5501_vm7 = vmand %vm1989_vm12, %vm2021_vm11 }
 0x249   : > { %v5462_v36 = vadd.f32 %v2735_v13, %v2688_v30  ;;  %v2689_v63 = vmul.f32 %v6663_v29, %v3167_v31 }
 0x24b   : > { %v5466_v40 = vadd.f32 %v2715_v32, %v2689_v63 }
 0x252   : > { %v1621_v6 = vpop.xlane.xlu0 %1620 }
 0x254   : > { %v1597_v42 = vpop.xlane.xlu1 %1596 }
 0x259   : > { %v1600_v52 = vpop.xlane.xlu0 %1599  ;;  %v5470_v43 = vpop.xlane.xlu1 %1948 }
 0x25a   : > { %3461 = vlog2.f32 %v1600_v52  ;;  %vm1990_vm5 = vcmp.le.f32.partialorder %v5312_v24, %v5470_v43  ;;  %vm1991_vm15 = vcmp.le.f32.partialorder %v5316_v44, %v5470_v43  ;;  %v6677_v44 = vld [vmem:[#allocation57_spill] sm:$0xff] }
 0x25b   : > { %3463 = vlog2.f32 %v1597_v42  ;;  %vm2054_vm2 = vmand %vm1990_vm5, %vm2022_vm13  ;;  %vm2026_vm13 = vcmp.lt.f32.partialorder %v6628_v5, 0.0001 }
 0x25c   : > { %vm5537_vm11 = vmand %vm1991_vm15, %vm2023_vm14 }
 0x25d   : > { %v1624_v11 = vpop.xlane.xlu0 %1623  ;;  %vm5546_vm5 = vmand %vm2054_vm2, %vm2086_vm10 }
 0x261   : > { %v1603_v1 = vpop.xlane.xlu0 %1602 }
 0x262   : > { %3465 = vlog2.f32 %v1603_v1 }
 0x263   : > { %v1609_v13 = vpop.xlane.xlu1 %1608 }
 0x264   : > { %v3462_v32 = vpop.eup %3461 }
 0x265   : > { %v5468_v20 = vpop.xlane.xlu0 %1626  ;;  %v3464_v31 = vpop.eup %3463  ;;  %v1646_v41 = vmul.f32 0.6931472, %v3462_v32 }
 0x266   : > { %v1644_v37 = vmul.f32 0.6931472, %v3464_v31 }
 0x267   : > { %v1676_v1 = vadd.f32 %v1646_v41, %v5257_v33 }
 0x269   : > { %v1606_v59 = vpop.xlane.xlu0 %1605  ;;  %v2535_v61 = vmul.f32 %v6651_v2, %v1676_v1  ;;  %v2536_v33 = vmul.f32 %v6653_v14, %v1676_v1 }
 0x26a   : > { %3467 = vlog2.f32 %v1606_v59 }
 0x26b   : > { %3469 = vlog2.f32 %v1609_v13  ;;  %v1675_v13 = vadd.f32 %v1644_v37, %v5242_v12  ;;  %v6664_v37 = vld [vmem:[#allocation21_spill] sm:$0xff] }
 0x26c   : > { %v1615_v30 = vpop.xlane.xlu1 %1614  ;;  %v3466_v63 = vpop.eup %3465  ;;  %vm2085_vm3 = vcmp.lt.f32.partialorder %v6664_v37, 0.0001 }
 0x26d   : > { %v5472_v8 = vpop.xlane.xlu0 %1629  ;;  %v1648_v52 = vmul.f32 0.6931472, %v3466_v63  ;;  %vm5525_vm6 = vmand %vm5501_vm7, %vm2085_vm3  ;;  %v6673_v63 = vld [vmem:[#allocation24_spill] sm:$0xff] }
 0x26e   : > { %vm2088_vm12 = vcmp.lt.f32.partialorder %v6673_v63, 0.0001 }
 0x26f   : > { %v1677_v60 = vadd.f32 %v1648_v52, %v5270_v21  ;;  %v6674_v52 = vld [vmem:[#allocation25_spill] sm:$0xff] }
 0x270   : > { %v5474_v42 = vpop.xlane.xlu1 %1951  ;;  %vm2089_vm3 = vcmp.lt.f32.partialorder %v6674_v52, 0.0001 }
 0x271   : > { %v1612_v46 = vpop.xlane.xlu0 %1611  ;;  %v2537_v12 = vmul.f32 %v6656_v25, %v1677_v60  ;;  %v2538_v41 = vmul.f32 %v6657_v27, %v1677_v60  ;;  %vm1992_vm8 = vcmp.le.f32.partialorder %v6626_v48, %v5474_v42  ;;  %vm1993_vm7 = vcmp.le.f32.partialorder %v6625_v4, %v5474_v42 }
 0x272   : > { %3471 = vlog2.f32 %v1612_v46  ;;  %vm5562_vm14 = vmand %vm1992_vm8, %vm2024_vm0 }
 0x273   : > { %3473 = vlog2.f32 %v1615_v30  ;;  %vm5600_vm15 = vmand %vm5562_vm14, %vm2088_vm12  ;;  %vm6698_vm12 = vcmp.lt.f32.partialorder %v6627_v16, 0.0001 }
 0x274   : > { %v3468_v53 = vpop.eup %3467  ;;  %v5481_v31 = vpop.xlane.xlu1 %1954 }
 0x275   : > { %v1618_v18 = vpop.xlane.xlu0 %1617  ;;  %v1650_v59 = vmul.f32 0.6931472, %v3468_v53  ;;  %v3470_v7 = vpop.eup %3469  ;;  %v2533_v53 = vmul.f32 %v6650_v23, %v1675_v13  ;;  %vm1994_vm2 = vcmp.le.f32.partialorder %v6628_v5, %v5481_v31  ;;  %v6734_v5 = vld [vmem:[#allocation11_spill] sm:$0xff] }
 0x276   : > { %3475 = vlog2.f32 %v1618_v18  ;;  %v1652_v18 = vmul.f32 0.6931472, %v3470_v7 }
 0x277   : > { %v1678_v32 = vadd.f32 %v1650_v59, %v5272_v54  ;;  %3477 = vlog2.f32 %v1621_v6  ;;  %v2534_v54 = vmul.f32 %v6652_v58, %v1675_v13  ;;  %v2565_v2 = vadd.f32 %v2535_v61, %v2533_v53  ;;  %v6668_v6 = vld [vmem:[#allocation27_spill] sm:$0xff] }
 0x278   : > { %3479 = vlog2.f32 %v1624_v11  ;;  %v1679_v25 = vadd.f32 %v1652_v18, %v5302_v28  ;;  %vm2087_vm9 = vcmp.lt.f32.partialorder %v6668_v6, 0.0001  ;;  %v6679_v53 = vld [vmem:[#allocation99_spill] sm:$0xff]  ;;  %v6697_v6 = vld [vmem:[#allocation100_spill] sm:$0xff] }
 0x279   : > { %v2539_v14 = vmul.f32 %v6660_v10, %v1678_v32  ;;  %v2586_v58 = vadd.f32 %v2536_v33, %v2534_v54  ;;  %v2540_v60 = vmul.f32 %v6661_v49, %v1678_v32  ;;  %v2566_v61 = vadd.f32 %v2565_v2, %v2537_v12  ;;  %v5511_v10 = vpop.xlane.xlu1 %1957  ;;  %v6678_v32 = vld [vmem:[#allocation98_spill] sm:$0xff]  ;;  %vm5571_vm10 = vmand %vm5537_vm11, %vm2087_vm9 }
 0x27a   : > { %v2541_v59 = vmul.f32 %v6663_v29, %v1679_v25  ;;  %3481 = vlog2.f32 %v5468_v20  ;;  %v2542_v33 = vmul.f32 %v6678_v32, %v1679_v25  ;;  %vm5586_vm9 = vmand %vm1993_vm7, %vm2025_vm4  ;;  %vm2028_vm11 = vcmp.lt.f32.partialorder %v6630_v47, 0.0001 }
 0x27b   : > { %v2587_v49 = vadd.f32 %v2586_v58, %v2538_v41  ;;  %v2567_v28 = vadd.f32 %v2566_v61, %v2539_v14  ;;  %3483 = vlog2.f32 %v5472_v8  ;;  %v6686_v8 = vld [vmem:[#allocation30_spill] sm:$0xff]  ;;  %v3168_v2 = vsel %vm5525_vm6, 1.0, %v6646_v50  ;;  %vm5609_vm7 = vmand %vm1994_vm2, %vm2026_vm13  ;;  %v6692_v58 = vld [vmem:[#allocation28_spill] sm:$0xff] }
 0x27c   : > { %v3472_v46 = vpop.eup %3471  ;;  %vm2090_vm0 = vcmp.lt.f32.partialorder %v6686_v8, 0.0001  ;;  %vm1995_vm4 = vcmp.le.f32.partialorder %v6627_v16, %v5481_v31  ;;  %vm2029_vm6 = vcmp.lt.f32.partialorder %v6629_v55, 0.0001  ;;  %vm5621_vm14 = vmand %vm5586_vm9, %vm2089_vm3  ;;  %vm1996_vm13 = vcmp.le.f32.partialorder %v6630_v47, %v5511_v10  ;;  %v6721_v8 = vld [vmem:[#allocation63_spill] sm:$0xff] }
 0x27d   : > { %v1654_v21 = vmul.f32 0.6931472, %v3472_v46  ;;  %v3474_v23 = vpop.eup %3473  ;;  %v2588_v30 = vadd.f32 %v2587_v49, %v2540_v60  ;;  %v1633_v46 = vpop.xlane.xlu0 %1632  ;;  %v6693_v60 = vld [vmem:[#allocation29_spill] sm:$0xff]  ;;  %v2690_v62 = vmul.f32 %v6678_v32, %v3168_v2  ;;  %vm5635_vm8 = vmand %vm1995_vm4, %vm6698_vm12  ;;  %vm2031_vm3 = vcmp.lt.f32.partialorder %v6631_v26, 0.0001 }
 0x27e   : > { %v1656_v11 = vmul.f32 0.6931472, %v3474_v23  ;;  %v5579_v48 = vpop.xlane.xlu1 %1960  ;;  %vm5646_vm2 = vmand %vm5609_vm7, %vm2090_vm0  ;;  %3485 = vlog2.f32 %v1633_v46  ;;  %vm1997_vm4 = vcmp.le.f32.partialorder %v6629_v55, %v5511_v10  ;;  %v3169_v31 = vsel %vm5546_vm5, 1.0, %v6646_v50  ;;  %v6750_v10 = vld [vmem:[#allocation42_spill] sm:$0xff] }
 0x27f   : > { %v1680_v27 = vadd.f32 %v1654_v21, %v5304_v0  ;;  %v2568_v21 = vadd.f32 %v2567_v28, %v2541_v59  ;;  %v2589_v54 = vadd.f32 %v2588_v30, %v2542_v33  ;;  %v6701_v28 = vld [vmem:[#allocation34_spill] sm:$0xff]  ;;  %v6705_v59 = vld [vmem:[#allocation101_spill] sm:$0xff]  ;;  %vm5663_vm0 = vmand %vm1996_vm13, %vm2028_vm11  ;;  %vm1998_vm9 = vcmp.le.f32.partialorder %v6632_v15, %v5579_v48 }
 0x280   : > { %v3476_v34 = vpop.eup %3475  ;;  %v1681_v18 = vadd.f32 %v1656_v11, %v5332_v56  ;;  %v6687_v56 = vld [vmem:[#allocation31_spill] sm:$0xff]  ;;  %v6702_v11 = vld [vmem:[#allocation64_spill] sm:$0xff]  ;;  %vm2032_vm11 = vcmp.lt.f32.partialorder %v6634_v57, 0.0001  ;;  %vm5685_vm13 = vmand %vm1997_vm4, %vm2029_vm6  ;;  %vm6715_vm12 = vcmp.lt.f32.partialorder %v6692_v58, 0.0001  ;;  %vm1999_vm6 = vcmp.le.f32.partialorder %v6631_v26, %v5579_v48 }
 0x281   : > { %v2543_v43 = vmul.f32 %v6677_v44, %v1680_v27  ;;  %v1658_v13 = vmul.f32 0.6931472, %v3476_v34  ;;  %v2544_v12 = vmul.f32 %v6679_v53, %v1680_v27  ;;  %v3478_v37 = vpop.eup %3477  ;;  %v6694_v27 = vld [vmem:[#allocation58_spill] sm:$0xff]  ;;  %v1636_v34 = vpop.xlane.xlu0 %1635  ;;  %vm6708_vm7 = vcmp.lt.f32.partialorder %v6687_v56, 0.0001  ;;  %v6711_v33 = vld [vmem:[#allocation35_spill] sm:$0xff] }
 0x282   : > { %v3480_v61 = vpop.eup %3479  ;;  %v1660_v25 = vmul.f32 0.6931472, %v3478_v37  ;;  %v2546_v49 = vmul.f32 %v6697_v6, %v1681_v18  ;;  %v5652_v16 = vpop.xlane.xlu1 %1963  ;;  %vm5672_vm5 = vmand %vm5635_vm8, %vm6708_vm7  ;;  %vm2033_vm8 = vcmp.lt.f32.partialorder %v6633_v3, 0.0001  ;;  %3487 = vlog2.f32 %v1636_v34  ;;  %v6733_v48 = vld [vmem:[#allocation37_spill] sm:$0xff] }
 0x283   : > { %v2569_v14 = vadd.f32 %v2568_v21, %v2543_v43  ;;  %v1682_v42 = vadd.f32 %v1658_v13, %v5338_v19  ;;  %v2590_v23 = vadd.f32 %v2589_v54, %v2544_v12  ;;  %v2545_v19 = vmul.f32 %v6694_v27, %v1681_v18  ;;  %v6714_v12 = vld [vmem:[#allocation32_spill] sm:$0xff] }
 0x284   : > { %v1662_v52 = vmul.f32 0.6931472, %v3480_v61  ;;  %v1683_v32 = vadd.f32 %v1660_v25, %v5240_v35  ;;  %v3482_v47 = vpop.eup %3481  ;;  %v3170_v35 = vsel %vm5571_vm10, 1.0, %v6646_v50  ;;  %v2737_v18 = vadd.f32 %v5462_v36, %v2690_v62  ;;  %vm5697_vm10 = vmand %vm5663_vm0, %vm6715_vm12  ;;  %v6735_v62 = vld [vmem:[#allocation88_spill] sm:$0xff] }
 0x285   : > { %v2547_v24 = vmul.f32 %v6702_v11, %v1682_v42  ;;  %v2570_v30 = vadd.f32 %v2569_v14, %v2545_v19  ;;  %v2548_v43 = vmul.f32 %v6705_v59, %v1682_v42  ;;  %v2591_v13 = vadd.f32 %v2590_v23, %v2546_v49  ;;  %v3484_v29 = vpop.eup %3483  ;;  %v1639_v20 = vpop.xlane.xlu0 %1638  ;;  %v6726_v42 = vld [vmem:[#allocation55_spill] sm:$0xff] }
 0x286   : > { %v2691_v21 = vmul.f32 %v6677_v44, %v3169_v31  ;;  %v1684_v54 = vadd.f32 %v1662_v52, %v5255_v9  ;;  %v3171_v36 = vsel %vm5600_vm15, 1.0, %v6646_v50  ;;  %vm6718_vm7 = vcmp.lt.f32.partialorder %v6632_v15, 0.0001  ;;  %v6725_v15 = vld [vmem:[#allocation33_spill] sm:$0xff]  ;;  %v1970_v4 = vpop.xlane.xlu1 %1969 }
 0x287   : > { %v2571_v37 = vadd.f32 %v2570_v30, %v2547_v24  ;;  %v2592_v44 = vadd.f32 %v2591_v13, %v2548_v43  ;;  %vm5713_vm0 = vmand %vm1998_vm9, %vm6718_vm7  ;;  %vm2037_vm12 = vcmp.lt.f32.partialorder %v5372_v22, 0.0001  ;;  %v2549_v56 = vmul.f32 %v6721_v8, %v1683_v32 }
 0x288   : > { %v2692_v9 = vmul.f32 %v6679_v53, %v3170_v35  ;;  %v1664_v2 = vmul.f32 0.6931472, %v3482_v47  ;;  %vm6722_vm15 = vcmp.lt.f32.partialorder %v6693_v60, 0.0001  ;;  %vm2000_vm7 = vcmp.le.f32.partialorder %v6634_v57, %v5652_v16  ;;  %v6729_v60 = vld [vmem:[#allocation36_spill] sm:$0xff]  ;;  %v3486_v24 = vpop.eup %3485 }
 0x289   : > { %vm5724_vm4 = vmand %vm5685_vm13, %vm6722_vm15  ;;  %v2550_v23 = vmul.f32 %v6726_v42, %v1683_v32  ;;  %v1666_v7 = vmul.f32 0.6931472, %v3484_v29  ;;  %v3172_v53 = vsel %vm5621_vm14, 1.0, %v6646_v50  ;;  %3489 = vlog2.f32 %v1639_v20 }
 0x28a   : > { %vm5740_vm13 = vmand %vm1999_vm6, %vm2031_vm3  ;;  %vm2100_vm15 = vcmp.lt.f32.partialorder %v6729_v60, 0.0001  ;;  %v2693_v61 = vmul.f32 %v6694_v27, %v3171_v36  ;;  %v2572_v25 = vadd.f32 %v2571_v37, %v2549_v56  ;;  %v3173_v19 = vsel %vm5646_vm2, 1.0, %v6646_v50 }
 0x28b   : > { %vm6730_vm14 = vcmp.lt.f32.partialorder %v6701_v28, 0.0001  ;;  %vm2001_vm3 = vcmp.le.f32.partialorder %v6633_v3, %v5652_v16  ;;  %v2717_v27 = vadd.f32 %v5466_v40, %v2691_v21  ;;  %v2551_v34 = vmul.f32 %v6734_v5, %v1684_v54  ;;  %vm5768_vm2 = vmand %vm2000_vm7, %vm2032_vm11  ;;  %v6746_v3 = vld [vmem:[#allocation41_spill] sm:$0xff]  ;;  %v1976_v16 = vpop.xlane.xlu1 %1975 }
 0x28c   : > { %vm5753_vm9 = vmand %vm5713_vm0, %vm6730_vm14  ;;  %v2552_v49 = vmul.f32 %v6735_v62, %v1684_v54  ;;  %v2593_v0 = vadd.f32 %v2592_v44, %v2550_v23  ;;  %vm2040_vm0 = vcmp.lt.f32.partialorder %v5376_v39, 0.0001  ;;  %v1685_v30 = vadd.f32 %v1664_v2, %v5290_v51  ;;  %v3488_v20 = vpop.eup %3487  ;;  %v6756_v54 = vld [vmem:[#allocation61_spill] sm:$0xff]  ;;  %v6764_v23 = vld [vmem:[#allocation68_spill] sm:$0xff] }
 0x28d   : > { %v2694_v40 = vmul.f32 %v6697_v6, %v3172_v53  ;;  %v3174_v63 = vsel %vm5672_vm5, 1.0, %v6646_v50  ;;  %vm6738_vm14 = vcmp.lt.f32.partialorder %v6711_v33, 0.0001  ;;  %vm2004_vm11 = vcmp.le.f32.partialorder %v5370_v45, %v1970_v4  ;;  %vm5798_vm5 = vmand %vm2001_vm3, %vm2033_vm8 }
 0x28e   : > { %vm5782_vm6 = vmand %vm5740_vm13, %vm6738_vm14  ;;  %vm2041_vm7 = vcmp.lt.f32.partialorder %v5378_v17, 0.0001  ;;  %v1686_v51 = vadd.f32 %v1666_v7, %v5292_v38  ;;  %v2695_v6 = vmul.f32 %v6702_v11, %v3173_v19  ;;  %v3175_v31 = vsel %vm5697_vm10, 1.0, %v6646_v50 }
 0x28f   : > { %vm2005_vm13 = vcmp.le.f32.partialorder %v5372_v22, %v1970_v4  ;;  %v2738_v43 = vadd.f32 %v2737_v18, %v2692_v9  ;;  %v2718_v13 = vadd.f32 %v2717_v27, %v2693_v61  ;;  %v2573_v38 = vadd.f32 %v2572_v25, %v2551_v34  ;;  %v6752_v18 = vld [vmem:[#allocation62_spill] sm:$0xff]  ;;  %v6760_v22 = vld [vmem:[#allocation112_spill] sm:$0xff]  ;;  %v6768_v25 = vld [vmem:[#allocation39_spill] sm:$0xff] }
 0x290   : > { %v3176_v11 = vsel %vm5724_vm4, 1.0, %v6646_v50  ;;  %vm6743_vm10 = vcmp.lt.f32.partialorder %v6714_v12, 0.0001  ;;  %vm2104_vm8 = vcmp.lt.f32.partialorder %v6746_v3, 0.0001  ;;  %v2594_v32 = vadd.f32 %v2593_v0, %v2552_v49  ;;  %v6751_v12 = vld [vmem:[#allocation65_spill] sm:$0xff] }
 0x291   : > { %vm5810_vm14 = vmand %vm5768_vm2, %vm6743_vm10  ;;  %v2696_v1 = vmul.f32 %v6705_v59, %v3174_v63  ;;  %v1668_v33 = vmul.f32 0.6931472, %v3486_v24  ;;  %v3177_v47 = vsel %vm5753_vm9, 1.0, %v6646_v50  ;;  %vm6747_vm4 = vcmp.lt.f32.partialorder %v5370_v45, 0.0001  ;;  %v6755_v45 = vld [vmem:[#allocation110_spill] sm:$0xff] }
 0x292   : > { %vm5823_vm3 = vmand %vm2004_vm11, %vm6747_vm4  ;;  %vm2105_vm2 = vcmp.lt.f32.partialorder %v6750_v10, 0.0001  ;;  %v2553_v29 = vmul.f32 %v6751_v12, %v1685_v30  ;;  %v2554_v21 = vmul.f32 %v6752_v18, %v1685_v30  ;;  %v2739_v59 = vadd.f32 %v2738_v43, %v2694_v40  ;;  %v6772_v34 = vld [vmem:[#allocation73_spill] sm:$0xff]  ;;  %v6783_v3 = vld [vmem:[#allocation60_spill] sm:$0xff] }
 0x293   : > { %v2697_v37 = vmul.f32 %v6721_v8, %v3175_v31  ;;  %vm5835_vm9 = vmand %vm2005_vm13, %vm2037_vm12  ;;  %v2555_v36 = vmul.f32 %v6756_v54, %v1686_v51  ;;  %v2719_v44 = vadd.f32 %v2718_v13, %v2695_v6  ;;  %v2698_v41 = vmul.f32 %v6726_v42, %v3176_v11  ;;  %v3490_v4 = vpop.eup %3489  ;;  %v6776_v6 = vld [vmem:[#allocation43_spill] sm:$0xff]  ;;  %v6787_v10 = vld [vmem:[#allocation69_spill] sm:$0xff] }
 0x294   : > { %vm6757_vm10 = vcmp.lt.f32.partialorder %v6725_v15, 0.0001  ;;  %vm2008_vm12 = vcmp.le.f32.partialorder %v5376_v39, %v1976_v16  ;;  %vm2035_vm13 = vcmp.lt.f32.partialorder %v6760_v22, 0.0001  ;;  %v2574_v56 = vadd.f32 %v2573_v38, %v2553_v29  ;;  %vm5860_vm11 = vmand %vm5823_vm3, %vm2100_vm15  ;;  %v6763_v15 = vld [vmem:[#allocation38_spill] sm:$0xff]  ;;  %v6791_v8 = vld [vmem:[#allocation89_spill] sm:$0xff] }
 0x295   : > { %vm5846_vm4 = vmand %vm5798_vm5, %vm6757_vm10  ;;  %v3178_v9 = vsel %vm5782_vm6, 1.0, %v6646_v50  ;;  %v2699_v2 = vmul.f32 %v6734_v5, %v3177_v47  ;;  %vm2009_vm5 = vcmp.le.f32.partialorder %v5378_v17, %v1976_v16  ;;  %vm2098_vm10 = vcmp.lt.f32.partialorder %v6763_v15, 0.0001  ;;  %v6771_v5 = vld [vmem:[#allocation71_spill] sm:$0xff]  ;;  %v6775_v39 = vld [vmem:[#allocation50_spill] sm:$0xff] }
 0x296   : > { %v2740_v42 = vadd.f32 %v2739_v59, %v2696_v1  ;;  %v1687_v7 = vadd.f32 %v1668_v33, %v6764_v23  ;;  %v2595_v53 = vadd.f32 %v2594_v32, %v2554_v21  ;;  %v3179_v58 = vsel %vm5810_vm14, 1.0, %v6646_v50  ;;  %vm5886_vm14 = vmand %vm2008_vm12, %vm2040_vm0  ;;  %v6780_v38 = vld [vmem:[#allocation46_spill] sm:$0xff]  ;;  %v6785_v33 = vld [vmem:[#allocation44_spill] sm:$0xff] }
 0x297   : > { %vm6765_vm6 = vcmp.lt.f32.partialorder %v6733_v48, 0.0001  ;;  %vm2099_vm3 = vcmp.lt.f32.partialorder %v6768_v25, 0.0001  ;;  %v2720_v19 = vadd.f32 %v2719_v44, %v2697_v37  ;;  %v1670_v26 = vmul.f32 0.6931472, %v3488_v20 }
 0x298   : > { %vm5874_vm15 = vmand %vm5835_vm9, %vm6765_vm6  ;;  %v3180_v27 = vsel %vm5846_vm4, 1.0, %v6646_v50  ;;  %vm2038_vm9 = vcmp.lt.f32.partialorder %v6771_v5, 0.0001  ;;  %v2556_v49 = vmul.f32 %v6772_v34, %v1686_v51  ;;  %v2741_v0 = vadd.f32 %v2740_v42, %v2698_v41  ;;  %v6777_v51 = vld [vmem:[#allocation40_spill] sm:$0xff]  ;;  %v6789_v21 = vld [vmem:[#allocation47_spill] sm:$0xff] }
 0x299   : > { %v2700_v28 = vmul.f32 %v6735_v62, %v3178_v9  ;;  %vm5897_vm4 = vmand %vm2009_vm5, %vm2041_vm7  ;;  %v2575_v30 = vadd.f32 %v2574_v56, %v2555_v36  ;;  %v2721_v40 = vadd.f32 %v2720_v19, %v2699_v2  ;;  %v1672_v63 = vmul.f32 0.6931472, %v3490_v4  ;;  %v6786_v47 = vld [vmem:[#allocation52_spill] sm:$0xff]  ;;  %v6790_v36 = vld [vmem:[#allocation113_spill] sm:$0xff] }
 0x29a   : > { %v2701_v57 = vmul.f32 %v6751_v12, %v3179_v58  ;;  %v2557_v31 = vmul.f32 %v6777_v51, %v1687_v7  ;;  %v2596_v62 = vadd.f32 %v2595_v53, %v2556_v49  ;;  %v2702_v52 = vmul.f32 %v6752_v18, %v3180_v27  ;;  %vm5913_vm7 = vmand %vm5886_vm14, %vm2104_vm8  ;;  %v6788_v18 = vld [vmem:[#allocation13_spill] sm:$0xff]  ;;  %v6794_v58 = vld [vmem:[#allocation12_spill] sm:$0xff] }
 0x29b   : > { %v3183_v17 = vsel %vm5860_vm11, 1.0, %v6646_v50  ;;  %v1688_v11 = vadd.f32 %v1670_v26, %v6780_v38  ;;  %v3184_v46 = vsel %vm5874_vm15, 1.0, %v6646_v50  ;;  %vm5925_vm11 = vmand %vm5897_vm4, %vm2105_vm2  ;;  %v2558_v32 = vmul.f32 %v6783_v3, %v1687_v7  ;;  %v6792_v4 = vld [vmem:[#allocation93_spill] sm:$0xff]  ;;  %v6796_v27 = vld [vmem:[#allocation70_spill] sm:$0xff] }
 0x29c   : > { %v2742_v1 = vadd.f32 %v2741_v0, %v2700_v28  ;;  %vm6784_vm6 = vcmp.lt.f32.partialorder %v6755_v45, 0.0001  ;;  %vm2103_vm15 = vcmp.lt.f32.partialorder %v6785_v33, 0.0001  ;;  %vm2042_vm12 = vcmp.lt.f32.partialorder %v6786_v47, 0.0001 }
 0x29d   : > { %v2576_v35 = vadd.f32 %v2575_v30, %v2557_v31  ;;  %v1689_v12 = vadd.f32 %v1672_v63, %v6787_v10  ;;  %v2722_v29 = vadd.f32 %v2721_v40, %v2701_v57  ;;  %vm2043_vm4 = vcmp.lt.f32.partialorder %v6788_v18, 0.0001  ;;  %v6798_v40 = vld [vmem:[#allocation66_spill] sm:$0xff] }
 0x29e   : > { %vm2106_vm0 = vcmp.lt.f32.partialorder %v6789_v21, 0.0001  ;;  %v2597_v59 = vadd.f32 %v2596_v62, %v2558_v32  ;;  %v2743_v37 = vadd.f32 %v2742_v1, %v2702_v52  ;;  %v2705_v55 = vmul.f32 %v6777_v51, %v3183_v17 }
 0x29f   : > { %v2559_v44 = vmul.f32 %v6790_v36, %v1688_v11  ;;  %v3187_v56 = vsel %vm5913_vm7, 1.0, %v6646_v50  ;;  %v2561_v42 = vmul.f32 %v6792_v4, %v1689_v12  ;;  %v3188_v23 = vsel %vm5925_vm11, 1.0, %v6646_v50 }
 0x2a0   : > { %v2562_v60 = vmul.f32 %v6794_v58, %v1689_v12  ;;  %v2709_v31 = vmul.f32 %v6792_v4, %v3187_v56  ;;  %v2710_v62 = vmul.f32 %v6794_v58, %v3188_v23 }
 0x2a1   : > { %v1642_v61 = vpop.xlane.xlu0 %1641  ;;  %v2577_v15 = vadd.f32 %v2576_v35, %v2559_v44  ;;  %v6800_v44 = vld [vmem:[#allocation10_spill] sm:$0xff] }
 0x2a2   : > { %3491 = vlog2.f32 %v1642_v61 }
 0x2a3   : > { %v2578_v0 = vadd.f32 %v2577_v15, %v2561_v42 }
 0x2a5   : > { %v1967_v13 = vpop.xlane.xlu0 %1966 }
 0x2a6   : > { %vm2002_vm8 = vcmp.le.f32.partialorder %v6755_v45, %v1967_v13  ;;  %vm2003_vm5 = vcmp.le.f32.partialorder %v6760_v22, %v1967_v13  ;;  %v2706_v45 = vmul.f32 %v6783_v3, %v3184_v46  ;;  %v2560_v22 = vmul.f32 %v6791_v8, %v1688_v11 }
 0x2a7   : > { %vm2066_vm14 = vmand %vm2002_vm8, %vm6784_vm6 }
 0x2a8   : > { %vm2067_vm2 = vmand %vm2003_vm5, %vm2035_vm13  ;;  %v2598_v53 = vadd.f32 %v2597_v59, %v2560_v22  ;;  %v2769_v59 = vld [vmem:[#allocation5] sm:$0x3]  ;;  %v6801_v22 = vld [vmem:[#allocation9_spill] sm:$0xff] }
 0x2a9   : > { %vm2130_vm8 = vmand %vm2066_vm14, %vm2098_vm10  ;;  %v1973_v20 = vpop.xlane.xlu0 %1972  ;;  %v2774_v56 = vrot.slane %v2769_v59, %v6801_v22 }
 0x2aa   : > { %vm2131_vm6 = vmand %vm2067_vm2, %vm2099_vm3  ;;  %v3181_v41 = vsel %vm2130_vm8, 1.0, %v6646_v50  ;;  %vm2006_vm13 = vcmp.le.f32.partialorder %v6771_v5, %v1973_v20  ;;  %vm2007_vm5 = vcmp.le.f32.partialorder %v6775_v39, %v1973_v20  ;;  %vm6793_vm3 = vcmp.lt.f32.partialorder %v6775_v39, 0.0001  ;;  %v6797_v39 = vld [vmem:[#allocation48_spill] sm:$0xff] }
 0x2ab   : > { %v3182_v9 = vsel %vm2131_vm6, 1.0, %v6646_v50  ;;  %v2703_v2 = vmul.f32 %v6756_v54, %v3181_v41  ;;  %vm2070_vm10 = vmand %vm2006_vm13, %vm2038_vm9  ;;  %vm6795_vm9 = vcmp.lt.f32.partialorder %v6776_v6, 0.0001  ;;  %v2599_v30 = vadd.f32 %v2598_v53, %v2562_v60  ;;  %v6799_v6 = vld [vmem:[#allocation76_spill] sm:$0xff] }
 0x2ac   : > { %v3492_v14 = vpop.eup %3491  ;;  %v2704_v7 = vmul.f32 %v6772_v34, %v3182_v9  ;;  %vm2071_vm7 = vmand %vm2007_vm5, %vm6793_vm3  ;;  %v2778_v41 = vrot.slane %v2769_v59, %v6800_v44  ;;  %v2835_v9 = vld [vmem:[#allocation7] sm:$0x3] }
 0x2ad   : > { %v1674_v54 = vmul.f32 0.6931472, %v3492_v14  ;;  %v2723_v61 = vadd.f32 %v2722_v29, %v2703_v2  ;;  %vm2134_vm14 = vmand %vm2070_vm10, %vm6795_vm9  ;;  %v1979_v25 = vpop.xlane.xlu0 %1978  ;;  %v2840_v23 = vrot.slane %v2835_v9, %v6801_v22  ;;  %vm2950_vm10 = vcmask (!%p3223_p8), 0  }
 0x2ae   : > { %v2744_v19 = vadd.f32 %v2743_v37, %v2704_v7  ;;  %vm2135_vm2 = vmand %vm2071_vm7, %vm2103_vm15  ;;  %v3185_v26 = vsel %vm2134_vm14, 1.0, %v6646_v50  ;;  %vm2010_vm11 = vcmp.le.f32.partialorder %v6786_v47, %v1979_v25  ;;  %vm2011_vm8 = vcmp.le.f32.partialorder %v6788_v18, %v1979_v25 }
 0x2af   : > { %v1690_v48 = vadd.f32 %v1674_v54, %v6796_v27  ;;  %v3186_v5 = vsel %vm2135_vm2, 1.0, %v6646_v50  ;;  %v2707_v34 = vmul.f32 %v6790_v36, %v3185_v26  ;;  %v2724_v49 = vadd.f32 %v2723_v61, %v2705_v55  ;;  %vm2074_vm6 = vmand %vm2010_vm11, %vm2042_vm12  ;;  %v6803_v61 = vld [vmem:[#allocation67_spill] sm:$0xff] }
 0x2b0   : > { %v2708_v28 = vmul.f32 %v6791_v8, %v3186_v5  ;;  %v2745_v24 = vadd.f32 %v2744_v19, %v2706_v45  ;;  %vm2107_vm15 = vcmp.lt.f32.partialorder %v6797_v39, 0.0001  ;;  %vm2075_vm13 = vmand %vm2011_vm8, %vm2043_vm4  ;;  %v2844_v7 = vrot.slane %v2835_v9, %v6800_v44  ;;  %v6806_v39 = vld [vmem:[#allocation49_spill] sm:$0xff] }
 0x2b1   : > { %v2564_v63 = vmul.f32 %v6798_v40, %v1690_v48  ;;  %v2725_v57 = vadd.f32 %v2724_v49, %v2707_v34  ;;  %v2563_v51 = vmul.f32 %v6799_v6, %v1690_v48  ;;  %vm2138_vm5 = vmand %vm2074_vm6, %vm2106_vm0  ;;  %vm6804_vm0 = vnez %v6803_v61  ;;  %v6805_v48 = vld [vmem:[#allocation111_spill] sm:$0xff] }
 0x2b2   : > { %v2746_v52 = vadd.f32 %v2745_v24, %v2708_v28  ;;  %vm2139_vm12 = vmand %vm2075_vm13, %vm2107_vm15  ;;  %v3189_v17 = vsel %vm2138_vm5, 1.0, %v6646_v50  ;;  %vm6807_vm4 = vnez %v6806_v39 }
 0x2b3   : > { %v2600_v43 = vadd.f32 %v2599_v30, %v2564_v63  ;;  %v3190_v13 = vsel %vm2139_vm12, 1.0, %v6646_v50  ;;  %v2579_v38 = vadd.f32 %v2578_v0, %v2563_v51  ;;  %v2711_v11 = vmul.f32 %v6799_v6, %v3189_v17  ;;  %v2913_v6 = vld [vmem:[#allocation6] sm:$0x3] (!%p3223_p8) }
 0x2b4   : > { %v2712_v46 = vmul.f32 %v6798_v40, %v3190_v13  ;;  %v2726_v16 = vadd.f32 %v2725_v57, %v2709_v31  ;;  %v2747_v3 = vadd.f32 %v2746_v52, %v2710_v62  ;;  %v2906_v40 = vld [vmem:[#allocation3] sm:$0x3] (!%p3223_p8)  ;;  %v2905_v57 = vld [vmem:[#allocation2] sm:$0x3] (!%p3223_p8)  ;;  %v2914_v52 = vmul.f32 (!%p3223_p8), 2.0, %v2913_v6 }
 0x2b5   : > { %v2601_v32 = vrot.slane %v2600_v43, 4  ;;  %v2580_v1 = vrot.slane %v2579_v38, 4  ;;  %3493 = vlog2.f32 (!%p3223_p8), %v2906_v40 }
 0x2b6   : > { %v2727_v33 = vadd.f32 %v2726_v16, %v2711_v11  ;;  %v2748_v47 = vadd.f32 %v2747_v3, %v2712_v46  ;;  %v6808_v11 = vld [vmem:[#allocation9_spill] sm:$0xff] (!%p3223_p8)  ;;  %v6809_v16 = vld [vmem:[#allocation10_spill] sm:$0xff] (!%p3223_p8) }
 0x2b7   : > { %v2602_v35 = vadd.f32 %v2601_v32, %v2600_v43  ;;  %v2581_v10 = vadd.f32 %v2580_v1, %v2579_v38 }
 0x2b8   : > { %v2728_v12 = vrot.slane %v2727_v33, 4  ;;  %v2749_v29 = vrot.slane %v2748_v47, 4 }
 0x2b9   : > { %v2603_v18 = vrot.slane %v2602_v35, 2  ;;  %v2582_v21 = vrot.slane %v2581_v10, 2 }
 0x2ba   : > { %v2729_v37 = vadd.f32 %v2728_v12, %v2727_v33  ;;  %v2750_v50 = vadd.f32 %v2749_v29, %v2748_v47 }
 0x2bb   : > { %v2604_v55 = vadd.f32 %v2603_v18, %v2602_v35  ;;  %v2583_v45 = vadd.f32 %v2582_v21, %v2581_v10 }
 0x2bc   : > { %v2730_v20 = vrot.slane %v2729_v37, 2  ;;  %v2751_v36 = vrot.slane %v2750_v50, 2 }
 0x2bd   : > { %v2605_v8 = vrot.slane %v2604_v55, 1  ;;  %v2584_v2 = vrot.slane %v2583_v45, 1 }
 0x2be   : > { %v2731_v14 = vadd.f32 %v2730_v20, %v2729_v37  ;;  %v2752_v15 = vadd.f32 %v2751_v36, %v2750_v50 }
 0x2bf   : > { %v2606_v4 = vadd.f32 %v2605_v8, %v2604_v55  ;;  %v2585_v42 = vadd.f32 %v2584_v2, %v2583_v45  ;;  %v3494_v63 = vpop.eup (!%p3223_p8), %3493 }
 0x2c0   : > { %v2732_v53 = vrot.slane %v2731_v14, 1  ;;  %v2753_v58 = vrot.slane %v2752_v15, 1  ;;  %v2908_v51 = vmul.f32 (!%p3223_p8), 0.6931472, %v3494_v63 }
 0x2c1   : > { %v2782_v54 = vsel %vm5161_vm1, %v2606_v4, %v2778_v41  ;;  %v2781_v25 = vsel %vm6804_vm0, %v2585_v42, %v2774_v56 }
 0x2c2   : > { %v2733_v19 = vadd.f32 %v2732_v53, %v2731_v14  ;;  %v2754_v26 = vadd.f32 %v2753_v58, %v2752_v15  ;;  %v2785_v27 = vcombine.low %v2781_v25, %v2782_v54  ;;  %v2909_v62 = vadd.f32 (!%p3223_p8), %v2908_v51, %v2905_v57 }
 0x2c4   : > { %v2792_v5 = vrot.slane %v2785_v27, %v6805_v48  ;;  %v2847_v34 = vsel %vm6804_vm0, %v2733_v19, %v2840_v23  ;;  %v2848_v49 = vsel %vm5161_vm1, %v2754_v26, %v2844_v7  ;;  %vm2928_vm1 = vcmask (!%p3223_p8), 1040384  }
 0x2c5   : > { %v2851_v0 = vcombine.low %v2847_v34, %v2848_v49  ;;  %2904 = sbr.rel (%p3223_p8) target bundleno = 878 (0x36e), region = 52 }
 0x2c6   : > { %v2799_v28 = vrot.slane %v2792_v5, %v6805_v48 }
 0x2c7   : > { %v2858_v24 = vrot.slane %v2851_v0, %v6805_v48 }
 0x2c8   : > { %2801 = vst.msk [vmem:[#allocation5] sm:$0x3] %vm6807_vm4, %v2799_v28 }
 0x2c9   : > { %v2865_v30 = vrot.slane %v2858_v24, %v6805_v48 }
 0x2cb   : > { %2867 = vst.msk [vmem:[#allocation7] sm:$0x3] %vm6807_vm4, %v2865_v30 }
 0x2cf   : > { %v2911_v31 = vld [vmem:[#allocation5] sm:$0x3] }
 0x2d0   : > { %v2912_v17 = vadd.f32 %v2911_v31, %v2909_v62 }
 0x2d2   : > { %v2910_v43 = vld [vmem:[#allocation7] sm:$0x3]  ;;  %v2915_v13 = vsub.f32 %v2912_v17, %v2914_v52 }
 0x2d3   : > { %v2938_v46 = vrot.slane %v2910_v43, %v6808_v11  ;;  %v2942_v3 = vrot.slane %v2910_v43, %v6809_v16 }
 0x2d4   : > { %v2916_v38 = vmul.f32 %v2915_v13, %v2910_v43 }
 0x2d5   : > { %v2945_v35 = vsel %vm2928_vm1, %v2938_v46, 0.0  ;;  %v2946_v10 = vsel %vm2928_vm1, %v2942_v3, 0.0 }
 0x2d6   : > { %v2921_v32 = vrot.slane %v2916_v38, %v6808_v11  ;;  %v2925_v1 = vrot.slane %v2916_v38, %v6809_v16  ;;  %v2947_v29 = vadd.f32 %v2946_v10, %v2945_v35 }
 0x2d8   : > { %v2929_v33 = vsel %vm2928_vm1, %v2921_v32, 0.0  ;;  %v2930_v47 = vsel %vm2928_vm1, %v2925_v1, 0.0 }
 0x2d9   : > { %v2931_v12 = vadd.f32 %v2930_v47, %v2929_v33 }
 0x2db   : > { %2932 = vadd.xlane.f32.xlu0 %v2931_v12 }
 0x2df   : > { %2948 = vadd.xlane.f32.xlu0 %v2947_v29 }
 0x368   : > { %v2933_v18 = vpop.xlane.xlu0 %2932 }
 0x369   : > { %2951 = vst.msk [vmem:[%s3648_s21] sm:$0x1] %vm2950_vm10, %v2933_v18 }
 0x36c   : > { %v2949_v21 = vpop.xlane.xlu0 %2948 }
 0x36d   : > { %2952 = vst.msk [vmem:[%s3653_s16] sm:$0x1] %vm2950_vm10, %v2949_v21 }
 0x36e PF: > { %s18_s28 = sadd.s32 1, %s3533_s28   ;;  %s6810_s0 = sld [smem:[#allocation8_spill]] }
 0x36f   : > { %p15_p9 = scmp.ge.s32.totalorder %s18_s28, 6   ;;  %s6811_s24 = smov %s3525_s26 }
 0x370   : > { %s6812_s25 = smov %s3529_s27  ;;  %s6813_s26 = smov %s6816_s29 }
 0x371   :  { %17 = sbr.rel (!%p15_p9) target bundleno = 3 (0x3), region = 109 }
 0x374   : > { %s6814_s27 = smov %s6810_s0 }

</bundles_post_ra>
